<compile_context>
chip_gen: v6e
topology: v6e:2x2x1
jax: 0.10.0
libtpu: 0.0.40
codegen_flags: <defaults>
</compile_context>

<pallas_src>
import functools
import math

import jax
import jax.numpy as jnp
from jax.experimental import pallas as pl
from jax.experimental.pallas import tpu as pltpu


# ----------------------------------------------------------------------------
# Fused MLP kernel: grid = (K // tk,) over fc1's reduction axis.
#   - x @ W1 is accumulated into a VMEM-resident f32 scratch (acc_ref).
#   - fc2/fc3/fc4 weights have constant index maps -> fetched once, resident.
#   - k == last epilogue: bias+relu for fc1, then fc2/fc3/fc4, sigmoid*2*sigma
#     and (optionally) mean-centering, stored to the resident output block.
# ----------------------------------------------------------------------------
def _fused_mlp_kernel(x_ref, w1_ref, b1_ref, w2_ref, b2_ref, w3_ref, b3_ref,
                      w4_ref, b4_ref, o_ref, acc_ref, *, sigma, use_mean):
    k = pl.program_id(0)

    x = x_ref[...]
    w1 = w1_ref[...]
    if w1.dtype != x.dtype:          # bf16-weight path: run the MXU in bf16
        x = x.astype(w1.dtype)
    partial = jnp.dot(x, w1, preferred_element_type=jnp.float32)

    @pl.when(k == 0)
    def _():                         # first step: plain store, no zero-fill
        acc_ref[...] = partial

    @pl.when(k != 0)
    def _():
        acc_ref[...] = acc_ref[...] + partial

    @pl.when(k == pl.num_programs(0) - 1)
    def _():
        def mm(a, w_ref_):
            w_ = w_ref_[...]
            a_ = a.astype(w_.dtype) if w_.dtype != a.dtype else a
            return jnp.dot(a_, w_, preferred_element_type=jnp.float32)

        h = jnp.maximum(acc_ref[...] + b1_ref[...], 0.0)     # fc1 + relu
        h = jnp.maximum(mm(h, w2_ref) + b2_ref[...], 0.0)    # fc2 + relu
        h = jnp.maximum(mm(h, w3_ref) + b3_ref[...], 0.0)    # fc3 + relu
        z = mm(h, w4_ref) + b4_ref[...]                      # fc4
        s = jax.nn.sigmoid(z) * (2.0 * sigma)
        if use_mean:
            # NOTE: block-local mean == global mean only because the whole
            # batch lives in this single resident output block.  Do not tile
            # M here without a two-pass cross-block reduction.
            s = s - jnp.mean(s) + sigma
        o_ref[...] = s.astype(o_ref.dtype)


def fused_mlp_pallas(flat, w1, b1, w2, b2, w3, b3, w4, b4, *, sigma, use_mean):
    """flat:[M,K] -> relu(.@W1+b1) -> relu(.@W2+b2) -> relu(.@W3+b3)
       -> .@W4+b4 -> sigmoid*2*sigma (optionally -mean+sigma).  One call."""
    M, K = flat.shape
    H = w1.shape[1]          # 512
    N = w4.shape[1]          # 1

    # Keep the streamed fc1 weight block at 4 MiB (8 MiB double-buffered)
    # regardless of storage dtype so the call fits v5e's 16 MiB default
    # scoped-VMEM budget without flags.
    tk = 4096 if w1.dtype.itemsize <= 2 else 2048
    if K % tk != 0:
        tk = K
    grid = (K // tk,)

    def const2d(shape):
        return pl.BlockSpec(shape, lambda k: (0, 0))

    kernel = functools.partial(_fused_mlp_kernel, sigma=sigma,
                               use_mean=use_mean)
    return pl.pallas_call(
        kernel,
        out_shape=jax.ShapeDtypeStruct((M, N), jnp.float32),
        grid_spec=pltpu.PrefetchScalarGridSpec(
            num_scalar_prefetch=0,
            grid=grid,
            in_specs=[
                pl.BlockSpec((M, tk), lambda k: (0, k)),   # activations, K-tiled
                pl.BlockSpec((tk, H), lambda k: (k, 0)),   # fc1 weight, streamed
                const2d((1, H)),                           # fc1 bias
                const2d((H, H)), const2d((1, H)),          # fc2 (resident)
                const2d((H, H)), const2d((1, H)),          # fc3 (resident)
                const2d((H, N)), const2d((1, N)),          # fc4 (resident)
            ],
            out_specs=pl.BlockSpec((M, N), lambda k: (0, 0)),
            scratch_shapes=[pltpu.VMEM((M, H), jnp.float32)],
        ),
        compiler_params=pltpu.CompilerParams(
            dimension_semantics=("arbitrary",)),
    )(flat, w1, b1.reshape(1, H), w2, b2.reshape(1, H),
      w3, b3.reshape(1, H), w4, b4.reshape(1, N))


# ----------------------------------------------------------------------------
# One-time parameter preparation (run OUTSIDE the jitted forward):
#   - FC weights transposed to [in, out]
#   - fc1/fc2/fc3 stored in bf16 by default (bandwidth-bound); fc4 + all
#     biases stay f32.
# ----------------------------------------------------------------------------
def prepare_params(params, weights_dtype=jnp.bfloat16):
    return {
        "conv_w": params["conv_w"].astype(jnp.float32),     # [16,3,3,3] OIHW
        "conv_b": params["conv_b"].astype(jnp.float32),
        "fc1_w": params["fc1_w"].T.astype(weights_dtype),   # [16384, 512]
        "fc1_b": params["fc1_b"].astype(jnp.float32),
        "fc2_w": params["fc2_w"].T.astype(weights_dtype),   # [512, 512]
        "fc2_b": params["fc2_b"].astype(jnp.float32),
        "fc3_w": params["fc3_w"].T.astype(weights_dtype),   # [512, 512]
        "fc3_b": params["fc3_b"].astype(jnp.float32),
        "fc4_w": params["fc4_w"].T.astype(jnp.float32),     # [512, 1]
        "fc4_b": params["fc4_b"].astype(jnp.float32),
    }


# ----------------------------------------------------------------------------
# Sigma_net forward (consumes prepared params)
# ----------------------------------------------------------------------------
def sigma_net_forward(x, prep, sigma, mean="True"):
    B = x.shape[0]  # NCHW, expects C=3, H=W=32 (fc1 consumes 16*32*32)

    # Tiny 3x3 conv + relu: deliberately left to XLA (perf review: a Pallas
    # call here only adds launch overhead + lane-sparse 16-wide stores).
    out = jax.lax.conv_general_dilated(
        x, prep["conv_w"], window_strides=(1, 1), padding="SAME",
        dimension_numbers=("NCHW", "OIHW", "NCHW"))
    out = jnp.maximum(out + prep["conv_b"][None, :, None, None], 0.0)
    flat = out.reshape(B, -1)            # NCHW flatten == torch .view(B, -1)

    # Keep the exact string-flag semantics of the PyTorch module
    # (mean == 'True'); it is fragile but part of the spec.
    use_mean = (mean == "True")

    # fc1..fc4 + sigmoid*2*sigma (+ mean-centering): one fused Pallas call.
    return fused_mlp_pallas(
        flat,
        prep["fc1_w"], prep["fc1_b"],
        prep["fc2_w"], prep["fc2_b"],
        prep["fc3_w"], prep["fc3_b"],
        prep["fc4_w"], prep["fc4_b"],
        sigma=sigma, use_mean=use_mean)


# ----------------------------------------------------------------------------
# Deterministic synthetic parameters (torch-shaped)
# ----------------------------------------------------------------------------
def init_params(key):
    ks = jax.random.split(key, 10)

    def lin(kw, kb, fan_in, fan_out):
        bound = 1.0 / math.sqrt(fan_in)
        w = jax.random.uniform(kw, (fan_out, fan_in), jnp.float32,
                               -bound, bound)
        b = jax.random.uniform(kb, (fan_out,), jnp.float32, -bound, bound)
        return w, b

    conv_bound = 1.0 / math.sqrt(3 * 3 * 3)
    params = {
        "conv_w": jax.random.uniform(ks[0], (16, 3, 3, 3), jnp.float32,
                                     -conv_bound, conv_bound),
        "conv_b": jax.random.uniform(ks[1], (16,), jnp.float32,
                                     -conv_bound, conv_bound),
    }
    params["fc1_w"], params["fc1_b"] = lin(ks[2], ks[3], 16 * 32 * 32, 512)
    params["fc2_w"], params["fc2_b"] = lin(ks[4], ks[5], 512, 512)
    params["fc3_w"], params["fc3_b"] = lin(ks[6], ks[7], 512, 512)
    params["fc4_w"], params["fc4_b"] = lin(ks[8], ks[9], 512, 1)
    return params


# ----------------------------------------------------------------------------
# Pure-JAX reference (torch-equivalent, for correctness sanity check)
# ----------------------------------------------------------------------------
def sigma_net_ref(x, params, sigma, mean="True"):
    out = jax.lax.conv_general_dilated(
        x, params["conv_w"], window_strides=(1, 1), padding="SAME",
        dimension_numbers=("NCHW", "OIHW", "NCHW"))
    out = jax.nn.relu(out + params["conv_b"][None, :, None, None])
    out = out.reshape(out.shape[0], -1)
    out = jax.nn.relu(out @ params["fc1_w"].T + params["fc1_b"])
    out = jax.nn.relu(out @ params["fc2_w"].T + params["fc2_b"])
    out = jax.nn.relu(out @ params["fc3_w"].T + params["fc3_b"])
    out = out @ params["fc4_w"].T + params["fc4_b"]
    out = jax.nn.sigmoid(out) * sigma * 2.0
    if mean == "True":
        out = out - out.mean() + sigma
    return out


if __name__ == "__main__":
    sigma = 0.5
    key = jax.random.PRNGKey(0)
    pkey, xkey = jax.random.split(key)
    params = init_params(pkey)

    # fc1 expects 16*32*32 features -> spatial must be 32x32, channels 3.
    x = jax.random.normal(xkey, (2, 3, 32, 32), jnp.float32)

    ref = sigma_net_ref(x, params, sigma, mean="True")
    fwd = jax.jit(functools.partial(sigma_net_forward, sigma=sigma,
                                    mean="True"))

    # --- f32 weight path: tight check of the fused-kernel structure. -------
    prep_f32 = prepare_params(params, weights_dtype=jnp.float32)
    out_f32 = fwd(x, prep_f32)
    jax.block_until_ready(out_f32)
    assert out_f32.shape == (2, 1), out_f32.shape
    assert jnp.allclose(out_f32, ref, rtol=1e-4, atol=1e-4), (out_f32, ref)

    # --- bf16 weight path (default / performance config): deliberately ------
    # loose tolerance, per the perf-review correctness note.
    prep_bf16 = prepare_params(params)           # weights_dtype=bf16 default
    out_bf16 = fwd(x, prep_bf16)
    jax.block_until_ready(out_bf16)
    assert out_bf16.shape == (2, 1), out_bf16.shape
    assert jnp.all(jnp.isfinite(out_bf16))
    assert jnp.allclose(out_bf16, ref, rtol=3e-2, atol=3e-2), (out_bf16, ref)

    print("KERNEL_OK")
</pallas_src>

<mosaic_0001>
module attributes {stable_mosaic.version = 11 : i64} {
  func.func @_fused_mlp_kernel(%arg0: i32, %arg1: memref<2x2048xf32, #tpu.memory_space<vmem>>, %arg2: memref<2048x512xf32, #tpu.memory_space<vmem>>, %arg3: memref<1x512xf32, #tpu.memory_space<vmem>>, %arg4: memref<512x512xf32, #tpu.memory_space<vmem>>, %arg5: memref<1x512xf32, #tpu.memory_space<vmem>>, %arg6: memref<512x512xf32, #tpu.memory_space<vmem>>, %arg7: memref<1x512xf32, #tpu.memory_space<vmem>>, %arg8: memref<512x1xf32, #tpu.memory_space<vmem>>, %arg9: memref<1x1xf32, #tpu.memory_space<vmem>>, %arg10: memref<2x1xf32, #tpu.memory_space<vmem>>, %arg11: memref<2x512xf32, #tpu.memory_space<vmem>>) attributes {dimension_semantics = [#tpu.dimension_semantics<arbitrary>], iteration_bounds = array<i64: 8>, scalar_prefetch = 0 : i64, scratch_operands = 1 : i64, tpu.core_type = #tpu.core_type<tc>, window_params = [{transform_indices = @transform_0, window_bounds = array<i64: 2, 2048>}, {transform_indices = @transform_1, window_bounds = array<i64: 2048, 512>}, {pipeline_mode = #tpu.pipeline_mode<synchronous>, transform_indices = @transform_2, window_bounds = array<i64: 1, 512>}, {pipeline_mode = #tpu.pipeline_mode<synchronous>, transform_indices = @transform_3, window_bounds = array<i64: 512, 512>}, {pipeline_mode = #tpu.pipeline_mode<synchronous>, transform_indices = @transform_4, window_bounds = array<i64: 1, 512>}, {pipeline_mode = #tpu.pipeline_mode<synchronous>, transform_indices = @transform_5, window_bounds = array<i64: 512, 512>}, {pipeline_mode = #tpu.pipeline_mode<synchronous>, transform_indices = @transform_6, window_bounds = array<i64: 1, 512>}, {pipeline_mode = #tpu.pipeline_mode<synchronous>, transform_indices = @transform_7, window_bounds = array<i64: 512, 1>}, {pipeline_mode = #tpu.pipeline_mode<synchronous>, transform_indices = @transform_8, window_bounds = array<i64: 1, 1>}, {pipeline_mode = #tpu.pipeline_mode<synchronous>, transform_indices = @transform_9, window_bounds = array<i64: 2, 1>}]} {
    %c0 = arith.constant 0 : index
    %c0_0 = arith.constant 0 : index
    %0 = vector.load %arg1[%c0, %c0_0] : memref<2x2048xf32, #tpu.memory_space<vmem>>, vector<2x2048xf32>
    %c0_1 = arith.constant 0 : index
    %c0_2 = arith.constant 0 : index
    %1 = vector.load %arg2[%c0_1, %c0_2] : memref<2048x512xf32, #tpu.memory_space<vmem>>, vector<2048x512xf32>
    %cst = arith.constant dense<0.000000e+00> : vector<2x512xf32>
    %2 = tpu.matmul %0, %1, %cst {dimension_numbers = #tpu.dot_dimension_numbers<[1], [0], [0], [1], [0, 0, 1, 1], [], []>} : vector<2x2048xf32>, vector<2048x512xf32>, vector<2x512xf32> -> vector<2x512xf32>
    %c0_i32 = arith.constant 0 : i32
    %3 = arith.cmpi eq, %arg0, %c0_i32 : i32
    %4 = arith.extui %3 : i1 to i32
    %c0_i32_3 = arith.constant 0 : i32
    %5 = arith.cmpi ne, %4, %c0_i32_3 : i32
    scf.if %5 {
      %c0_7 = arith.constant 0 : index
      %c0_8 = arith.constant 0 : index
      %12 = vector.load %arg11[%c0_7, %c0_8] : memref<2x512xf32, #tpu.memory_space<vmem>>, vector<2x512xf32>
      tpu.vector_store %arg11[%c0_7, %c0_8], %2 {strides = array<i32>} : memref<2x512xf32, #tpu.memory_space<vmem>>, vector<2x512xf32>,
    } else {
    }
    %c0_i32_4 = arith.constant 0 : i32
    %6 = arith.cmpi ne, %arg0, %c0_i32_4 : i32
    %7 = arith.extui %6 : i1 to i32
    %c0_i32_5 = arith.constant 0 : i32
    %8 = arith.cmpi ne, %7, %c0_i32_5 : i32
    scf.if %8 {
      %c0_7 = arith.constant 0 : index
      %c0_8 = arith.constant 0 : index
      %12 = vector.load %arg11[%c0_7, %c0_8] : memref<2x512xf32, #tpu.memory_space<vmem>>, vector<2x512xf32>
      %13 = arith.addf %12, %2 : vector<2x512xf32>
      %c0_9 = arith.constant 0 : index
      %c0_10 = arith.constant 0 : index
      %14 = vector.load %arg11[%c0_9, %c0_10] : memref<2x512xf32, #tpu.memory_space<vmem>>, vector<2x512xf32>
      tpu.vector_store %arg11[%c0_9, %c0_10], %13 {strides = array<i32>} : memref<2x512xf32, #tpu.memory_space<vmem>>, vector<2x512xf32>,
    } else {
    }
    %c7_i32 = arith.constant 7 : i32
    %9 = arith.cmpi eq, %arg0, %c7_i32 : i32
    %10 = arith.extui %9 : i1 to i32
    %c0_i32_6 = arith.constant 0 : i32
    %11 = arith.cmpi ne, %10, %c0_i32_6 : i32
    scf.if %11 {
      %c0_7 = arith.constant 0 : index
      %c0_8 = arith.constant 0 : index
      %12 = vector.load %arg11[%c0_7, %c0_8] : memref<2x512xf32, #tpu.memory_space<vmem>>, vector<2x512xf32>
      %c0_9 = arith.constant 0 : index
      %c0_10 = arith.constant 0 : index
      %13 = vector.load %arg3[%c0_9, %c0_10] : memref<1x512xf32, #tpu.memory_space<vmem>>, vector<1x512xf32>
      %14 = vector.broadcast %13 : vector<1x512xf32> to vector<2x512xf32>
      %15 = arith.addf %12, %14 : vector<2x512xf32>
      %cst_11 = arith.constant 0.000000e+00 : f32
      %16 = vector.broadcast %cst_11 : f32 to vector<2x512xf32>
      %17 = arith.maximumf %15, %16 : vector<2x512xf32>
      %c0_12 = arith.constant 0 : index
      %c0_13 = arith.constant 0 : index
      %18 = vector.load %arg4[%c0_12, %c0_13] : memref<512x512xf32, #tpu.memory_space<vmem>>, vector<512x512xf32>
      %cst_14 = arith.constant dense<0.000000e+00> : vector<2x512xf32>
      %19 = tpu.matmul %17, %18, %cst_14 {dimension_numbers = #tpu.dot_dimension_numbers<[1], [0], [0], [1], [0, 0, 1, 1], [], []>} : vector<2x512xf32>, vector<512x512xf32>, vector<2x512xf32> -> vector<2x512xf32>
      %c0_15 = arith.constant 0 : index
      %c0_16 = arith.constant 0 : index
      %20 = vector.load %arg5[%c0_15, %c0_16] : memref<1x512xf32, #tpu.memory_space<vmem>>, vector<1x512xf32>
      %21 = vector.broadcast %20 : vector<1x512xf32> to vector<2x512xf32>
      %22 = arith.addf %19, %21 : vector<2x512xf32>
      %cst_17 = arith.constant 0.000000e+00 : f32
      %23 = vector.broadcast %cst_17 : f32 to vector<2x512xf32>
      %24 = arith.maximumf %22, %23 : vector<2x512xf32>
      %c0_18 = arith.constant 0 : index
      %c0_19 = arith.constant 0 : index
      %25 = vector.load %arg6[%c0_18, %c0_19] : memref<512x512xf32, #tpu.memory_space<vmem>>, vector<512x512xf32>
      %cst_20 = arith.constant dense<0.000000e+00> : vector<2x512xf32>
      %26 = tpu.matmul %24, %25, %cst_20 {dimension_numbers = #tpu.dot_dimension_numbers<[1], [0], [0], [1], [0, 0, 1, 1], [], []>} : vector<2x512xf32>, vector<512x512xf32>, vector<2x512xf32> -> vector<2x512xf32>
      %c0_21 = arith.constant 0 : index
      %c0_22 = arith.constant 0 : index
      %27 = vector.load %arg7[%c0_21, %c0_22] : memref<1x512xf32, #tpu.memory_space<vmem>>, vector<1x512xf32>
      %28 = vector.broadcast %27 : vector<1x512xf32> to vector<2x512xf32>
      %29 = arith.addf %26, %28 : vector<2x512xf32>
      %cst_23 = arith.constant 0.000000e+00 : f32
      %30 = vector.broadcast %cst_23 : f32 to vector<2x512xf32>
      %31 = arith.maximumf %29, %30 : vector<2x512xf32>
      %c0_24 = arith.constant 0 : index
      %c0_25 = arith.constant 0 : index
      %32 = vector.load %arg8[%c0_24, %c0_25] : memref<512x1xf32, #tpu.memory_space<vmem>>, vector<512x1xf32>
      %cst_26 = arith.constant dense<0.000000e+00> : vector<2x1xf32>
      %33 = tpu.matmul %31, %32, %cst_26 {dimension_numbers = #tpu.dot_dimension_numbers<[1], [0], [0], [1], [0, 0, 1, 1], [], []>} : vector<2x512xf32>, vector<512x1xf32>, vector<2x1xf32> -> vector<2x1xf32>
      %c0_27 = arith.constant 0 : index
      %c0_28 = arith.constant 0 : index
      %34 = vector.load %arg9[%c0_27, %c0_28] : memref<1x1xf32, #tpu.memory_space<vmem>>, vector<1x1xf32>
      %35 = vector.broadcast %34 : vector<1x1xf32> to vector<2x1xf32>
      %36 = arith.addf %33, %35 : vector<2x1xf32>
      %37 = arith.negf %36 : vector<2x1xf32>
      %38 = math.exp %37 : vector<2x1xf32>
      %cst_29 = arith.constant 1.000000e+00 : f32
      %39 = vector.broadcast %cst_29 : f32 to vector<2x1xf32>
      %40 = arith.addf %39, %38 : vector<2x1xf32>
      %41 = arith.divf %39, %40 : vector<2x1xf32>
      %cst_30 = arith.constant 1.000000e+00 : f32
      %42 = vector.broadcast %cst_30 : f32 to vector<2x1xf32>
      %43 = arith.mulf %41, %42 : vector<2x1xf32>
      %44 = vector.shape_cast %43 : vector<2x1xf32> to vector<1x2x1xf32>
      %cst_31 = arith.constant dense<0.000000e+00> : vector<1xf32>
      %45 = vector.multi_reduction <add>, %44, %cst_31 [1, 2] : vector<1x2x1xf32> to vector<1xf32>
      %46 = vector.shape_cast %45 : vector<1xf32> to vector<1x1x1xf32>
      %47 = vector.extract %46[0, 0, 0] : f32 from vector<1x1x1xf32>
      %cst_32 = arith.constant 2.000000e+00 : f32
      %48 = arith.divf %47, %cst_32 : f32
      %49 = vector.broadcast %48 : f32 to vector<2x1xf32>
      %50 = arith.subf %43, %49 : vector<2x1xf32>
      %cst_33 = arith.constant 5.000000e-01 : f32
      %51 = vector.broadcast %cst_33 : f32 to vector<2x1xf32>
      %52 = arith.addf %50, %51 : vector<2x1xf32>
      %c0_34 = arith.constant 0 : index
      %c0_35 = arith.constant 0 : index
      %53 = vector.load %arg10[%c0_34, %c0_35] : memref<2x1xf32, #tpu.memory_space<vmem>>, vector<2x1xf32>
      tpu.vector_store %arg10[%c0_34, %c0_35], %52 {strides = array<i32>} : memref<2x1xf32, #tpu.memory_space<vmem>>, vector<2x1xf32>,
    } else {
    }
    return
  }
  func.func @transform_0(%arg0: i32) -> (i32, i32) {
    %c0_i32 = arith.constant 0 : i32
    %c0_i32_0 = arith.constant 0 : i32
    return %c0_i32, %arg0 : i32, i32
  }
  func.func @transform_1(%arg0: i32) -> (i32, i32) {
    %c0_i32 = arith.constant 0 : i32
    %c0_i32_0 = arith.constant 0 : i32
    return %arg0, %c0_i32 : i32, i32
  }
  func.func @transform_2(%arg0: i32) -> (i32, i32) {
    %c0_i32 = arith.constant 0 : i32
    %c0_i32_0 = arith.constant 0 : i32
    %c0_i32_1 = arith.constant 0 : i32
    return %c0_i32, %c0_i32_0 : i32, i32
  }
  func.func @transform_3(%arg0: i32) -> (i32, i32) {
    %c0_i32 = arith.constant 0 : i32
    %c0_i32_0 = arith.constant 0 : i32
    %c0_i32_1 = arith.constant 0 : i32
    return %c0_i32, %c0_i32_0 : i32, i32
  }
  func.func @transform_4(%arg0: i32) -> (i32, i32) {
    %c0_i32 = arith.constant 0 : i32
    %c0_i32_0 = arith.constant 0 : i32
    %c0_i32_1 = arith.constant 0 : i32
    return %c0_i32, %c0_i32_0 : i32, i32
  }
  func.func @transform_5(%arg0: i32) -> (i32, i32) {
    %c0_i32 = arith.constant 0 : i32
    %c0_i32_0 = arith.constant 0 : i32
    %c0_i32_1 = arith.constant 0 : i32
    return %c0_i32, %c0_i32_0 : i32, i32
  }
  func.func @transform_6(%arg0: i32) -> (i32, i32) {
    %c0_i32 = arith.constant 0 : i32
    %c0_i32_0 = arith.constant 0 : i32
    %c0_i32_1 = arith.constant 0 : i32
    return %c0_i32, %c0_i32_0 : i32, i32
  }
  func.func @transform_7(%arg0: i32) -> (i32, i32) {
    %c0_i32 = arith.constant 0 : i32
    %c0_i32_0 = arith.constant 0 : i32
    %c0_i32_1 = arith.constant 0 : i32
    return %c0_i32, %c0_i32_0 : i32, i32
  }
  func.func @transform_8(%arg0: i32) -> (i32, i32) {
    %c0_i32 = arith.constant 0 : i32
    %c0_i32_0 = arith.constant 0 : i32
    %c0_i32_1 = arith.constant 0 : i32
    return %c0_i32, %c0_i32_0 : i32, i32
  }
  func.func @transform_9(%arg0: i32) -> (i32, i32) {
    %c0_i32 = arith.constant 0 : i32
    %c0_i32_0 = arith.constant 0 : i32
    %c0_i32_1 = arith.constant 0 : i32
    return %c0_i32, %c0_i32_0 : i32, i32
  }
}

</mosaic_0001>

<bundles_post_ra>
// kernel: sigma_net_forward.1
= control target key start
LH: loop header
LB: loop body
LE: loop exit
PB: predicated region body
PF: predicated region fallthrough
CT: control target
= control target key end

     0   :  { %s6348_s0 = inlined_call_operand.vmem [shape: f32[2,16384], index: 0, kind: input, shape index: {}]   ;;  %s6349_s1 = inlined_call_operand.hbm [shape: f32[16384,512], index: 1, kind: input, shape index: {}]   ;;  %s6350_s2 = inlined_call_operand.hbm [shape: f32[1,512], index: 2, kind: input, shape index: {}]   ;;  %s6351_s3 = inlined_call_operand.hbm [shape: f32[512,512], index: 3, kind: input, shape index: {}]   ;;  %s6352_s4 = inlined_call_operand.hbm [shape: f32[1,512], index: 4, kind: input, shape index: {}]   ;;  %s6353_s5 = inlined_call_operand.hbm [shape: f32[512,512], index: 5, kind: input, shape index: {}]   ;;  %s6354_s6 = inlined_call_operand.hbm [shape: f32[1,512], index: 6, kind: input, shape index: {}]   ;;  %s6355_s7 = inlined_call_operand.vmem [shape: f32[512,1], index: 7, kind: input, shape index: {}]   ;;  %s6356_s8 = inlined_call_operand.<no memory space> [shape: f32[1,1], index: 8, kind: input, shape index: {}]   ;;  %s6357_s9 = inlined_call_operand.vmem [shape: f32[2,1], index: 9, kind: output, shape index: {}]  }
   0x1   :  { %v14_v0 = vstv %s6356_s8 }
   0x2   :  { %15 = vst [vmem:[#allocation3] sm:$0x1] %v14_v0 }
   0x3   :  { %16 = vsyncpa [#allocation5], 0 }
   0x4   :  { %18 = vsyncpa [#allocation5 + $0x1], 0 }
   0x5   :  { %19 = vsyncpa [#allocation7], 0 }
   0x6   :  { %20 = vsyncpa [#allocation10], 0 }
   0x7   :  { %21 = vsyncpa [#allocation13], 0  ;;  %s4741_s11 = smov 0   ;;  %s4743_s12 = smov 0  }
   0x8   :  { %s4745_s13 = smov 0   ;;  %s4747_s14 = smov 0  }
   0x9 LB: > { %s4679_s8 = smov [#allocation6]   ;;  %s4762_s16 = sadd.s32 4294967295, %s4677_s14   ;;  %s4677_s14 = sphi %s4747_s14, %s6381_s14   ;;  %s4673_s13 = sphi %s4745_s13, %s6380_s13   ;;  %s4669_s12 = sphi %s4743_s12, %s6379_s12   ;;  %s4665_s11 = sphi %s4741_s11, %s6378_s11  }
   0xa   : > { %s265_s15 = sshll.u32 %s4679_s8, 4  ;;  %p4271_p0 = scmp.ge.s32.totalorder %s4677_s14, 1  ;;  %s266_s15 = int_to_ptr.vmem [resolvable:$true] %s265_s15 }
   0xb   : > { %p6358_p1 = scmp.eq.s32.totalorder %s4762_s16, 0  ;;  %p252_p2 = scmp.lt.s32.totalorder %s4677_s14, 9 }
   0xc   : > { %s4680_s18 = smov [#allocation9]   ;;  %s4681_s20 = smov [#allocation8]  }
   0xd   : > { %p4768_p4 = pnand %p4271_p0, %p252_p2  ;;  %s289_s19 = sshll.u32 %s4680_s18, 4  ;;  %s290_s19 = int_to_ptr.vmem [resolvable:$true] %s289_s19 }
   0xe   : > { %s275_s21 = sshll.u32 %s4681_s20, 4  ;;  %s4484_s24 = scalar_lea.vmem %s266_s15, 64  ;;  %s4780_s21 = int_to_ptr.vmem [resolvable:$true] %s275_s21 }
   0xf   : > { %s6361_s17 = scalar_select %p4768_p4, 1, 0 }
  0x10   : > { %p4394_p5 = pneg %p4768_p4  ;;  %p4485_p8 = scmp.ne.s32.totalorder %s266_s15, %s4484_s24 }
  0x11   : > { %p4492_p11 = scmp.lt.s32.totalorder %s266_s15, %s266_s15  ;;  %p4493_p12 = scmp.lt.s32.totalorder %s4484_s24, %s4484_s24 }
  0x12   : > { %p4776_p6 = pnand %p4394_p5, %p6358_p1 }
  0x13   : > { %p4494_p13 = por %p4493_p12, %p4492_p11 }
  0x14   : > { %p4784_p7 = pneg %p4776_p6 }
  0x16   : > { %p4487_p9 = pnand %p4485_p8, %p4784_p7 }
  0x18   : > { %p4488_p10 = pneg %p4487_p9 }
  0x1a   : > { %p4495_p0 = pnand %p4494_p13, %p4488_p10 }
  0x1c   : > { %4498 = shalt.err (!%p4495_p0)
}
  0x1d   : > { %4397 = dma.hbm_to_vmem [thread:$0]  (!%p4776_p6), %s6350_s2, 64, %s266_s15, [#allocation7]  }
  0x1e   : > { %s4510_s27 = scalar_lea.vmem %s290_s19, 64  ;;  %p4518_p1 = scmp.lt.s32.totalorder %s290_s19, %s290_s19 }
  0x1f   : > { %p4511_p2 = scmp.ne.s32.totalorder %s290_s19, %s4510_s27  ;;  %p4519_p8 = scmp.lt.s32.totalorder %s4510_s27, %s4510_s27 }
  0x21   : > { %p4513_p5 = pnand %p4511_p2, %p4784_p7  ;;  %p4520_p9 = por %p4519_p8, %p4518_p1 }
  0x23   : > { %p4514_p3 = pneg %p4513_p5 }
  0x25   : > { %p4521_p4 = pnand %p4520_p9, %p4514_p3 }
  0x27   : > { %4524 = shalt.err (!%p4521_p4)
}
  0x28   : > { %4403 = dma.hbm_to_vmem [thread:$0]  (!%p4776_p6), %s6352_s4, 64, %s290_s19, [#allocation10]  }
  0x29   : > { %s4536_s30 = scalar_lea.vmem %s4780_s21, 32768  ;;  %p4544_p13 = scmp.lt.s32.totalorder %s4780_s21, %s4780_s21 }
  0x2a   : > { %p4537_p10 = scmp.ne.s32.totalorder %s4780_s21, %s4536_s30  ;;  %p4545_p1 = scmp.lt.s32.totalorder %s4536_s30, %s4536_s30 }
  0x2c   : > { %p4539_p11 = pnand %p4537_p10, %p4784_p7  ;;  %p4546_p3 = por %p4545_p1, %p4544_p13 }
  0x2e   : > { %p4540_p12 = pneg %p4539_p11 }
  0x30   : > { %p4547_p4 = pnand %p4546_p3, %p4540_p12 }
  0x32   : > { %4550 = shalt.err (!%p4547_p4)
}
  0x33   : > { %s4682_s10 = smov 512   ;;  %s4683_s8 = smov 32  }
  0x34   : > { %4400 = dma.hbm_to_vmem [thread:$0]  (!%p4776_p6), %s6351_s3, 32768, %s4780_s21, [#allocation7], %s4682_s10, %s4682_s10, %s4683_s8  }
  0x35   : > { %s4684_s19 = smov [#allocation11]   ;;  %s4685_s24 = smov [#allocation12]  }
  0x36   : > { %s299_s20 = sshll.u32 %s4684_s19, 4  ;;  %s313_s25 = sshll.u32 %s4685_s24, 4  ;;  %s300_s20 = int_to_ptr.vmem [resolvable:$true] %s299_s20  ;;  %s314_s25 = int_to_ptr.vmem [resolvable:$true] %s313_s25 }
  0x37   : > { %s4562_s26 = scalar_lea.vmem %s300_s20, 32768  ;;  %p4570_p8 = scmp.lt.s32.totalorder %s300_s20, %s300_s20 }
  0x38   : > { %p4563_p0 = scmp.ne.s32.totalorder %s300_s20, %s4562_s26  ;;  %p4571_p9 = scmp.lt.s32.totalorder %s4562_s26, %s4562_s26 }
  0x3a   : > { %p4565_p2 = pnand %p4563_p0, %p4784_p7  ;;  %p4572_p10 = por %p4571_p9, %p4570_p8 }
  0x3c   : > { %p4566_p5 = pneg %p4565_p2 }
  0x3e   : > { %p4573_p11 = pnand %p4572_p10, %p4566_p5 }
  0x40   : > { %4576 = shalt.err (!%p4573_p11)
}
  0x41   : > { %4406 = dma.hbm_to_vmem [thread:$0]  (!%p4776_p6), %s6353_s5, 32768, %s300_s20, [#allocation10], %s4682_s10, %s4682_s10, %s4683_s8  }
  0x42   : > { %s4588_s28 = scalar_lea.vmem %s314_s25, 64  ;;  %p4596_p3 = scmp.lt.s32.totalorder %s314_s25, %s314_s25 }
  0x43   : > { %p4589_p12 = scmp.ne.s32.totalorder %s314_s25, %s4588_s28  ;;  %p4597_p4 = scmp.lt.s32.totalorder %s4588_s28, %s4588_s28 }
  0x45   : > { %p4591_p13 = pnand %p4589_p12, %p4784_p7  ;;  %p4598_p0 = por %p4597_p4, %p4596_p3 }
  0x47   : > { %p4592_p1 = pneg %p4591_p13 }
  0x49   : > { %p4599_p2 = pnand %p4598_p0, %p4592_p1 }
  0x4b   : > { %4602 = shalt.err (!%p4599_p2)
}
  0x4c   : > { %4409 = dma.hbm_to_vmem [thread:$0]  (!%p4776_p6), %s6354_s6, 64, %s314_s25, [#allocation13]  }
  0x4d   : > { %s4835_s23 = sadd.s32 1, %s4677_s14   ;;  %s60_s15 = sadd.s32 1, %s4673_s13 }
  0x4e   : > { %s57_s22 = ssub.s32 %s4677_s14, %s4835_s23  ;;  %p67_p5 = scmp.ne.s32.totalorder %s4673_s13, %s4669_s12 }
  0x4f   : > { %p58_p7 = scmp.eq.s32.totalorder %s57_s22, 0  ;;  %p68_p8 = scmp.eq.s32.totalorder %s4677_s14, 0 }
  0x50   : > { %p73_p9 = scmp.ne.s32.totalorder %s4669_s12, %s4665_s11  ;;  %p6364_p11 = scmp.eq.s32.totalorder %s4762_s16, 0 }
  0x51   : > { %s4846_s18 = scalar_select %p58_p7, %s4673_s13, %s60_s15  }
  0x52   : > { %p69_p10 = por %p68_p8, %p67_p5  ;;  %p4850_p12 = por %p6364_p11, %p73_p9 }
  0x53   : > { %p4419_p13 = scmp.lt.s32.totalorder %s4677_s14, 8  ;;  %s339_s20 = sand.u32 1, %s4673_s13  }
  0x54   : > { %s6365_s19 = scalar_select %p4850_p12, 1, 0 }
  0x55   : > { %s4278_s24 = sshll.u32 %s339_s20, 13  ;;  %s4299_s25 = sshll.u32 %s4677_s14, 17 }
  0x56   : > { %s4860_s27 = scalar_lea.hbm %s6349_s1, %s4299_s25  ;;  %s343_s11 = scalar_lea.vmem [#allocation4], %s4278_s24 }
  0x57   : > { %s351_s28 = sshll.u32 %s343_s11, 4  ;;  %p4864_p6 = pnand %p4419_p13, %p69_p10  ;;  %s4862_s28 = int_to_ptr.vmem [resolvable:$true] %s351_s28 }
  0x58   : > { %s4868_s30 = scalar_lea.sflag [#allocation5], %s339_s20  ;;  %s4603_s14 = scalar_lea.hbm %s4860_s27, 131072 }
  0x59   : > { %p4604_p1 = scmp.ne.s32.totalorder %s4860_s27, %s4603_s14  ;;  %p4605_p3 = pneg %p4864_p6 }
  0x5a   : > { %s4608_s24 = scalar_lea.hbm %s6349_s1, 1048576  ;;  %p4609_p2 = scmp.lt.s32.totalorder %s4860_s27, %s6349_s1 }
  0x5b   : > { %p4606_p4 = pnand %p4605_p3, %p4604_p1  ;;  %p4610_p7 = scmp.lt.s32.totalorder %s4608_s24, %s4603_s14 }
  0x5d   : > { %p4607_p0 = pneg %p4606_p4  ;;  %p4611_p5 = por %p4610_p7, %p4609_p2 }
  0x5f   : > { %p4612_p8 = pnand %p4611_p5, %p4607_p0 }
  0x61   : > { %4615 = shalt.err (!%p4612_p8)
}
  0x62   : > { %s4616_s20 = scalar_lea.vmem %s4862_s28, 131072  ;;  %s4686_s21 = smov [#allocation4]  }
  0x63   : > { %p4617_p9 = scmp.ne.s32.totalorder %s4862_s28, %s4616_s20  ;;  %s4621_s11 = sshll.u32 %s4686_s21, 4  ;;  %s4622_s11 = int_to_ptr.vmem [resolvable:$false] %s4621_s11 }
  0x64   : > { %s4623_s22 = scalar_lea.vmem %s4622_s11, 262144  ;;  %p4624_p13 = scmp.lt.s32.totalorder %s4862_s28, %s4622_s11 }
  0x65   : > { %p4619_p10 = pnand %p4617_p9, %p4605_p3  ;;  %p4625_p1 = scmp.lt.s32.totalorder %s4623_s22, %s4616_s20 }
  0x67   : > { %p4620_p11 = pneg %p4619_p10  ;;  %p4626_p4 = por %p4625_p1, %p4624_p13 }
  0x69   : > { %p4627_p12 = pnand %p4626_p4, %p4620_p11 }
  0x6b   : > { %4630 = shalt.err (!%p4627_p12)
}
  0x6c   : > { %4413 = dma.hbm_to_vmem [thread:$0]  (!%p4864_p6), %s4860_s27, 131072, %s4862_s28, %s4868_s30, %s4682_s10, %s4682_s10, %s4683_s8  }
  0x6d   : > { %p6367_p3 = scmp.ne.s32.totalorder %s6361_s17, 0 }
  0x6e   : > { %s365_s14 = sand.u32 (!%p6367_p3), 1, %s4669_s12   ;;  %p6368_p12 = scmp.ne.s32.totalorder (!%p6367_p3), %s6365_s19, 0 }
  0x6f   : > { %363 = sbr.rel (%p6367_p3) target bundleno = 1921 (0x781), region = 56  ;;  %s4283_s15 = sshll.u32 (!%p6367_p3), %s365_s14, 13 }
  0x70   : > { %s366_s24 = scalar_lea.sflag (!%p6367_p3), [#allocation5], %s365_s14  ;;  %s4895_s25 = scalar_lea.vmem (!%p6367_p3), [#allocation4], %s4283_s15 }
  0x74   : > { %4648 = dma.done.wait (%p6368_p12), %s366_s24, 131072  }
  0x75   : > { %4650 = vsyncadd (%p6368_p12), %s366_s24, 4294836224  ;;  %p6369_p0 = scmp.eq.s32.totalorder %s4762_s16, 0 }
  0x77   : > { %4652 = dma.done.wait (%p6369_p0), [#allocation7], 32832   ;;  %p6370_p6 = pmov %p6369_p0 }
  0x78   : > { %p6371_p2 = pmov %p6369_p0 }
  0x79   : > { %4654 = vsyncadd (%p6370_p6), [#allocation7], 4294934464 }
  0x7a   : > { %4656 = dma.done.wait (%p6371_p2), [#allocation10], 32832   ;;  %p6372_p7 = pmov %p6369_p0 }
  0x7b   : > { %p6373_p5 = pmov %p6369_p0 }
  0x7c   : > { %4658 = vsyncadd (%p6372_p7), [#allocation10], 4294934464 }
  0x7d   : > { %4660 = dma.done.wait (%p6373_p5), [#allocation13], 64   ;;  %p6374_p8 = pmov %p6369_p0 }
  0x7e   : > { %v496_v1 = vld [vmem:[%s4895_s25 + $0x1e8] sm:$0xff]  ;;  %v495_v3 = vld [vmem:[%s4895_s25 + $0x1e0] sm:$0xff]  ;;  %s4289_s17 = sshll.u32 %s4762_s16, 4  ;;  %p6376_p10 = scmp.ne.s32.totalorder %s4762_s16, 0 }
  0x7f   : > { %4662 = vsyncadd (%p6374_p8), [#allocation13], 4294967232  ;;  %v624_v2 = vld [vmem:[%s4895_s25 + $0x5e8] sm:$0xff]  ;;  %1547 = vmatprep.subr.mxu0 %v496_v1  ;;  %v623_v4 = vld [vmem:[%s4895_s25 + $0x5e0] sm:$0xff]  ;;  %p4994_p9 = scmp.lt.s32.totalorder %s4289_s17, 127 }
  0x80   : > { %1618 = vmatprep.subr.mxu1 %v624_v2  ;;  %v492_v5 = vld [vmem:[%s4895_s25 + $0x1c8] sm:$0xff]  ;;  %1548 = vmatpush1.msra.mxu0 %v495_v3  ;;  %v491_v7 = vld [vmem:[%s4895_s25 + $0x1c0] sm:$0xff] }
  0x81   : > { %v620_v6 = vld [vmem:[%s4895_s25 + $0x5c8] sm:$0xff]  ;;  %1619 = vmatpush1.msra.mxu1 %v623_v4  ;;  %v619_v8 = vld [vmem:[%s4895_s25 + $0x5c0] sm:$0xff]  ;;  %1549 = vmatprep.subr.mxu0 %v492_v5  ;;  %s6383_s17 = smov (!%p4994_p9, %s4289_s17), 127 }
  0x82   : > { %v488_v9 = vld [vmem:[%s4895_s25 + $0x1a8] sm:$0xff]  ;;  %1620 = vmatprep.subr.mxu1 %v620_v6  ;;  %v487_v11 = vld [vmem:[%s4895_s25 + $0x1a0] sm:$0xff]  ;;  %1550 = vmatpush1.msra.mxu0 %v491_v7  ;;  %s4290_s8 = sshll.u32 %s6383_s17, 1 }
  0x83   : > { %v616_v10 = vld [vmem:[%s4895_s25 + $0x5a8] sm:$0xff]  ;;  %v615_v12 = vld [vmem:[%s4895_s25 + $0x5a0] sm:$0xff]  ;;  %1621 = vmatpush1.msra.mxu1 %v619_v8  ;;  %1551 = vmatprep.subr.mxu0 %v488_v9  ;;  %s5030_s28 = scalar_lea.vmem %s6348_s0, %s4290_s8 }
  0x84   : > { %v484_v13 = vld [vmem:[%s4895_s25 + $0x188] sm:$0xff]  ;;  %1622 = vmatprep.subr.mxu1 %v616_v10  ;;  %v483_v15 = vld [vmem:[%s4895_s25 + $0x180] sm:$0xff]  ;;  %1552 = vmatpush1.msra.mxu0 %v487_v11 }
  0x85   : > { %v612_v14 = vld [vmem:[%s4895_s25 + $0x588] sm:$0xff]  ;;  %v611_v16 = vld [vmem:[%s4895_s25 + $0x580] sm:$0xff]  ;;  %1623 = vmatpush1.msra.mxu1 %v615_v12  ;;  %1553 = vmatprep.subr.mxu0 %v484_v13 }
  0x86   : > { %v480_v17 = vld [vmem:[%s4895_s25 + $0x168] sm:$0xff]  ;;  %1624 = vmatprep.subr.mxu1 %v612_v14  ;;  %v479_v19 = vld [vmem:[%s4895_s25 + $0x160] sm:$0xff]  ;;  %1554 = vmatpush1.msra.mxu0 %v483_v15 }
  0x87   : > { %v608_v18 = vld [vmem:[%s4895_s25 + $0x568] sm:$0xff]  ;;  %v607_v20 = vld [vmem:[%s4895_s25 + $0x560] sm:$0xff]  ;;  %1625 = vmatpush1.msra.mxu1 %v611_v16  ;;  %1555 = vmatprep.subr.mxu0 %v480_v17 }
  0x88   : > { %v476_v21 = vld [vmem:[%s4895_s25 + $0x148] sm:$0xff]  ;;  %1626 = vmatprep.subr.mxu1 %v608_v18  ;;  %v475_v23 = vld [vmem:[%s4895_s25 + $0x140] sm:$0xff]  ;;  %1556 = vmatpush1.msra.mxu0 %v479_v19 }
  0x89   : > { %v604_v22 = vld [vmem:[%s4895_s25 + $0x548] sm:$0xff]  ;;  %v603_v24 = vld [vmem:[%s4895_s25 + $0x540] sm:$0xff]  ;;  %1627 = vmatpush1.msra.mxu1 %v607_v20  ;;  %1557 = vmatprep.subr.mxu0 %v476_v21 }
  0x8a   : > { %v472_v25 = vld [vmem:[%s4895_s25 + $0x128] sm:$0xff]  ;;  %1628 = vmatprep.subr.mxu1 %v604_v22  ;;  %v471_v27 = vld [vmem:[%s4895_s25 + $0x120] sm:$0xff]  ;;  %1558 = vmatpush1.msra.mxu0 %v475_v23 }
  0x8b   : > { %v600_v26 = vld [vmem:[%s4895_s25 + $0x528] sm:$0xff]  ;;  %v599_v28 = vld [vmem:[%s4895_s25 + $0x520] sm:$0xff]  ;;  %1629 = vmatpush1.msra.mxu1 %v603_v24  ;;  %1559 = vmatprep.subr.mxu0 %v472_v25 }
  0x8c   : > { %v468_v29 = vld [vmem:[%s4895_s25 + $0x108] sm:$0xff]  ;;  %1630 = vmatprep.subr.mxu1 %v600_v26  ;;  %v467_v31 = vld [vmem:[%s4895_s25 + $0x100] sm:$0xff]  ;;  %1560 = vmatpush1.msra.mxu0 %v471_v27 }
  0x8d   : > { %v596_v30 = vld [vmem:[%s4895_s25 + $0x508] sm:$0xff]  ;;  %v595_v32 = vld [vmem:[%s4895_s25 + $0x500] sm:$0xff]  ;;  %1631 = vmatpush1.msra.mxu1 %v599_v28  ;;  %1561 = vmatprep.subr.mxu0 %v468_v29 }
  0x8e   : > { %v464_v33 = vld [vmem:[%s4895_s25 + $0xe8] sm:$0xff]  ;;  %1632 = vmatprep.subr.mxu1 %v596_v30  ;;  %v463_v35 = vld [vmem:[%s4895_s25 + $0xe0] sm:$0xff]  ;;  %1562 = vmatpush1.msra.mxu0 %v467_v31  ;;  %v4687_v31 = vmov 1983009808  }
  0x8f   : > { %v592_v34 = vld [vmem:[%s4895_s25 + $0x4e8] sm:$0xff]  ;;  %v591_v36 = vld [vmem:[%s4895_s25 + $0x4e0] sm:$0xff]  ;;  %1633 = vmatpush1.msra.mxu1 %v595_v32  ;;  %1563 = vmatprep.subr.mxu0 %v464_v33  ;;  %v1465_v32 = vunpack.c.l.s4 %v4687_v31  ;;  %v1467_v33 = vlaneseq }
  0x90   : > { %v460_v37 = vld [vmem:[%s4895_s25 + $0xc8] sm:$0xff]  ;;  %1634 = vmatprep.subr.mxu1 %v592_v34  ;;  %v459_v39 = vld [vmem:[%s4895_s25 + $0xc0] sm:$0xff]  ;;  %1564 = vmatpush1.msra.mxu0 %v463_v35 }
  0x91   : > { %v588_v38 = vld [vmem:[%s4895_s25 + $0x4c8] sm:$0xff]  ;;  %v587_v40 = vld [vmem:[%s4895_s25 + $0x4c0] sm:$0xff]  ;;  %1635 = vmatpush1.msra.mxu1 %v591_v36  ;;  %1565 = vmatprep.subr.mxu0 %v460_v37 }
  0x92   : > { %v456_v41 = vld [vmem:[%s4895_s25 + $0xa8] sm:$0xff]  ;;  %1636 = vmatprep.subr.mxu1 %v588_v38  ;;  %v455_v43 = vld [vmem:[%s4895_s25 + $0xa0] sm:$0xff]  ;;  %1566 = vmatpush1.msra.mxu0 %v459_v39 }
  0x93   : > { %v584_v42 = vld [vmem:[%s4895_s25 + $0x4a8] sm:$0xff]  ;;  %v583_v44 = vld [vmem:[%s4895_s25 + $0x4a0] sm:$0xff]  ;;  %1637 = vmatpush1.msra.mxu1 %v587_v40  ;;  %1567 = vmatprep.subr.mxu0 %v456_v41 }
  0x94   : > { %v452_v45 = vld [vmem:[%s4895_s25 + $0x88] sm:$0xff]  ;;  %1638 = vmatprep.subr.mxu1 %v584_v42  ;;  %v451_v47 = vld [vmem:[%s4895_s25 + $0x80] sm:$0xff]  ;;  %1568 = vmatpush1.msra.mxu0 %v455_v43  ;;  %v1466_v42 = vunpack.c.0.s8 %v1465_v32  ;;  %v5034_v43 = vshrl.u32 %v1467_v33, 7 }
  0x95   : > { %v580_v46 = vld [vmem:[%s4895_s25 + $0x488] sm:$0xff]  ;;  %v579_v48 = vld [vmem:[%s4895_s25 + $0x480] sm:$0xff]  ;;  %1639 = vmatpush1.msra.mxu1 %v583_v44  ;;  %1569 = vmatprep.subr.mxu0 %v452_v45 }
  0x96   : > { %v448_v49 = vld [vmem:[%s4895_s25 + $0x68] sm:$0xff]  ;;  %1640 = vmatprep.subr.mxu1 %v580_v46  ;;  %v447_v51 = vld [vmem:[%s4895_s25 + $0x60] sm:$0xff]  ;;  %1570 = vmatpush1.msra.mxu0 %v451_v47 }
  0x97   : > { %v576_v50 = vld [vmem:[%s4895_s25 + $0x468] sm:$0xff]  ;;  %v575_v52 = vld [vmem:[%s4895_s25 + $0x460] sm:$0xff]  ;;  %1641 = vmatpush1.msra.mxu1 %v579_v48  ;;  %1571 = vmatprep.subr.mxu0 %v448_v49  ;;  %v431_v48 = vld [vmem:[%s5030_s28] sm:$0xff] }
  0x98   : > { %v444_v53 = vld [vmem:[%s4895_s25 + $0x48] sm:$0xff]  ;;  %1642 = vmatprep.subr.mxu1 %v576_v50  ;;  %v443_v55 = vld [vmem:[%s4895_s25 + $0x40] sm:$0xff]  ;;  %1572 = vmatpush1.msra.mxu0 %v447_v51 }
  0x99   : > { %v572_v54 = vld [vmem:[%s4895_s25 + $0x448] sm:$0xff]  ;;  %v571_v56 = vld [vmem:[%s4895_s25 + $0x440] sm:$0xff]  ;;  %1643 = vmatpush1.msra.mxu1 %v575_v52  ;;  %1573 = vmatprep.subr.mxu0 %v444_v53  ;;  %v5046_v53 = vsub.s32 %v1466_v42, %v5034_v43 }
  0x9a   : > { %v440_v57 = vld [vmem:[%s4895_s25 + $0x28] sm:$0xff]  ;;  %1644 = vmatprep.subr.mxu1 %v572_v54  ;;  %v439_v59 = vld [vmem:[%s4895_s25 + $0x20] sm:$0xff]  ;;  %1574 = vmatpush1.msra.mxu0 %v443_v55 }
  0x9b   : > { %v568_v58 = vld [vmem:[%s4895_s25 + $0x428] sm:$0xff]  ;;  %v567_v60 = vld [vmem:[%s4895_s25 + $0x420] sm:$0xff]  ;;  %1645 = vmatpush1.msra.mxu1 %v571_v56  ;;  %1575 = vmatprep.subr.mxu0 %v440_v57  ;;  %v1463_v56 = vcombine.high %v431_v48, %v431_v48 }
  0x9c   : > { %v436_v61 = vld [vmem:[%s4895_s25 + $0x8] sm:$0xff]  ;;  %1646 = vmatprep.subr.mxu1 %v568_v58  ;;  %v435_v63 = vld [vmem:[%s4895_s25] sm:$0xff]  ;;  %1576 = vmatpush1.msra.mxu0 %v439_v59 }
  0x9d   : > { %v564_v62 = vld [vmem:[%s4895_s25 + $0x408] sm:$0xff]  ;;  %v563_v0 = vld [vmem:[%s4895_s25 + $0x400] sm:$0xff]  ;;  %1647 = vmatpush1.msra.mxu1 %v567_v60  ;;  %1577 = vmatprep.subr.mxu0 %v436_v61 }
  0x9e   : > { %v560_v1 = vld [vmem:[%s4895_s25 + $0x3e8] sm:$0xff]  ;;  %1648 = vmatprep.subr.mxu1 %v564_v62  ;;  %v559_v3 = vld [vmem:[%s4895_s25 + $0x3e0] sm:$0xff]  ;;  %1578 = vmatpush1.msra.mxu0 %v435_v63  ;;  %v5057_v63 = vrot.slane %v431_v48, %v5046_v53 }
  0x9f   : > { %v688_v2 = vld [vmem:[%s4895_s25 + $0x7e8] sm:$0xff]  ;;  %v687_v4 = vld [vmem:[%s4895_s25 + $0x7e0] sm:$0xff]  ;;  %1649 = vmatpush1.msra.mxu1 %v563_v0  ;;  %1579 = vmatprep.subr.mxu0 %v560_v1 }
  0xa0   : > { %v556_v5 = vld [vmem:[%s4895_s25 + $0x3c8] sm:$0xff]  ;;  %1650 = vmatprep.subr.mxu1 %v688_v2  ;;  %v555_v7 = vld [vmem:[%s4895_s25 + $0x3c0] sm:$0xff]  ;;  %1580 = vmatpush2.msra.mxu0 %v559_v3  ;;  %v5062_v2 = vrot.slane %v1463_v56, %v5046_v53 }
  0xa1   : > { %v684_v6 = vld [vmem:[%s4895_s25 + $0x7c8] sm:$0xff]  ;;  %v683_v8 = vld [vmem:[%s4895_s25 + $0x7c0] sm:$0xff]  ;;  %1651 = vmatpush2.msra.mxu1 %v687_v4  ;;  %1581 = vmatprep.subr.mxu0 %v556_v5 }
  0xa2   : > { %v552_v9 = vld [vmem:[%s4895_s25 + $0x3a8] sm:$0xff]  ;;  %1652 = vmatprep.subr.mxu1 %v684_v6  ;;  %v551_v11 = vld [vmem:[%s4895_s25 + $0x3a0] sm:$0xff]  ;;  %1582 = vmatpush2.msra.mxu0 %v555_v7 }
  0xa3   : > { %v680_v10 = vld [vmem:[%s4895_s25 + $0x7a8] sm:$0xff]  ;;  %v679_v12 = vld [vmem:[%s4895_s25 + $0x7a0] sm:$0xff]  ;;  %1653 = vmatpush2.msra.mxu1 %v683_v8  ;;  %1583 = vmatprep.subr.mxu0 %v552_v9  ;;  %v5072_v9 = vcombine.high %v5057_v63, %v5057_v63 }
  0xa4   : > { %v548_v13 = vld [vmem:[%s4895_s25 + $0x388] sm:$0xff]  ;;  %1654 = vmatprep.subr.mxu1 %v680_v10  ;;  %v547_v15 = vld [vmem:[%s4895_s25 + $0x380] sm:$0xff]  ;;  %1584 = vmatpush2.msra.mxu0 %v551_v11  ;;  %v5077_v11 = vcombine.high %v5062_v2, %v5062_v2 }
  0xa5   : > { %v676_v14 = vld [vmem:[%s4895_s25 + $0x788] sm:$0xff]  ;;  %v675_v16 = vld [vmem:[%s4895_s25 + $0x780] sm:$0xff]  ;;  %1655 = vmatpush2.msra.mxu1 %v679_v12  ;;  %1585 = vmatprep.subr.mxu0 %v548_v13 }
  0xa6   : > { %v544_v17 = vld [vmem:[%s4895_s25 + $0x368] sm:$0xff]  ;;  %1656 = vmatprep.subr.mxu1 %v676_v14  ;;  %v543_v19 = vld [vmem:[%s4895_s25 + $0x360] sm:$0xff]  ;;  %1586 = vmatpush2.msra.mxu0 %v547_v15 }
  0xa7   : > { %v672_v18 = vld [vmem:[%s4895_s25 + $0x768] sm:$0xff]  ;;  %v671_v20 = vld [vmem:[%s4895_s25 + $0x760] sm:$0xff]  ;;  %1657 = vmatpush2.msra.mxu1 %v675_v16  ;;  %1587 = vmatprep.subr.mxu0 %v544_v17 }
  0xa8   : > { %v540_v21 = vld [vmem:[%s4895_s25 + $0x348] sm:$0xff]  ;;  %1658 = vmatprep.subr.mxu1 %v672_v18  ;;  %v539_v23 = vld [vmem:[%s4895_s25 + $0x340] sm:$0xff]  ;;  %1588 = vmatpush2.msra.mxu0 %v543_v19 }
  0xa9   : > { %v668_v22 = vld [vmem:[%s4895_s25 + $0x748] sm:$0xff]  ;;  %v667_v24 = vld [vmem:[%s4895_s25 + $0x740] sm:$0xff]  ;;  %1659 = vmatpush2.msra.mxu1 %v671_v20  ;;  %1589 = vmatprep.subr.mxu0 %v540_v21 }
  0xaa   : > { %v536_v25 = vld [vmem:[%s4895_s25 + $0x328] sm:$0xff]  ;;  %1660 = vmatprep.subr.mxu1 %v668_v22  ;;  %v535_v27 = vld [vmem:[%s4895_s25 + $0x320] sm:$0xff]  ;;  %1590 = vmatpush2.msra.mxu0 %v539_v23 }
  0xab   : > { %v664_v26 = vld [vmem:[%s4895_s25 + $0x728] sm:$0xff]  ;;  %v663_v28 = vld [vmem:[%s4895_s25 + $0x720] sm:$0xff]  ;;  %1661 = vmatpush2.msra.mxu1 %v667_v24  ;;  %1591 = vmatprep.subr.mxu0 %v536_v25 }
  0xac   : > { %v532_v29 = vld [vmem:[%s4895_s25 + $0x308] sm:$0xff]  ;;  %1662 = vmatprep.subr.mxu1 %v664_v26  ;;  %v531_v34 = vld [vmem:[%s4895_s25 + $0x300] sm:$0xff]  ;;  %1592 = vmatpush2.msra.mxu0 %v535_v27 }
  0xad   : > { %v660_v30 = vld [vmem:[%s4895_s25 + $0x708] sm:$0xff]  ;;  %v659_v35 = vld [vmem:[%s4895_s25 + $0x700] sm:$0xff]  ;;  %1663 = vmatpush2.msra.mxu1 %v663_v28  ;;  %1593 = vmatprep.subr.mxu0 %v532_v29 }
  0xae   : > { %v528_v36 = vld [vmem:[%s4895_s25 + $0x2e8] sm:$0xff]  ;;  %1664 = vmatprep.subr.mxu1 %v660_v30  ;;  %v527_v38 = vld [vmem:[%s4895_s25 + $0x2e0] sm:$0xff]  ;;  %1594 = vmatpush2.msra.mxu0 %v531_v34 }
  0xaf   : > { %v656_v37 = vld [vmem:[%s4895_s25 + $0x6e8] sm:$0xff]  ;;  %v655_v39 = vld [vmem:[%s4895_s25 + $0x6e0] sm:$0xff]  ;;  %1665 = vmatpush2.msra.mxu1 %v659_v35  ;;  %1595 = vmatprep.subr.mxu0 %v528_v36 }
  0xb0   : > { %v524_v40 = vld [vmem:[%s4895_s25 + $0x2c8] sm:$0xff]  ;;  %1666 = vmatprep.subr.mxu1 %v656_v37  ;;  %v523_v44 = vld [vmem:[%s4895_s25 + $0x2c0] sm:$0xff]  ;;  %1596 = vmatpush2.msra.mxu0 %v527_v38 }
  0xb1   : > { %v652_v41 = vld [vmem:[%s4895_s25 + $0x6c8] sm:$0xff]  ;;  %v651_v45 = vld [vmem:[%s4895_s25 + $0x6c0] sm:$0xff]  ;;  %1667 = vmatpush2.msra.mxu1 %v655_v39  ;;  %1597 = vmatprep.subr.mxu0 %v524_v40 }
  0xb2   : > { %v520_v46 = vld [vmem:[%s4895_s25 + $0x2a8] sm:$0xff]  ;;  %1668 = vmatprep.subr.mxu1 %v652_v41  ;;  %v519_v49 = vld [vmem:[%s4895_s25 + $0x2a0] sm:$0xff]  ;;  %1598 = vmatpush2.msra.mxu0 %v523_v44 }
  0xb3   : > { %v648_v47 = vld [vmem:[%s4895_s25 + $0x6a8] sm:$0xff]  ;;  %v647_v50 = vld [vmem:[%s4895_s25 + $0x6a0] sm:$0xff]  ;;  %1669 = vmatpush2.msra.mxu1 %v651_v45  ;;  %1599 = vmatprep.subr.mxu0 %v520_v46 }
  0xb4   : > { %v516_v51 = vld [vmem:[%s4895_s25 + $0x288] sm:$0xff]  ;;  %1670 = vmatprep.subr.mxu1 %v648_v47  ;;  %v515_v54 = vld [vmem:[%s4895_s25 + $0x280] sm:$0xff]  ;;  %1600 = vmatpush2.msra.mxu0 %v519_v49 }
  0xb5   : > { %v644_v52 = vld [vmem:[%s4895_s25 + $0x688] sm:$0xff]  ;;  %v643_v55 = vld [vmem:[%s4895_s25 + $0x680] sm:$0xff]  ;;  %1671 = vmatpush2.msra.mxu1 %v647_v50  ;;  %1601 = vmatprep.subr.mxu0 %v516_v51 }
  0xb6   : > { %v512_v57 = vld [vmem:[%s4895_s25 + $0x268] sm:$0xff]  ;;  %1672 = vmatprep.subr.mxu1 %v644_v52  ;;  %v511_v59 = vld [vmem:[%s4895_s25 + $0x260] sm:$0xff]  ;;  %1602 = vmatpush2.msra.mxu0 %v515_v54 }
  0xb7   : > { %v640_v58 = vld [vmem:[%s4895_s25 + $0x668] sm:$0xff]  ;;  %v639_v60 = vld [vmem:[%s4895_s25 + $0x660] sm:$0xff]  ;;  %1673 = vmatpush2.msra.mxu1 %v643_v55  ;;  %1603 = vmatprep.subr.mxu0 %v512_v57 }
  0xb8   : > { %v508_v61 = vld [vmem:[%s4895_s25 + $0x248] sm:$0xff]  ;;  %1674 = vmatprep.subr.mxu1 %v640_v58  ;;  %v507_v0 = vld [vmem:[%s4895_s25 + $0x240] sm:$0xff]  ;;  %1604 = vmatpush2.msra.mxu0 %v511_v59 }
  0xb9   : > { %v636_v62 = vld [vmem:[%s4895_s25 + $0x648] sm:$0xff]  ;;  %v635_v1 = vld [vmem:[%s4895_s25 + $0x640] sm:$0xff]  ;;  %1675 = vmatpush2.msra.mxu1 %v639_v60  ;;  %1605 = vmatprep.subr.mxu0 %v508_v61 }
  0xba   : > { %v504_v3 = vld [vmem:[%s4895_s25 + $0x228] sm:$0xff]  ;;  %1676 = vmatprep.subr.mxu1 %v636_v62  ;;  %v503_v5 = vld [vmem:[%s4895_s25 + $0x220] sm:$0xff]  ;;  %1606 = vmatpush2.msra.mxu0 %v507_v0 }
  0xbb   : > { %v632_v4 = vld [vmem:[%s4895_s25 + $0x628] sm:$0xff]  ;;  %v631_v6 = vld [vmem:[%s4895_s25 + $0x620] sm:$0xff]  ;;  %1677 = vmatpush2.msra.mxu1 %v635_v1  ;;  %1607 = vmatprep.subr.mxu0 %v504_v3 }
  0xbc   : > { %v500_v7 = vld [vmem:[%s4895_s25 + $0x208] sm:$0xff]  ;;  %1678 = vmatprep.subr.mxu1 %v632_v4  ;;  %v499_v10 = vld [vmem:[%s4895_s25 + $0x200] sm:$0xff]  ;;  %1608 = vmatpush2.msra.mxu0 %v503_v5 }
  0xbd   : > { %v628_v8 = vld [vmem:[%s4895_s25 + $0x608] sm:$0xff]  ;;  %1679 = vmatpush2.msra.mxu1 %v631_v6  ;;  %v627_v12 = vld [vmem:[%s4895_s25 + $0x600] sm:$0xff]  ;;  %1609 = vmatprep.subr.mxu0 %v500_v7 }
  0xbe   : > { %1680 = vmatprep.subr.mxu1 %v628_v8  ;;  %1610 = vmatpush2.msra.mxu0 %v499_v10  ;;  %v752_v13 = vld [vmem:[%s4895_s25 + $0x9e8] sm:$0xff]  ;;  %v751_v15 = vld [vmem:[%s4895_s25 + $0x9e0] sm:$0xff] }
  0xbf   : > { %1611 = vmatprep.mubr.f32.mxu0 %v5072_v9  ;;  %v880_v14 = vld [vmem:[%s4895_s25 + $0xde8] sm:$0xff]  ;;  %1681 = vmatpush2.msra.mxu1 %v627_v12  ;;  %v879_v16 = vld [vmem:[%s4895_s25 + $0xde0] sm:$0xff] }
  0xc0   : > { %1682 = vmatprep.mubr.f32.mxu1 %v5077_v11  ;;  %1612 = vmatmul.mubr.f32.vlgmr.msra.gmra.mxu0 %v5057_v63  ;;  %v748_v17 = vld [vmem:[%s4895_s25 + $0x9c8] sm:$0xff]  ;;  %v747_v19 = vld [vmem:[%s4895_s25 + $0x9c0] sm:$0xff] }
  0xc1   : > { %1683 = vmatmul.mubr.f32.vlgmr.msra.gmra.mxu1 %v5062_v2  ;;  %v876_v18 = vld [vmem:[%s4895_s25 + $0xdc8] sm:$0xff]  ;;  %1689 = vmatprep.subr.mxu0 %v752_v13  ;;  %v875_v20 = vld [vmem:[%s4895_s25 + $0xdc0] sm:$0xff] }
  0xc2   : > { %1760 = vmatprep.subr.mxu1 %v880_v14  ;;  %1690 = vmatpush1.msra.mxu0 %v751_v15  ;;  %v744_v21 = vld [vmem:[%s4895_s25 + $0x9a8] sm:$0xff]  ;;  %v743_v23 = vld [vmem:[%s4895_s25 + $0x9a0] sm:$0xff] }
  0xc3   : > { %1761 = vmatpush1.msra.mxu1 %v879_v16  ;;  %v872_v22 = vld [vmem:[%s4895_s25 + $0xda8] sm:$0xff]  ;;  %1691 = vmatprep.subr.mxu0 %v748_v17  ;;  %v871_v24 = vld [vmem:[%s4895_s25 + $0xda0] sm:$0xff] }
  0xc4   : > { %1762 = vmatprep.subr.mxu1 %v876_v18  ;;  %1692 = vmatpush1.msra.mxu0 %v747_v19  ;;  %v740_v25 = vld [vmem:[%s4895_s25 + $0x988] sm:$0xff]  ;;  %v739_v27 = vld [vmem:[%s4895_s25 + $0x980] sm:$0xff] }
  0xc5   : > { %1763 = vmatpush1.msra.mxu1 %v875_v20  ;;  %v868_v26 = vld [vmem:[%s4895_s25 + $0xd88] sm:$0xff]  ;;  %1693 = vmatprep.subr.mxu0 %v744_v21  ;;  %v867_v28 = vld [vmem:[%s4895_s25 + $0xd80] sm:$0xff] }
  0xc6   : > { %1764 = vmatprep.subr.mxu1 %v872_v22  ;;  %1694 = vmatpush1.msra.mxu0 %v743_v23  ;;  %v736_v29 = vld [vmem:[%s4895_s25 + $0x968] sm:$0xff]  ;;  %v735_v31 = vld [vmem:[%s4895_s25 + $0x960] sm:$0xff] }
  0xc7   : > { %1765 = vmatpush1.msra.mxu1 %v871_v24  ;;  %v864_v30 = vld [vmem:[%s4895_s25 + $0xd68] sm:$0xff]  ;;  %1695 = vmatprep.subr.mxu0 %v740_v25  ;;  %v863_v32 = vld [vmem:[%s4895_s25 + $0xd60] sm:$0xff] }
  0xc8   : > { %1766 = vmatprep.subr.mxu1 %v868_v26  ;;  %1696 = vmatpush1.msra.mxu0 %v739_v27  ;;  %v732_v33 = vld [vmem:[%s4895_s25 + $0x948] sm:$0xff]  ;;  %v731_v35 = vld [vmem:[%s4895_s25 + $0x940] sm:$0xff] }
  0xc9   : > { %1767 = vmatpush1.msra.mxu1 %v867_v28  ;;  %v860_v34 = vld [vmem:[%s4895_s25 + $0xd48] sm:$0xff]  ;;  %1697 = vmatprep.subr.mxu0 %v736_v29  ;;  %v859_v36 = vld [vmem:[%s4895_s25 + $0xd40] sm:$0xff] }
  0xca   : > { %1768 = vmatprep.subr.mxu1 %v864_v30  ;;  %1698 = vmatpush1.msra.mxu0 %v735_v31  ;;  %v728_v37 = vld [vmem:[%s4895_s25 + $0x928] sm:$0xff]  ;;  %v727_v39 = vld [vmem:[%s4895_s25 + $0x920] sm:$0xff] }
  0xcb   : > { %1769 = vmatpush1.msra.mxu1 %v863_v32  ;;  %v856_v38 = vld [vmem:[%s4895_s25 + $0xd28] sm:$0xff]  ;;  %1699 = vmatprep.subr.mxu0 %v732_v33  ;;  %v855_v40 = vld [vmem:[%s4895_s25 + $0xd20] sm:$0xff] }
  0xcc   : > { %1770 = vmatprep.subr.mxu1 %v860_v34  ;;  %1700 = vmatpush1.msra.mxu0 %v731_v35  ;;  %v724_v41 = vld [vmem:[%s4895_s25 + $0x908] sm:$0xff]  ;;  %v723_v44 = vld [vmem:[%s4895_s25 + $0x900] sm:$0xff] }
  0xcd   : > { %1771 = vmatpush1.msra.mxu1 %v859_v36  ;;  %v852_v42 = vld [vmem:[%s4895_s25 + $0xd08] sm:$0xff]  ;;  %1701 = vmatprep.subr.mxu0 %v728_v37  ;;  %v851_v45 = vld [vmem:[%s4895_s25 + $0xd00] sm:$0xff] }
  0xce   : > { %1772 = vmatprep.subr.mxu1 %v856_v38  ;;  %1702 = vmatpush1.msra.mxu0 %v727_v39  ;;  %v720_v46 = vld [vmem:[%s4895_s25 + $0x8e8] sm:$0xff]  ;;  %v719_v48 = vld [vmem:[%s4895_s25 + $0x8e0] sm:$0xff] }
  0xcf   : > { %1773 = vmatpush1.msra.mxu1 %v855_v40  ;;  %v848_v47 = vld [vmem:[%s4895_s25 + $0xce8] sm:$0xff]  ;;  %1703 = vmatprep.subr.mxu0 %v724_v41  ;;  %v847_v49 = vld [vmem:[%s4895_s25 + $0xce0] sm:$0xff] }
  0xd0   : > { %1774 = vmatprep.subr.mxu1 %v852_v42  ;;  %1704 = vmatpush1.msra.mxu0 %v723_v44  ;;  %v716_v50 = vld [vmem:[%s4895_s25 + $0x8c8] sm:$0xff]  ;;  %v715_v52 = vld [vmem:[%s4895_s25 + $0x8c0] sm:$0xff] }
  0xd1   : > { %1775 = vmatpush1.msra.mxu1 %v851_v45  ;;  %v844_v51 = vld [vmem:[%s4895_s25 + $0xcc8] sm:$0xff]  ;;  %1705 = vmatprep.subr.mxu0 %v720_v46  ;;  %v843_v54 = vld [vmem:[%s4895_s25 + $0xcc0] sm:$0xff] }
  0xd2   : > { %1776 = vmatprep.subr.mxu1 %v848_v47  ;;  %1706 = vmatpush1.msra.mxu0 %v719_v48  ;;  %v712_v55 = vld [vmem:[%s4895_s25 + $0x8a8] sm:$0xff]  ;;  %v711_v57 = vld [vmem:[%s4895_s25 + $0x8a0] sm:$0xff] }
  0xd3   : > { %1777 = vmatpush1.msra.mxu1 %v847_v49  ;;  %v840_v56 = vld [vmem:[%s4895_s25 + $0xca8] sm:$0xff]  ;;  %1707 = vmatprep.subr.mxu0 %v716_v50  ;;  %v839_v58 = vld [vmem:[%s4895_s25 + $0xca0] sm:$0xff] }
  0xd4   : > { %1778 = vmatprep.subr.mxu1 %v844_v51  ;;  %1708 = vmatpush1.msra.mxu0 %v715_v52  ;;  %v708_v59 = vld [vmem:[%s4895_s25 + $0x888] sm:$0xff]  ;;  %v707_v61 = vld [vmem:[%s4895_s25 + $0x880] sm:$0xff] }
  0xd5   : > { %1779 = vmatpush1.msra.mxu1 %v843_v54  ;;  %v836_v60 = vld [vmem:[%s4895_s25 + $0xc88] sm:$0xff]  ;;  %1709 = vmatprep.subr.mxu0 %v712_v55  ;;  %v835_v62 = vld [vmem:[%s4895_s25 + $0xc80] sm:$0xff] }
  0xd6   : > { %1780 = vmatprep.subr.mxu1 %v840_v56  ;;  %1710 = vmatpush1.msra.mxu0 %v711_v57  ;;  %v704_v0 = vld [vmem:[%s4895_s25 + $0x868] sm:$0xff]  ;;  %v703_v3 = vld [vmem:[%s4895_s25 + $0x860] sm:$0xff] }
  0xd7   : > { %1781 = vmatpush1.msra.mxu1 %v839_v58  ;;  %v832_v1 = vld [vmem:[%s4895_s25 + $0xc68] sm:$0xff]  ;;  %1711 = vmatprep.subr.mxu0 %v708_v59  ;;  %v831_v4 = vld [vmem:[%s4895_s25 + $0xc60] sm:$0xff] }
  0xd8   : > { %1782 = vmatprep.subr.mxu1 %v836_v60  ;;  %1712 = vmatpush1.msra.mxu0 %v707_v61  ;;  %v700_v5 = vld [vmem:[%s4895_s25 + $0x848] sm:$0xff]  ;;  %v699_v7 = vld [vmem:[%s4895_s25 + $0x840] sm:$0xff] }
  0xd9   : > { %1783 = vmatpush1.msra.mxu1 %v835_v62  ;;  %v828_v6 = vld [vmem:[%s4895_s25 + $0xc48] sm:$0xff]  ;;  %1713 = vmatprep.subr.mxu0 %v704_v0  ;;  %v827_v8 = vld [vmem:[%s4895_s25 + $0xc40] sm:$0xff] }
  0xda   : > { %1784 = vmatprep.subr.mxu1 %v832_v1  ;;  %1714 = vmatpush1.msra.mxu0 %v703_v3  ;;  %v696_v10 = vld [vmem:[%s4895_s25 + $0x828] sm:$0xff]  ;;  %v695_v13 = vld [vmem:[%s4895_s25 + $0x820] sm:$0xff] }
  0xdb   : > { %1785 = vmatpush1.msra.mxu1 %v831_v4  ;;  %v824_v12 = vld [vmem:[%s4895_s25 + $0xc28] sm:$0xff]  ;;  %1715 = vmatprep.subr.mxu0 %v700_v5  ;;  %v823_v14 = vld [vmem:[%s4895_s25 + $0xc20] sm:$0xff] }
  0xdc   : > { %1786 = vmatprep.subr.mxu1 %v828_v6  ;;  %1716 = vmatpush1.msra.mxu0 %v699_v7  ;;  %v692_v15 = vld [vmem:[%s4895_s25 + $0x808] sm:$0xff]  ;;  %v691_v17 = vld [vmem:[%s4895_s25 + $0x800] sm:$0xff] }
  0xdd   : > { %1787 = vmatpush1.msra.mxu1 %v827_v8  ;;  %v820_v16 = vld [vmem:[%s4895_s25 + $0xc08] sm:$0xff]  ;;  %1717 = vmatprep.subr.mxu0 %v696_v10  ;;  %v819_v18 = vld [vmem:[%s4895_s25 + $0xc00] sm:$0xff] }
  0xde   : > { %1788 = vmatprep.subr.mxu1 %v824_v12  ;;  %1718 = vmatpush1.msra.mxu0 %v695_v13  ;;  %v816_v19 = vld [vmem:[%s4895_s25 + $0xbe8] sm:$0xff]  ;;  %v815_v21 = vld [vmem:[%s4895_s25 + $0xbe0] sm:$0xff] }
  0xdf   : > { %1789 = vmatpush1.msra.mxu1 %v823_v14  ;;  %v944_v20 = vld [vmem:[%s4895_s25 + $0xfe8] sm:$0xff]  ;;  %1719 = vmatprep.subr.mxu0 %v692_v15  ;;  %v943_v22 = vld [vmem:[%s4895_s25 + $0xfe0] sm:$0xff] }
  0xe0   : > { %1790 = vmatprep.subr.mxu1 %v820_v16  ;;  %1720 = vmatpush1.msra.mxu0 %v691_v17  ;;  %v812_v23 = vld [vmem:[%s4895_s25 + $0xbc8] sm:$0xff]  ;;  %v811_v25 = vld [vmem:[%s4895_s25 + $0xbc0] sm:$0xff] }
  0xe1   : > { %1791 = vmatpush1.msra.mxu1 %v819_v18  ;;  %v940_v24 = vld [vmem:[%s4895_s25 + $0xfc8] sm:$0xff]  ;;  %1721 = vmatprep.subr.mxu0 %v816_v19  ;;  %v939_v26 = vld [vmem:[%s4895_s25 + $0xfc0] sm:$0xff] }
  0xe2   : > { %1792 = vmatprep.subr.mxu1 %v944_v20  ;;  %1722 = vmatpush2.msra.mxu0 %v815_v21  ;;  %v808_v27 = vld [vmem:[%s4895_s25 + $0xba8] sm:$0xff]  ;;  %v807_v29 = vld [vmem:[%s4895_s25 + $0xba0] sm:$0xff] }
  0xe3   : > { %1793 = vmatpush2.msra.mxu1 %v943_v22  ;;  %v936_v28 = vld [vmem:[%s4895_s25 + $0xfa8] sm:$0xff]  ;;  %1723 = vmatprep.subr.mxu0 %v812_v23  ;;  %v935_v30 = vld [vmem:[%s4895_s25 + $0xfa0] sm:$0xff] }
  0xe4   : > { %1794 = vmatprep.subr.mxu1 %v940_v24  ;;  %1724 = vmatpush2.msra.mxu0 %v811_v25  ;;  %v804_v31 = vld [vmem:[%s4895_s25 + $0xb88] sm:$0xff]  ;;  %v803_v33 = vld [vmem:[%s4895_s25 + $0xb80] sm:$0xff] }
  0xe5   : > { %1795 = vmatpush2.msra.mxu1 %v939_v26  ;;  %v932_v32 = vld [vmem:[%s4895_s25 + $0xf88] sm:$0xff]  ;;  %1725 = vmatprep.subr.mxu0 %v808_v27  ;;  %v931_v34 = vld [vmem:[%s4895_s25 + $0xf80] sm:$0xff] }
  0xe6   : > { %1796 = vmatprep.subr.mxu1 %v936_v28  ;;  %1726 = vmatpush2.msra.mxu0 %v807_v29  ;;  %v800_v35 = vld [vmem:[%s4895_s25 + $0xb68] sm:$0xff]  ;;  %v799_v37 = vld [vmem:[%s4895_s25 + $0xb60] sm:$0xff] }
  0xe7   : > { %1797 = vmatpush2.msra.mxu1 %v935_v30  ;;  %v928_v36 = vld [vmem:[%s4895_s25 + $0xf68] sm:$0xff]  ;;  %1727 = vmatprep.subr.mxu0 %v804_v31  ;;  %v927_v38 = vld [vmem:[%s4895_s25 + $0xf60] sm:$0xff] }
  0xe8   : > { %1798 = vmatprep.subr.mxu1 %v932_v32  ;;  %1728 = vmatpush2.msra.mxu0 %v803_v33  ;;  %v796_v39 = vld [vmem:[%s4895_s25 + $0xb48] sm:$0xff]  ;;  %v795_v41 = vld [vmem:[%s4895_s25 + $0xb40] sm:$0xff] }
  0xe9   : > { %1799 = vmatpush2.msra.mxu1 %v931_v34  ;;  %v924_v40 = vld [vmem:[%s4895_s25 + $0xf48] sm:$0xff]  ;;  %1729 = vmatprep.subr.mxu0 %v800_v35  ;;  %v923_v42 = vld [vmem:[%s4895_s25 + $0xf40] sm:$0xff] }
  0xea   : > { %1800 = vmatprep.subr.mxu1 %v928_v36  ;;  %1730 = vmatpush2.msra.mxu0 %v799_v37  ;;  %v792_v44 = vld [vmem:[%s4895_s25 + $0xb28] sm:$0xff]  ;;  %v791_v46 = vld [vmem:[%s4895_s25 + $0xb20] sm:$0xff] }
  0xeb   : > { %1801 = vmatpush2.msra.mxu1 %v927_v38  ;;  %v920_v45 = vld [vmem:[%s4895_s25 + $0xf28] sm:$0xff]  ;;  %1731 = vmatprep.subr.mxu0 %v796_v39  ;;  %v919_v47 = vld [vmem:[%s4895_s25 + $0xf20] sm:$0xff] }
  0xec   : > { %1802 = vmatprep.subr.mxu1 %v924_v40  ;;  %1732 = vmatpush2.msra.mxu0 %v795_v41  ;;  %v788_v48 = vld [vmem:[%s4895_s25 + $0xb08] sm:$0xff]  ;;  %v787_v50 = vld [vmem:[%s4895_s25 + $0xb00] sm:$0xff] }
  0xed   : > { %1803 = vmatpush2.msra.mxu1 %v923_v42  ;;  %v916_v49 = vld [vmem:[%s4895_s25 + $0xf08] sm:$0xff]  ;;  %1733 = vmatprep.subr.mxu0 %v792_v44  ;;  %v915_v51 = vld [vmem:[%s4895_s25 + $0xf00] sm:$0xff] }
  0xee   : > { %1804 = vmatprep.subr.mxu1 %v920_v45  ;;  %1734 = vmatpush2.msra.mxu0 %v791_v46  ;;  %v784_v52 = vld [vmem:[%s4895_s25 + $0xae8] sm:$0xff]  ;;  %v783_v55 = vld [vmem:[%s4895_s25 + $0xae0] sm:$0xff] }
  0xef   : > { %1805 = vmatpush2.msra.mxu1 %v919_v47  ;;  %v912_v54 = vld [vmem:[%s4895_s25 + $0xee8] sm:$0xff]  ;;  %1735 = vmatprep.subr.mxu0 %v788_v48  ;;  %v911_v56 = vld [vmem:[%s4895_s25 + $0xee0] sm:$0xff] }
  0xf0   : > { %1806 = vmatprep.subr.mxu1 %v916_v49  ;;  %1736 = vmatpush2.msra.mxu0 %v787_v50  ;;  %v780_v57 = vld [vmem:[%s4895_s25 + $0xac8] sm:$0xff]  ;;  %v779_v59 = vld [vmem:[%s4895_s25 + $0xac0] sm:$0xff] }
  0xf1   : > { %1807 = vmatpush2.msra.mxu1 %v915_v51  ;;  %v908_v58 = vld [vmem:[%s4895_s25 + $0xec8] sm:$0xff]  ;;  %1737 = vmatprep.subr.mxu0 %v784_v52  ;;  %v907_v60 = vld [vmem:[%s4895_s25 + $0xec0] sm:$0xff] }
  0xf2   : > { %1808 = vmatprep.subr.mxu1 %v912_v54  ;;  %1738 = vmatpush2.msra.mxu0 %v783_v55  ;;  %v776_v61 = vld [vmem:[%s4895_s25 + $0xaa8] sm:$0xff]  ;;  %v775_v0 = vld [vmem:[%s4895_s25 + $0xaa0] sm:$0xff] }
  0xf3   : > { %1809 = vmatpush2.msra.mxu1 %v911_v56  ;;  %v904_v62 = vld [vmem:[%s4895_s25 + $0xea8] sm:$0xff]  ;;  %1739 = vmatprep.subr.mxu0 %v780_v57  ;;  %v903_v1 = vld [vmem:[%s4895_s25 + $0xea0] sm:$0xff] }
  0xf4   : > { %1810 = vmatprep.subr.mxu1 %v908_v58  ;;  %v432_v3 = vld [vmem:[%s5030_s28 + $0x8] sm:$0xff]  ;;  %1740 = vmatpush2.msra.mxu0 %v779_v59  ;;  %v772_v4 = vld [vmem:[%s4895_s25 + $0xa88] sm:$0xff] }
  0xf5   : > { %1811 = vmatpush2.msra.mxu1 %v907_v60  ;;  %v900_v5 = vld [vmem:[%s4895_s25 + $0xe88] sm:$0xff]  ;;  %1741 = vmatprep.subr.mxu0 %v776_v61  ;;  %v771_v6 = vld [vmem:[%s4895_s25 + $0xa80] sm:$0xff]  ;;  %v1480_v12 = vcombine.high %v432_v3, %v432_v3  ;;  %v5204_v17 = vrot.slane %v432_v3, %v5046_v53 }
  0xf6   : > { %1812 = vmatprep.subr.mxu1 %v904_v62  ;;  %v899_v7 = vld [vmem:[%s4895_s25 + $0xe80] sm:$0xff]  ;;  %1742 = vmatpush2.msra.mxu0 %v775_v0  ;;  %v768_v8 = vld [vmem:[%s4895_s25 + $0xa68] sm:$0xff] }
  0xf7   : > { %1813 = vmatpush2.msra.mxu1 %v903_v1  ;;  %v896_v10 = vld [vmem:[%s4895_s25 + $0xe68] sm:$0xff]  ;;  %1743 = vmatprep.subr.mxu0 %v772_v4  ;;  %v767_v13 = vld [vmem:[%s4895_s25 + $0xa60] sm:$0xff]  ;;  %v5211_v22 = vrot.slane %v1480_v12, %v5046_v53  ;;  %v5219_v27 = vcombine.high %v5204_v17, %v5204_v17 }
  0xf8   : > { %1814 = vmatprep.subr.mxu1 %v900_v5  ;;  %v895_v14 = vld [vmem:[%s4895_s25 + $0xe60] sm:$0xff]  ;;  %1744 = vmatpush2.msra.mxu0 %v771_v6  ;;  %v764_v15 = vld [vmem:[%s4895_s25 + $0xa48] sm:$0xff] }
  0xf9   : > { %1815 = vmatpush2.msra.mxu1 %v899_v7  ;;  %v892_v16 = vld [vmem:[%s4895_s25 + $0xe48] sm:$0xff]  ;;  %1745 = vmatprep.subr.mxu0 %v768_v8  ;;  %v763_v18 = vld [vmem:[%s4895_s25 + $0xa40] sm:$0xff]  ;;  %v5225_v30 = vcombine.high %v5211_v22, %v5211_v22 }
  0xfa   : > { %1816 = vmatprep.subr.mxu1 %v896_v10  ;;  %v891_v19 = vld [vmem:[%s4895_s25 + $0xe40] sm:$0xff]  ;;  %1746 = vmatpush2.msra.mxu0 %v767_v13  ;;  %v760_v20 = vld [vmem:[%s4895_s25 + $0xa28] sm:$0xff] }
  0xfb   : > { %1817 = vmatpush2.msra.mxu1 %v895_v14  ;;  %v888_v21 = vld [vmem:[%s4895_s25 + $0xe28] sm:$0xff]  ;;  %1747 = vmatprep.subr.mxu0 %v764_v15  ;;  %v759_v23 = vld [vmem:[%s4895_s25 + $0xa20] sm:$0xff] }
  0xfc   : > { %1818 = vmatprep.subr.mxu1 %v892_v16  ;;  %v887_v24 = vld [vmem:[%s4895_s25 + $0xe20] sm:$0xff]  ;;  %1748 = vmatpush2.msra.mxu0 %v763_v18  ;;  %v756_v25 = vld [vmem:[%s4895_s25 + $0xa08] sm:$0xff] }
  0xfd   : > { %1819 = vmatpush2.msra.mxu1 %v891_v19  ;;  %v884_v26 = vld [vmem:[%s4895_s25 + $0xe08] sm:$0xff]  ;;  %1749 = vmatprep.subr.mxu0 %v760_v20  ;;  %v755_v28 = vld [vmem:[%s4895_s25 + $0xa00] sm:$0xff] }
  0xfe   : > { %1820 = vmatprep.subr.mxu1 %v888_v21  ;;  %1750 = vmatpush2.msra.mxu0 %v759_v23  ;;  %v883_v29 = vld [vmem:[%s4895_s25 + $0xe00] sm:$0xff]  ;;  %v1008_v31 = vld [vmem:[%s4895_s25 + $0x11e8] sm:$0xff] }
  0xff   : > { %1821 = vmatpush2.msra.mxu1 %v887_v24  ;;  %1751 = vmatprep.subr.mxu0 %v756_v25  ;;  %v1136_v32 = vld [vmem:[%s4895_s25 + $0x15e8] sm:$0xff]  ;;  %v1007_v33 = vld [vmem:[%s4895_s25 + $0x11e0] sm:$0xff] }
 0x100   : > { %1822 = vmatprep.subr.mxu1 %v884_v26  ;;  %1752 = vmatpush2.msra.mxu0 %v755_v28  ;;  %v1135_v34 = vld [vmem:[%s4895_s25 + $0x15e0] sm:$0xff]  ;;  %v1004_v35 = vld [vmem:[%s4895_s25 + $0x11c8] sm:$0xff] }
 0x101   : > { %1753 = vmatprep.mubr.f32.mxu0 %v5219_v27  ;;  %1823 = vmatpush2.msra.mxu1 %v883_v29  ;;  %v1132_v36 = vld [vmem:[%s4895_s25 + $0x15c8] sm:$0xff]  ;;  %v1003_v37 = vld [vmem:[%s4895_s25 + $0x11c0] sm:$0xff] }
 0x102   : > { %1754 = vmatmul.mubr.f32.vlgmr.msra.gmra.mxu0 %v5204_v17  ;;  %1824 = vmatprep.mubr.f32.mxu1 %v5225_v30  ;;  %v1131_v38 = vld [vmem:[%s4895_s25 + $0x15c0] sm:$0xff]  ;;  %v1000_v39 = vld [vmem:[%s4895_s25 + $0x11a8] sm:$0xff] }
 0x103   : > { %1831 = vmatprep.subr.mxu0 %v1008_v31  ;;  %1902 = vmatprep.subr.mxu1 %v1136_v32  ;;  %v1128_v40 = vld [vmem:[%s4895_s25 + $0x15a8] sm:$0xff]  ;;  %v999_v41 = vld [vmem:[%s4895_s25 + $0x11a0] sm:$0xff] }
 0x104   : > { %1825 = vmatmul.mubr.f32.vlgmr.msra.gmra.mxu1 %v5211_v22  ;;  %1832 = vmatpush1.msra.mxu0 %v1007_v33  ;;  %v1127_v42 = vld [vmem:[%s4895_s25 + $0x15a0] sm:$0xff]  ;;  %v996_v44 = vld [vmem:[%s4895_s25 + $0x1188] sm:$0xff] }
 0x105   : > { %1903 = vmatpush1.msra.mxu1 %v1135_v34  ;;  %1833 = vmatprep.subr.mxu0 %v1004_v35  ;;  %v1124_v45 = vld [vmem:[%s4895_s25 + $0x1588] sm:$0xff]  ;;  %v995_v46 = vld [vmem:[%s4895_s25 + $0x1180] sm:$0xff] }
 0x106   : > { %1904 = vmatprep.subr.mxu1 %v1132_v36  ;;  %1834 = vmatpush1.msra.mxu0 %v1003_v37  ;;  %v1123_v47 = vld [vmem:[%s4895_s25 + $0x1580] sm:$0xff]  ;;  %v992_v48 = vld [vmem:[%s4895_s25 + $0x1168] sm:$0xff] }
 0x107   : > { %1905 = vmatpush1.msra.mxu1 %v1131_v38  ;;  %1835 = vmatprep.subr.mxu0 %v1000_v39  ;;  %v1120_v49 = vld [vmem:[%s4895_s25 + $0x1568] sm:$0xff]  ;;  %v991_v50 = vld [vmem:[%s4895_s25 + $0x1160] sm:$0xff] }
 0x108   : > { %1906 = vmatprep.subr.mxu1 %v1128_v40  ;;  %1836 = vmatpush1.msra.mxu0 %v999_v41  ;;  %v1119_v51 = vld [vmem:[%s4895_s25 + $0x1560] sm:$0xff]  ;;  %v988_v52 = vld [vmem:[%s4895_s25 + $0x1148] sm:$0xff] }
 0x109   : > { %1907 = vmatpush1.msra.mxu1 %v1127_v42  ;;  %1837 = vmatprep.subr.mxu0 %v996_v44  ;;  %v1116_v54 = vld [vmem:[%s4895_s25 + $0x1548] sm:$0xff]  ;;  %v987_v55 = vld [vmem:[%s4895_s25 + $0x1140] sm:$0xff] }
 0x10a   : > { %1908 = vmatprep.subr.mxu1 %v1124_v45  ;;  %1838 = vmatpush1.msra.mxu0 %v995_v46  ;;  %v1115_v56 = vld [vmem:[%s4895_s25 + $0x1540] sm:$0xff]  ;;  %v984_v57 = vld [vmem:[%s4895_s25 + $0x1128] sm:$0xff] }
 0x10b   : > { %1909 = vmatpush1.msra.mxu1 %v1123_v47  ;;  %1839 = vmatprep.subr.mxu0 %v992_v48  ;;  %v1112_v58 = vld [vmem:[%s4895_s25 + $0x1528] sm:$0xff]  ;;  %v983_v59 = vld [vmem:[%s4895_s25 + $0x1120] sm:$0xff] }
 0x10c   : > { %1910 = vmatprep.subr.mxu1 %v1120_v49  ;;  %1840 = vmatpush1.msra.mxu0 %v991_v50  ;;  %v1111_v60 = vld [vmem:[%s4895_s25 + $0x1520] sm:$0xff]  ;;  %v980_v61 = vld [vmem:[%s4895_s25 + $0x1108] sm:$0xff] }
 0x10d   : > { %1911 = vmatpush1.msra.mxu1 %v1119_v51  ;;  %1841 = vmatprep.subr.mxu0 %v988_v52  ;;  %v1108_v62 = vld [vmem:[%s4895_s25 + $0x1508] sm:$0xff]  ;;  %v979_v0 = vld [vmem:[%s4895_s25 + $0x1100] sm:$0xff] }
 0x10e   : > { %1912 = vmatprep.subr.mxu1 %v1116_v54  ;;  %1842 = vmatpush1.msra.mxu0 %v987_v55  ;;  %v1107_v1 = vld [vmem:[%s4895_s25 + $0x1500] sm:$0xff]  ;;  %v976_v3 = vld [vmem:[%s4895_s25 + $0x10e8] sm:$0xff] }
 0x10f   : > { %1913 = vmatpush1.msra.mxu1 %v1115_v56  ;;  %1843 = vmatprep.subr.mxu0 %v984_v57  ;;  %v1104_v4 = vld [vmem:[%s4895_s25 + $0x14e8] sm:$0xff]  ;;  %v975_v5 = vld [vmem:[%s4895_s25 + $0x10e0] sm:$0xff] }
 0x110   : > { %1914 = vmatprep.subr.mxu1 %v1112_v58  ;;  %1844 = vmatpush1.msra.mxu0 %v983_v59  ;;  %v1103_v6 = vld [vmem:[%s4895_s25 + $0x14e0] sm:$0xff]  ;;  %v972_v7 = vld [vmem:[%s4895_s25 + $0x10c8] sm:$0xff] }
 0x111   : > { %1915 = vmatpush1.msra.mxu1 %v1111_v60  ;;  %1845 = vmatprep.subr.mxu0 %v980_v61  ;;  %v1100_v8 = vld [vmem:[%s4895_s25 + $0x14c8] sm:$0xff]  ;;  %v971_v10 = vld [vmem:[%s4895_s25 + $0x10c0] sm:$0xff] }
 0x112   : > { %1916 = vmatprep.subr.mxu1 %v1108_v62  ;;  %1846 = vmatpush1.msra.mxu0 %v979_v0  ;;  %v1099_v12 = vld [vmem:[%s4895_s25 + $0x14c0] sm:$0xff]  ;;  %v968_v13 = vld [vmem:[%s4895_s25 + $0x10a8] sm:$0xff] }
 0x113   : > { %1917 = vmatpush1.msra.mxu1 %v1107_v1  ;;  %1847 = vmatprep.subr.mxu0 %v976_v3  ;;  %v1096_v14 = vld [vmem:[%s4895_s25 + $0x14a8] sm:$0xff]  ;;  %v967_v15 = vld [vmem:[%s4895_s25 + $0x10a0] sm:$0xff] }
 0x114   : > { %1918 = vmatprep.subr.mxu1 %v1104_v4  ;;  %1848 = vmatpush1.msra.mxu0 %v975_v5  ;;  %v1095_v16 = vld [vmem:[%s4895_s25 + $0x14a0] sm:$0xff]  ;;  %v964_v18 = vld [vmem:[%s4895_s25 + $0x1088] sm:$0xff] }
 0x115   : > { %1919 = vmatpush1.msra.mxu1 %v1103_v6  ;;  %1849 = vmatprep.subr.mxu0 %v972_v7  ;;  %v1092_v19 = vld [vmem:[%s4895_s25 + $0x1488] sm:$0xff]  ;;  %v963_v20 = vld [vmem:[%s4895_s25 + $0x1080] sm:$0xff] }
 0x116   : > { %1920 = vmatprep.subr.mxu1 %v1100_v8  ;;  %1850 = vmatpush1.msra.mxu0 %v971_v10  ;;  %v1091_v21 = vld [vmem:[%s4895_s25 + $0x1480] sm:$0xff]  ;;  %v960_v23 = vld [vmem:[%s4895_s25 + $0x1068] sm:$0xff] }
 0x117   : > { %1921 = vmatpush1.msra.mxu1 %v1099_v12  ;;  %1851 = vmatprep.subr.mxu0 %v968_v13  ;;  %v1088_v24 = vld [vmem:[%s4895_s25 + $0x1468] sm:$0xff]  ;;  %v959_v25 = vld [vmem:[%s4895_s25 + $0x1060] sm:$0xff] }
 0x118   : > { %1922 = vmatprep.subr.mxu1 %v1096_v14  ;;  %1852 = vmatpush1.msra.mxu0 %v967_v15  ;;  %v1087_v26 = vld [vmem:[%s4895_s25 + $0x1460] sm:$0xff]  ;;  %v956_v28 = vld [vmem:[%s4895_s25 + $0x1048] sm:$0xff] }
 0x119   : > { %1923 = vmatpush1.msra.mxu1 %v1095_v16  ;;  %1853 = vmatprep.subr.mxu0 %v964_v18  ;;  %v1084_v29 = vld [vmem:[%s4895_s25 + $0x1448] sm:$0xff]  ;;  %v955_v31 = vld [vmem:[%s4895_s25 + $0x1040] sm:$0xff] }
 0x11a   : > { %1924 = vmatprep.subr.mxu1 %v1092_v19  ;;  %1854 = vmatpush1.msra.mxu0 %v963_v20  ;;  %v1083_v32 = vld [vmem:[%s4895_s25 + $0x1440] sm:$0xff]  ;;  %v952_v33 = vld [vmem:[%s4895_s25 + $0x1028] sm:$0xff] }
 0x11b   : > { %1925 = vmatpush1.msra.mxu1 %v1091_v21  ;;  %1855 = vmatprep.subr.mxu0 %v960_v23  ;;  %v1080_v34 = vld [vmem:[%s4895_s25 + $0x1428] sm:$0xff]  ;;  %v951_v35 = vld [vmem:[%s4895_s25 + $0x1020] sm:$0xff] }
 0x11c   : > { %1926 = vmatprep.subr.mxu1 %v1088_v24  ;;  %1856 = vmatpush1.msra.mxu0 %v959_v25  ;;  %v1079_v36 = vld [vmem:[%s4895_s25 + $0x1420] sm:$0xff]  ;;  %v948_v37 = vld [vmem:[%s4895_s25 + $0x1008] sm:$0xff] }
 0x11d   : > { %1927 = vmatpush1.msra.mxu1 %v1087_v26  ;;  %1857 = vmatprep.subr.mxu0 %v956_v28  ;;  %v1076_v38 = vld [vmem:[%s4895_s25 + $0x1408] sm:$0xff]  ;;  %v947_v39 = vld [vmem:[%s4895_s25 + $0x1000] sm:$0xff] }
 0x11e   : > { %1928 = vmatprep.subr.mxu1 %v1084_v29  ;;  %1858 = vmatpush1.msra.mxu0 %v955_v31  ;;  %v1075_v40 = vld [vmem:[%s4895_s25 + $0x1400] sm:$0xff]  ;;  %v1072_v41 = vld [vmem:[%s4895_s25 + $0x13e8] sm:$0xff] }
 0x11f   : > { %1929 = vmatpush1.msra.mxu1 %v1083_v32  ;;  %1859 = vmatprep.subr.mxu0 %v952_v33  ;;  %v1200_v42 = vld [vmem:[%s4895_s25 + $0x17e8] sm:$0xff]  ;;  %v1071_v44 = vld [vmem:[%s4895_s25 + $0x13e0] sm:$0xff] }
 0x120   : > { %1930 = vmatprep.subr.mxu1 %v1080_v34  ;;  %1860 = vmatpush1.msra.mxu0 %v951_v35  ;;  %v1199_v45 = vld [vmem:[%s4895_s25 + $0x17e0] sm:$0xff]  ;;  %v1068_v46 = vld [vmem:[%s4895_s25 + $0x13c8] sm:$0xff] }
 0x121   : > { %1931 = vmatpush1.msra.mxu1 %v1079_v36  ;;  %1861 = vmatprep.subr.mxu0 %v948_v37  ;;  %v1196_v47 = vld [vmem:[%s4895_s25 + $0x17c8] sm:$0xff]  ;;  %v1067_v48 = vld [vmem:[%s4895_s25 + $0x13c0] sm:$0xff] }
 0x122   : > { %1932 = vmatprep.subr.mxu1 %v1076_v38  ;;  %1862 = vmatpush1.msra.mxu0 %v947_v39  ;;  %v1195_v49 = vld [vmem:[%s4895_s25 + $0x17c0] sm:$0xff]  ;;  %v1064_v50 = vld [vmem:[%s4895_s25 + $0x13a8] sm:$0xff] }
 0x123   : > { %1933 = vmatpush1.msra.mxu1 %v1075_v40  ;;  %1863 = vmatprep.subr.mxu0 %v1072_v41  ;;  %v1192_v51 = vld [vmem:[%s4895_s25 + $0x17a8] sm:$0xff]  ;;  %v1063_v52 = vld [vmem:[%s4895_s25 + $0x13a0] sm:$0xff] }
 0x124   : > { %1934 = vmatprep.subr.mxu1 %v1200_v42  ;;  %1864 = vmatpush2.msra.mxu0 %v1071_v44  ;;  %v1191_v54 = vld [vmem:[%s4895_s25 + $0x17a0] sm:$0xff]  ;;  %v1060_v55 = vld [vmem:[%s4895_s25 + $0x1388] sm:$0xff] }
 0x125   : > { %1935 = vmatpush2.msra.mxu1 %v1199_v45  ;;  %1865 = vmatprep.subr.mxu0 %v1068_v46  ;;  %v1188_v56 = vld [vmem:[%s4895_s25 + $0x1788] sm:$0xff]  ;;  %v1059_v57 = vld [vmem:[%s4895_s25 + $0x1380] sm:$0xff] }
 0x126   : > { %1936 = vmatprep.subr.mxu1 %v1196_v47  ;;  %1866 = vmatpush2.msra.mxu0 %v1067_v48  ;;  %v1187_v58 = vld [vmem:[%s4895_s25 + $0x1780] sm:$0xff]  ;;  %v1056_v59 = vld [vmem:[%s4895_s25 + $0x1368] sm:$0xff] }
 0x127   : > { %1937 = vmatpush2.msra.mxu1 %v1195_v49  ;;  %1867 = vmatprep.subr.mxu0 %v1064_v50  ;;  %v1184_v60 = vld [vmem:[%s4895_s25 + $0x1768] sm:$0xff]  ;;  %v1055_v61 = vld [vmem:[%s4895_s25 + $0x1360] sm:$0xff] }
 0x128   : > { %1938 = vmatprep.subr.mxu1 %v1192_v51  ;;  %1868 = vmatpush2.msra.mxu0 %v1063_v52  ;;  %v1183_v62 = vld [vmem:[%s4895_s25 + $0x1760] sm:$0xff]  ;;  %v1052_v0 = vld [vmem:[%s4895_s25 + $0x1348] sm:$0xff] }
 0x129   : > { %1939 = vmatpush2.msra.mxu1 %v1191_v54  ;;  %1869 = vmatprep.subr.mxu0 %v1060_v55  ;;  %v1180_v1 = vld [vmem:[%s4895_s25 + $0x1748] sm:$0xff]  ;;  %v1051_v3 = vld [vmem:[%s4895_s25 + $0x1340] sm:$0xff] }
 0x12a   : > { %1940 = vmatprep.subr.mxu1 %v1188_v56  ;;  %1870 = vmatpush2.msra.mxu0 %v1059_v57  ;;  %v1179_v4 = vld [vmem:[%s4895_s25 + $0x1740] sm:$0xff]  ;;  %v1048_v5 = vld [vmem:[%s4895_s25 + $0x1328] sm:$0xff] }
 0x12b   : > { %1941 = vmatpush2.msra.mxu1 %v1187_v58  ;;  %1871 = vmatprep.subr.mxu0 %v1056_v59  ;;  %v1176_v6 = vld [vmem:[%s4895_s25 + $0x1728] sm:$0xff]  ;;  %v1047_v7 = vld [vmem:[%s4895_s25 + $0x1320] sm:$0xff] }
 0x12c   : > { %1942 = vmatprep.subr.mxu1 %v1184_v60  ;;  %1872 = vmatpush2.msra.mxu0 %v1055_v61  ;;  %v1175_v8 = vld [vmem:[%s4895_s25 + $0x1720] sm:$0xff]  ;;  %v1044_v10 = vld [vmem:[%s4895_s25 + $0x1308] sm:$0xff] }
 0x12d   : > { %1943 = vmatpush2.msra.mxu1 %v1183_v62  ;;  %1873 = vmatprep.subr.mxu0 %v1052_v0  ;;  %v1172_v12 = vld [vmem:[%s4895_s25 + $0x1708] sm:$0xff]  ;;  %v1043_v13 = vld [vmem:[%s4895_s25 + $0x1300] sm:$0xff] }
 0x12e   : > { %1944 = vmatprep.subr.mxu1 %v1180_v1  ;;  %1874 = vmatpush2.msra.mxu0 %v1051_v3  ;;  %v1171_v14 = vld [vmem:[%s4895_s25 + $0x1700] sm:$0xff]  ;;  %v1040_v15 = vld [vmem:[%s4895_s25 + $0x12e8] sm:$0xff] }
 0x12f   : > { %1945 = vmatpush2.msra.mxu1 %v1179_v4  ;;  %1875 = vmatprep.subr.mxu0 %v1048_v5  ;;  %v1168_v16 = vld [vmem:[%s4895_s25 + $0x16e8] sm:$0xff]  ;;  %v1039_v18 = vld [vmem:[%s4895_s25 + $0x12e0] sm:$0xff] }
 0x130   : > { %1946 = vmatprep.subr.mxu1 %v1176_v6  ;;  %1876 = vmatpush2.msra.mxu0 %v1047_v7  ;;  %v1167_v19 = vld [vmem:[%s4895_s25 + $0x16e0] sm:$0xff]  ;;  %v1036_v20 = vld [vmem:[%s4895_s25 + $0x12c8] sm:$0xff] }
 0x131   : > { %1947 = vmatpush2.msra.mxu1 %v1175_v8  ;;  %1877 = vmatprep.subr.mxu0 %v1044_v10  ;;  %v1164_v21 = vld [vmem:[%s4895_s25 + $0x16c8] sm:$0xff]  ;;  %v1035_v23 = vld [vmem:[%s4895_s25 + $0x12c0] sm:$0xff] }
 0x132   : > { %1948 = vmatprep.subr.mxu1 %v1172_v12  ;;  %1878 = vmatpush2.msra.mxu0 %v1043_v13  ;;  %v1163_v24 = vld [vmem:[%s4895_s25 + $0x16c0] sm:$0xff]  ;;  %v1032_v25 = vld [vmem:[%s4895_s25 + $0x12a8] sm:$0xff] }
 0x133   : > { %1949 = vmatpush2.msra.mxu1 %v1171_v14  ;;  %1879 = vmatprep.subr.mxu0 %v1040_v15  ;;  %v1160_v26 = vld [vmem:[%s4895_s25 + $0x16a8] sm:$0xff]  ;;  %v1031_v28 = vld [vmem:[%s4895_s25 + $0x12a0] sm:$0xff] }
 0x134   : > { %1950 = vmatprep.subr.mxu1 %v1168_v16  ;;  %1880 = vmatpush2.msra.mxu0 %v1039_v18  ;;  %v1159_v29 = vld [vmem:[%s4895_s25 + $0x16a0] sm:$0xff]  ;;  %v1028_v32 = vld [vmem:[%s4895_s25 + $0x1288] sm:$0xff] }
 0x135   : > { %1951 = vmatpush2.msra.mxu1 %v1167_v19  ;;  %1881 = vmatprep.subr.mxu0 %v1036_v20  ;;  %v433_v31 = vld [vmem:[%s5030_s28 + $0x10] sm:$0xff] }
 0x136   : > { %1952 = vmatprep.subr.mxu1 %v1164_v21  ;;  %1882 = vmatpush2.msra.mxu0 %v1035_v23  ;;  %v1156_v33 = vld [vmem:[%s4895_s25 + $0x1688] sm:$0xff]  ;;  %v1027_v34 = vld [vmem:[%s4895_s25 + $0x1280] sm:$0xff]  ;;  %v1497_v38 = vcombine.high %v433_v31, %v433_v31  ;;  %v5351_v44 = vrot.slane %v433_v31, %v5046_v53 }
 0x137   : > { %1953 = vmatpush2.msra.mxu1 %v1163_v24  ;;  %1883 = vmatprep.subr.mxu0 %v1032_v25  ;;  %v1155_v35 = vld [vmem:[%s4895_s25 + $0x1680] sm:$0xff]  ;;  %v1024_v36 = vld [vmem:[%s4895_s25 + $0x1268] sm:$0xff] }
 0x138   : > { %1954 = vmatprep.subr.mxu1 %v1160_v26  ;;  %1884 = vmatpush2.msra.mxu0 %v1031_v28  ;;  %v1152_v37 = vld [vmem:[%s4895_s25 + $0x1668] sm:$0xff]  ;;  %v1023_v39 = vld [vmem:[%s4895_s25 + $0x1260] sm:$0xff]  ;;  %v5358_v49 = vrot.slane %v1497_v38, %v5046_v53  ;;  %v5366_v55 = vcombine.high %v5351_v44, %v5351_v44 }
 0x139   : > { %1955 = vmatpush2.msra.mxu1 %v1159_v29  ;;  %1885 = vmatprep.subr.mxu0 %v1028_v32  ;;  %v1151_v40 = vld [vmem:[%s4895_s25 + $0x1660] sm:$0xff]  ;;  %v1020_v41 = vld [vmem:[%s4895_s25 + $0x1248] sm:$0xff] }
 0x13a   : > { %1956 = vmatprep.subr.mxu1 %v1156_v33  ;;  %1886 = vmatpush2.msra.mxu0 %v1027_v34  ;;  %v1148_v42 = vld [vmem:[%s4895_s25 + $0x1648] sm:$0xff]  ;;  %v1019_v45 = vld [vmem:[%s4895_s25 + $0x1240] sm:$0xff]  ;;  %v5372_v58 = vcombine.high %v5358_v49, %v5358_v49 }
 0x13b   : > { %1957 = vmatpush2.msra.mxu1 %v1155_v35  ;;  %1887 = vmatprep.subr.mxu0 %v1024_v36  ;;  %v1147_v46 = vld [vmem:[%s4895_s25 + $0x1640] sm:$0xff]  ;;  %v1016_v47 = vld [vmem:[%s4895_s25 + $0x1228] sm:$0xff] }
 0x13c   : > { %1958 = vmatprep.subr.mxu1 %v1152_v37  ;;  %1888 = vmatpush2.msra.mxu0 %v1023_v39  ;;  %v1144_v48 = vld [vmem:[%s4895_s25 + $0x1628] sm:$0xff]  ;;  %v1015_v50 = vld [vmem:[%s4895_s25 + $0x1220] sm:$0xff] }
 0x13d   : > { %1959 = vmatpush2.msra.mxu1 %v1151_v40  ;;  %1889 = vmatprep.subr.mxu0 %v1020_v41  ;;  %v1143_v51 = vld [vmem:[%s4895_s25 + $0x1620] sm:$0xff]  ;;  %v1012_v52 = vld [vmem:[%s4895_s25 + $0x1208] sm:$0xff] }
 0x13e   : > { %1960 = vmatprep.subr.mxu1 %v1148_v42  ;;  %1890 = vmatpush2.msra.mxu0 %v1019_v45  ;;  %v1140_v54 = vld [vmem:[%s4895_s25 + $0x1608] sm:$0xff]  ;;  %v1011_v56 = vld [vmem:[%s4895_s25 + $0x1200] sm:$0xff] }
 0x13f   : > { %1961 = vmatpush2.msra.mxu1 %v1147_v46  ;;  %1891 = vmatprep.subr.mxu0 %v1016_v47  ;;  %v1139_v57 = vld [vmem:[%s4895_s25 + $0x1600] sm:$0xff]  ;;  %v1264_v59 = vld [vmem:[%s4895_s25 + $0x19e8] sm:$0xff] }
 0x140   : > { %1962 = vmatprep.subr.mxu1 %v1144_v48  ;;  %1892 = vmatpush2.msra.mxu0 %v1015_v50  ;;  %v1392_v60 = vld [vmem:[%s4895_s25 + $0x1de8] sm:$0xff]  ;;  %v1263_v61 = vld [vmem:[%s4895_s25 + $0x19e0] sm:$0xff] }
 0x141   : > { %1963 = vmatpush2.msra.mxu1 %v1143_v51  ;;  %1893 = vmatprep.subr.mxu0 %v1012_v52  ;;  %v1391_v62 = vld [vmem:[%s4895_s25 + $0x1de0] sm:$0xff]  ;;  %v1260_v0 = vld [vmem:[%s4895_s25 + $0x19c8] sm:$0xff] }
 0x142   : > { %1964 = vmatprep.subr.mxu1 %v1140_v54  ;;  %1894 = vmatpush2.msra.mxu0 %v1011_v56  ;;  %v1388_v1 = vld [vmem:[%s4895_s25 + $0x1dc8] sm:$0xff]  ;;  %v1259_v3 = vld [vmem:[%s4895_s25 + $0x19c0] sm:$0xff] }
 0x143   : > { %1895 = vmatprep.mubr.f32.mxu0 %v5366_v55  ;;  %1965 = vmatpush2.msra.mxu1 %v1139_v57  ;;  %v1387_v4 = vld [vmem:[%s4895_s25 + $0x1dc0] sm:$0xff]  ;;  %v1256_v5 = vld [vmem:[%s4895_s25 + $0x19a8] sm:$0xff] }
 0x144   : > { %1896 = vmatmul.mubr.f32.vlgmr.msra.gmra.mxu0 %v5351_v44  ;;  %1966 = vmatprep.mubr.f32.mxu1 %v5372_v58  ;;  %v1384_v6 = vld [vmem:[%s4895_s25 + $0x1da8] sm:$0xff]  ;;  %v1255_v7 = vld [vmem:[%s4895_s25 + $0x19a0] sm:$0xff] }
 0x145   : > { %1973 = vmatprep.subr.mxu0 %v1264_v59  ;;  %2044 = vmatprep.subr.mxu1 %v1392_v60  ;;  %v1383_v8 = vld [vmem:[%s4895_s25 + $0x1da0] sm:$0xff]  ;;  %v1252_v10 = vld [vmem:[%s4895_s25 + $0x1988] sm:$0xff] }
 0x146   : > { %1967 = vmatmul.mubr.f32.vlgmr.msra.gmra.mxu1 %v5358_v49  ;;  %1974 = vmatpush1.msra.mxu0 %v1263_v61  ;;  %v1380_v12 = vld [vmem:[%s4895_s25 + $0x1d88] sm:$0xff]  ;;  %v1251_v13 = vld [vmem:[%s4895_s25 + $0x1980] sm:$0xff] }
 0x147   : > { %2045 = vmatpush1.msra.mxu1 %v1391_v62  ;;  %1975 = vmatprep.subr.mxu0 %v1260_v0  ;;  %v1379_v14 = vld [vmem:[%s4895_s25 + $0x1d80] sm:$0xff]  ;;  %v1248_v15 = vld [vmem:[%s4895_s25 + $0x1968] sm:$0xff] }
 0x148   : > { %2046 = vmatprep.subr.mxu1 %v1388_v1  ;;  %1976 = vmatpush1.msra.mxu0 %v1259_v3  ;;  %v1376_v16 = vld [vmem:[%s4895_s25 + $0x1d68] sm:$0xff]  ;;  %v1247_v18 = vld [vmem:[%s4895_s25 + $0x1960] sm:$0xff] }
 0x149   : > { %2047 = vmatpush1.msra.mxu1 %v1387_v4  ;;  %1977 = vmatprep.subr.mxu0 %v1256_v5  ;;  %v1375_v19 = vld [vmem:[%s4895_s25 + $0x1d60] sm:$0xff]  ;;  %v1244_v20 = vld [vmem:[%s4895_s25 + $0x1948] sm:$0xff] }
 0x14a   : > { %2048 = vmatprep.subr.mxu1 %v1384_v6  ;;  %1978 = vmatpush1.msra.mxu0 %v1255_v7  ;;  %v1372_v21 = vld [vmem:[%s4895_s25 + $0x1d48] sm:$0xff]  ;;  %v1243_v23 = vld [vmem:[%s4895_s25 + $0x1940] sm:$0xff] }
 0x14b   : > { %2049 = vmatpush1.msra.mxu1 %v1383_v8  ;;  %1979 = vmatprep.subr.mxu0 %v1252_v10  ;;  %v1371_v24 = vld [vmem:[%s4895_s25 + $0x1d40] sm:$0xff]  ;;  %v1240_v25 = vld [vmem:[%s4895_s25 + $0x1928] sm:$0xff] }
 0x14c   : > { %2050 = vmatprep.subr.mxu1 %v1380_v12  ;;  %1980 = vmatpush1.msra.mxu0 %v1251_v13  ;;  %v1368_v26 = vld [vmem:[%s4895_s25 + $0x1d28] sm:$0xff]  ;;  %v1239_v28 = vld [vmem:[%s4895_s25 + $0x1920] sm:$0xff] }
 0x14d   : > { %2051 = vmatpush1.msra.mxu1 %v1379_v14  ;;  %1981 = vmatprep.subr.mxu0 %v1248_v15  ;;  %v1367_v29 = vld [vmem:[%s4895_s25 + $0x1d20] sm:$0xff]  ;;  %v1236_v31 = vld [vmem:[%s4895_s25 + $0x1908] sm:$0xff] }
 0x14e   : > { %2052 = vmatprep.subr.mxu1 %v1376_v16  ;;  %1982 = vmatpush1.msra.mxu0 %v1247_v18  ;;  %v1364_v32 = vld [vmem:[%s4895_s25 + $0x1d08] sm:$0xff]  ;;  %v1235_v33 = vld [vmem:[%s4895_s25 + $0x1900] sm:$0xff] }
 0x14f   : > { %2053 = vmatpush1.msra.mxu1 %v1375_v19  ;;  %1983 = vmatprep.subr.mxu0 %v1244_v20  ;;  %v1363_v34 = vld [vmem:[%s4895_s25 + $0x1d00] sm:$0xff]  ;;  %v1232_v35 = vld [vmem:[%s4895_s25 + $0x18e8] sm:$0xff] }
 0x150   : > { %2054 = vmatprep.subr.mxu1 %v1372_v21  ;;  %1984 = vmatpush1.msra.mxu0 %v1243_v23  ;;  %v1360_v36 = vld [vmem:[%s4895_s25 + $0x1ce8] sm:$0xff]  ;;  %v1231_v37 = vld [vmem:[%s4895_s25 + $0x18e0] sm:$0xff] }
 0x151   : > { %2055 = vmatpush1.msra.mxu1 %v1371_v24  ;;  %1985 = vmatprep.subr.mxu0 %v1240_v25  ;;  %v1359_v38 = vld [vmem:[%s4895_s25 + $0x1ce0] sm:$0xff]  ;;  %v1228_v39 = vld [vmem:[%s4895_s25 + $0x18c8] sm:$0xff] }
 0x152   : > { %2056 = vmatprep.subr.mxu1 %v1368_v26  ;;  %1986 = vmatpush1.msra.mxu0 %v1239_v28  ;;  %v1356_v40 = vld [vmem:[%s4895_s25 + $0x1cc8] sm:$0xff]  ;;  %v1227_v41 = vld [vmem:[%s4895_s25 + $0x18c0] sm:$0xff] }
 0x153   : > { %2057 = vmatpush1.msra.mxu1 %v1367_v29  ;;  %1987 = vmatprep.subr.mxu0 %v1236_v31  ;;  %v1355_v42 = vld [vmem:[%s4895_s25 + $0x1cc0] sm:$0xff]  ;;  %v1224_v45 = vld [vmem:[%s4895_s25 + $0x18a8] sm:$0xff] }
 0x154   : > { %2058 = vmatprep.subr.mxu1 %v1364_v32  ;;  %1988 = vmatpush1.msra.mxu0 %v1235_v33  ;;  %v1352_v46 = vld [vmem:[%s4895_s25 + $0x1ca8] sm:$0xff]  ;;  %v1223_v47 = vld [vmem:[%s4895_s25 + $0x18a0] sm:$0xff] }
 0x155   : > { %2059 = vmatpush1.msra.mxu1 %v1363_v34  ;;  %1989 = vmatprep.subr.mxu0 %v1232_v35  ;;  %v1351_v48 = vld [vmem:[%s4895_s25 + $0x1ca0] sm:$0xff]  ;;  %v1220_v50 = vld [vmem:[%s4895_s25 + $0x1888] sm:$0xff] }
 0x156   : > { %2060 = vmatprep.subr.mxu1 %v1360_v36  ;;  %1990 = vmatpush1.msra.mxu0 %v1231_v37  ;;  %v1348_v51 = vld [vmem:[%s4895_s25 + $0x1c88] sm:$0xff]  ;;  %v1219_v52 = vld [vmem:[%s4895_s25 + $0x1880] sm:$0xff] }
 0x157   : > { %2061 = vmatpush1.msra.mxu1 %v1359_v38  ;;  %1991 = vmatprep.subr.mxu0 %v1228_v39  ;;  %v1347_v54 = vld [vmem:[%s4895_s25 + $0x1c80] sm:$0xff]  ;;  %v1216_v56 = vld [vmem:[%s4895_s25 + $0x1868] sm:$0xff] }
 0x158   : > { %2062 = vmatprep.subr.mxu1 %v1356_v40  ;;  %1992 = vmatpush1.msra.mxu0 %v1227_v41  ;;  %v1344_v57 = vld [vmem:[%s4895_s25 + $0x1c68] sm:$0xff]  ;;  %v1215_v59 = vld [vmem:[%s4895_s25 + $0x1860] sm:$0xff] }
 0x159   : > { %2063 = vmatpush1.msra.mxu1 %v1355_v42  ;;  %1993 = vmatprep.subr.mxu0 %v1224_v45  ;;  %v1343_v60 = vld [vmem:[%s4895_s25 + $0x1c60] sm:$0xff]  ;;  %v1212_v61 = vld [vmem:[%s4895_s25 + $0x1848] sm:$0xff] }
 0x15a   : > { %2064 = vmatprep.subr.mxu1 %v1352_v46  ;;  %1994 = vmatpush1.msra.mxu0 %v1223_v47  ;;  %v1340_v62 = vld [vmem:[%s4895_s25 + $0x1c48] sm:$0xff]  ;;  %v1211_v0 = vld [vmem:[%s4895_s25 + $0x1840] sm:$0xff] }
 0x15b   : > { %2065 = vmatpush1.msra.mxu1 %v1351_v48  ;;  %1995 = vmatprep.subr.mxu0 %v1220_v50  ;;  %v1339_v1 = vld [vmem:[%s4895_s25 + $0x1c40] sm:$0xff]  ;;  %v1208_v3 = vld [vmem:[%s4895_s25 + $0x1828] sm:$0xff] }
 0x15c   : > { %2066 = vmatprep.subr.mxu1 %v1348_v51  ;;  %1996 = vmatpush1.msra.mxu0 %v1219_v52  ;;  %v1336_v4 = vld [vmem:[%s4895_s25 + $0x1c28] sm:$0xff]  ;;  %v1207_v5 = vld [vmem:[%s4895_s25 + $0x1820] sm:$0xff] }
 0x15d   : > { %2067 = vmatpush1.msra.mxu1 %v1347_v54  ;;  %1997 = vmatprep.subr.mxu0 %v1216_v56  ;;  %v1335_v6 = vld [vmem:[%s4895_s25 + $0x1c20] sm:$0xff]  ;;  %v1204_v7 = vld [vmem:[%s4895_s25 + $0x1808] sm:$0xff] }
 0x15e   : > { %2068 = vmatprep.subr.mxu1 %v1344_v57  ;;  %1998 = vmatpush1.msra.mxu0 %v1215_v59  ;;  %v1332_v8 = vld [vmem:[%s4895_s25 + $0x1c08] sm:$0xff]  ;;  %v1203_v10 = vld [vmem:[%s4895_s25 + $0x1800] sm:$0xff] }
 0x15f   : > { %2069 = vmatpush1.msra.mxu1 %v1343_v60  ;;  %1999 = vmatprep.subr.mxu0 %v1212_v61  ;;  %v1331_v12 = vld [vmem:[%s4895_s25 + $0x1c00] sm:$0xff]  ;;  %v1328_v13 = vld [vmem:[%s4895_s25 + $0x1be8] sm:$0xff] }
 0x160   : > { %2070 = vmatprep.subr.mxu1 %v1340_v62  ;;  %2000 = vmatpush1.msra.mxu0 %v1211_v0  ;;  %v1456_v14 = vld [vmem:[%s4895_s25 + $0x1fe8] sm:$0xff]  ;;  %v1327_v15 = vld [vmem:[%s4895_s25 + $0x1be0] sm:$0xff] }
 0x161   : > { %2071 = vmatpush1.msra.mxu1 %v1339_v1  ;;  %2001 = vmatprep.subr.mxu0 %v1208_v3  ;;  %v1455_v16 = vld [vmem:[%s4895_s25 + $0x1fe0] sm:$0xff]  ;;  %v1324_v18 = vld [vmem:[%s4895_s25 + $0x1bc8] sm:$0xff] }
 0x162   : > { %2072 = vmatprep.subr.mxu1 %v1336_v4  ;;  %2002 = vmatpush1.msra.mxu0 %v1207_v5  ;;  %v1452_v19 = vld [vmem:[%s4895_s25 + $0x1fc8] sm:$0xff]  ;;  %v1323_v20 = vld [vmem:[%s4895_s25 + $0x1bc0] sm:$0xff] }
 0x163   : > { %2073 = vmatpush1.msra.mxu1 %v1335_v6  ;;  %2003 = vmatprep.subr.mxu0 %v1204_v7  ;;  %v1451_v21 = vld [vmem:[%s4895_s25 + $0x1fc0] sm:$0xff]  ;;  %v1320_v23 = vld [vmem:[%s4895_s25 + $0x1ba8] sm:$0xff] }
 0x164   : > { %2074 = vmatprep.subr.mxu1 %v1332_v8  ;;  %2004 = vmatpush1.msra.mxu0 %v1203_v10  ;;  %v1448_v24 = vld [vmem:[%s4895_s25 + $0x1fa8] sm:$0xff]  ;;  %v1319_v25 = vld [vmem:[%s4895_s25 + $0x1ba0] sm:$0xff] }
 0x165   : > { %2075 = vmatpush1.msra.mxu1 %v1331_v12  ;;  %2005 = vmatprep.subr.mxu0 %v1328_v13  ;;  %v1447_v26 = vld [vmem:[%s4895_s25 + $0x1fa0] sm:$0xff]  ;;  %v1316_v28 = vld [vmem:[%s4895_s25 + $0x1b88] sm:$0xff] }
 0x166   : > { %2076 = vmatprep.subr.mxu1 %v1456_v14  ;;  %2006 = vmatpush2.msra.mxu0 %v1327_v15  ;;  %v1444_v29 = vld [vmem:[%s4895_s25 + $0x1f88] sm:$0xff]  ;;  %v1315_v31 = vld [vmem:[%s4895_s25 + $0x1b80] sm:$0xff] }
 0x167   : > { %2077 = vmatpush2.msra.mxu1 %v1455_v16  ;;  %2007 = vmatprep.subr.mxu0 %v1324_v18  ;;  %v1443_v32 = vld [vmem:[%s4895_s25 + $0x1f80] sm:$0xff]  ;;  %v1312_v33 = vld [vmem:[%s4895_s25 + $0x1b68] sm:$0xff] }
 0x168   : > { %2078 = vmatprep.subr.mxu1 %v1452_v19  ;;  %2008 = vmatpush2.msra.mxu0 %v1323_v20  ;;  %v1440_v34 = vld [vmem:[%s4895_s25 + $0x1f68] sm:$0xff]  ;;  %v1311_v35 = vld [vmem:[%s4895_s25 + $0x1b60] sm:$0xff] }
 0x169   : > { %2079 = vmatpush2.msra.mxu1 %v1451_v21  ;;  %2009 = vmatprep.subr.mxu0 %v1320_v23  ;;  %v1439_v36 = vld [vmem:[%s4895_s25 + $0x1f60] sm:$0xff]  ;;  %v1308_v37 = vld [vmem:[%s4895_s25 + $0x1b48] sm:$0xff] }
 0x16a   : > { %2080 = vmatprep.subr.mxu1 %v1448_v24  ;;  %2010 = vmatpush2.msra.mxu0 %v1319_v25  ;;  %v1436_v38 = vld [vmem:[%s4895_s25 + $0x1f48] sm:$0xff]  ;;  %v1307_v39 = vld [vmem:[%s4895_s25 + $0x1b40] sm:$0xff] }
 0x16b   : > { %2081 = vmatpush2.msra.mxu1 %v1447_v26  ;;  %2011 = vmatprep.subr.mxu0 %v1316_v28  ;;  %v1435_v40 = vld [vmem:[%s4895_s25 + $0x1f40] sm:$0xff]  ;;  %v1304_v41 = vld [vmem:[%s4895_s25 + $0x1b28] sm:$0xff] }
 0x16c   : > { %2082 = vmatprep.subr.mxu1 %v1444_v29  ;;  %2012 = vmatpush2.msra.mxu0 %v1315_v31  ;;  %v1432_v42 = vld [vmem:[%s4895_s25 + $0x1f28] sm:$0xff]  ;;  %v1303_v45 = vld [vmem:[%s4895_s25 + $0x1b20] sm:$0xff] }
 0x16d   : > { %2083 = vmatpush2.msra.mxu1 %v1443_v32  ;;  %2013 = vmatprep.subr.mxu0 %v1312_v33  ;;  %v1431_v46 = vld [vmem:[%s4895_s25 + $0x1f20] sm:$0xff]  ;;  %v1300_v47 = vld [vmem:[%s4895_s25 + $0x1b08] sm:$0xff] }
 0x16e   : > { %2084 = vmatprep.subr.mxu1 %v1440_v34  ;;  %2014 = vmatpush2.msra.mxu0 %v1311_v35  ;;  %v1428_v48 = vld [vmem:[%s4895_s25 + $0x1f08] sm:$0xff]  ;;  %v1299_v50 = vld [vmem:[%s4895_s25 + $0x1b00] sm:$0xff] }
 0x16f   : > { %2085 = vmatpush2.msra.mxu1 %v1439_v36  ;;  %2015 = vmatprep.subr.mxu0 %v1308_v37  ;;  %v1427_v51 = vld [vmem:[%s4895_s25 + $0x1f00] sm:$0xff]  ;;  %v1296_v52 = vld [vmem:[%s4895_s25 + $0x1ae8] sm:$0xff]  ;;  %v498_v37 = vld [vmem:[%s4895_s25 + $0x1f8] sm:$0xff] }
 0x170   : > { %2086 = vmatprep.subr.mxu1 %v1436_v38  ;;  %2016 = vmatpush2.msra.mxu0 %v1307_v39  ;;  %v1424_v54 = vld [vmem:[%s4895_s25 + $0x1ee8] sm:$0xff]  ;;  %v1295_v56 = vld [vmem:[%s4895_s25 + $0x1ae0] sm:$0xff]  ;;  %v626_v38 = vld [vmem:[%s4895_s25 + $0x5f8] sm:$0xff] }
 0x171   : > { %2087 = vmatpush2.msra.mxu1 %v1435_v40  ;;  %2017 = vmatprep.subr.mxu0 %v1304_v41  ;;  %v1423_v57 = vld [vmem:[%s4895_s25 + $0x1ee0] sm:$0xff]  ;;  %v1292_v59 = vld [vmem:[%s4895_s25 + $0x1ac8] sm:$0xff]  ;;  %v497_v39 = vld [vmem:[%s4895_s25 + $0x1f0] sm:$0xff] }
 0x172   : > { %2088 = vmatprep.subr.mxu1 %v1432_v42  ;;  %2018 = vmatpush2.msra.mxu0 %v1303_v45  ;;  %v1420_v60 = vld [vmem:[%s4895_s25 + $0x1ec8] sm:$0xff]  ;;  %v1291_v61 = vld [vmem:[%s4895_s25 + $0x1ac0] sm:$0xff]  ;;  %v625_v40 = vld [vmem:[%s4895_s25 + $0x5f0] sm:$0xff] }
 0x173   : > { %2089 = vmatpush2.msra.mxu1 %v1431_v46  ;;  %2019 = vmatprep.subr.mxu0 %v1300_v47  ;;  %v1419_v62 = vld [vmem:[%s4895_s25 + $0x1ec0] sm:$0xff]  ;;  %v1288_v0 = vld [vmem:[%s4895_s25 + $0x1aa8] sm:$0xff]  ;;  %v494_v41 = vld [vmem:[%s4895_s25 + $0x1d8] sm:$0xff] }
 0x174   : > { %2090 = vmatprep.subr.mxu1 %v1428_v48  ;;  %2020 = vmatpush2.msra.mxu0 %v1299_v50  ;;  %v1416_v1 = vld [vmem:[%s4895_s25 + $0x1ea8] sm:$0xff]  ;;  %v1287_v3 = vld [vmem:[%s4895_s25 + $0x1aa0] sm:$0xff]  ;;  %v622_v42 = vld [vmem:[%s4895_s25 + $0x5d8] sm:$0xff] }
 0x175   : > { %2091 = vmatpush2.msra.mxu1 %v1427_v51  ;;  %2021 = vmatprep.subr.mxu0 %v1296_v52  ;;  %v1415_v4 = vld [vmem:[%s4895_s25 + $0x1ea0] sm:$0xff]  ;;  %v434_v5 = vld [vmem:[%s5030_s28 + $0x18] sm:$0xff]  ;;  %v490_v47 = vld [vmem:[%s4895_s25 + $0x1b8] sm:$0xff] }
 0x176   : > { %2092 = vmatprep.subr.mxu1 %v1424_v54  ;;  %2022 = vmatpush2.msra.mxu0 %v1295_v56  ;;  %v1284_v6 = vld [vmem:[%s4895_s25 + $0x1a88] sm:$0xff]  ;;  %v1283_v8 = vld [vmem:[%s4895_s25 + $0x1a80] sm:$0xff]  ;;  %v1514_v14 = vcombine.high %v434_v5, %v434_v5  ;;  %v5498_v20 = vrot.slane %v434_v5, %v5046_v53  ;;  %v493_v45 = vld [vmem:[%s4895_s25 + $0x1d0] sm:$0xff] }
 0x177   : > { %2093 = vmatpush2.msra.mxu1 %v1423_v57  ;;  %2023 = vmatprep.subr.mxu0 %v1292_v59  ;;  %v1412_v7 = vld [vmem:[%s4895_s25 + $0x1e88] sm:$0xff]  ;;  %v1411_v10 = vld [vmem:[%s4895_s25 + $0x1e80] sm:$0xff]  ;;  %v621_v46 = vld [vmem:[%s4895_s25 + $0x5d0] sm:$0xff] }
 0x178   : > { %2094 = vmatprep.subr.mxu1 %v1420_v60  ;;  %2024 = vmatpush2.msra.mxu0 %v1291_v61  ;;  %v1280_v12 = vld [vmem:[%s4895_s25 + $0x1a68] sm:$0xff]  ;;  %v1279_v15 = vld [vmem:[%s4895_s25 + $0x1a60] sm:$0xff]  ;;  %v5505_v26 = vrot.slane %v1514_v14, %v5046_v53  ;;  %v5513_v33 = vcombine.high %v5498_v20, %v5498_v20  ;;  %v618_v48 = vld [vmem:[%s4895_s25 + $0x5b8] sm:$0xff] }
 0x179   : > { %2095 = vmatpush2.msra.mxu1 %v1419_v62  ;;  %2025 = vmatprep.subr.mxu0 %v1288_v0  ;;  %v1408_v13 = vld [vmem:[%s4895_s25 + $0x1e68] sm:$0xff]  ;;  %v1407_v16 = vld [vmem:[%s4895_s25 + $0x1e60] sm:$0xff]  ;;  %v489_v50 = vld [vmem:[%s4895_s25 + $0x1b0] sm:$0xff] }
 0x17a   : > { %2096 = vmatprep.subr.mxu1 %v1416_v1  ;;  %2026 = vmatpush2.msra.mxu0 %v1287_v3  ;;  %v1276_v18 = vld [vmem:[%s4895_s25 + $0x1a48] sm:$0xff]  ;;  %v1275_v21 = vld [vmem:[%s4895_s25 + $0x1a40] sm:$0xff]  ;;  %v5519_v36 = vcombine.high %v5505_v26, %v5505_v26  ;;  %v617_v51 = vld [vmem:[%s4895_s25 + $0x5b0] sm:$0xff] }
 0x17b   : > { %2097 = vmatpush2.msra.mxu1 %v1415_v4  ;;  %2027 = vmatprep.subr.mxu0 %v1284_v6  ;;  %v1404_v19 = vld [vmem:[%s4895_s25 + $0x1e48] sm:$0xff]  ;;  %v1403_v23 = vld [vmem:[%s4895_s25 + $0x1e40] sm:$0xff]  ;;  %v486_v52 = vld [vmem:[%s4895_s25 + $0x198] sm:$0xff] }
 0x17c   : > { %2098 = vmatprep.subr.mxu1 %v1412_v7  ;;  %2028 = vmatpush2.msra.mxu0 %v1283_v8  ;;  %v1272_v24 = vld [vmem:[%s4895_s25 + $0x1a28] sm:$0xff]  ;;  %v1271_v28 = vld [vmem:[%s4895_s25 + $0x1a20] sm:$0xff]  ;;  %v614_v54 = vld [vmem:[%s4895_s25 + $0x598] sm:$0xff] }
 0x17d   : > { %2099 = vmatpush2.msra.mxu1 %v1411_v10  ;;  %2029 = vmatprep.subr.mxu0 %v1280_v12  ;;  %v1400_v25 = vld [vmem:[%s4895_s25 + $0x1e28] sm:$0xff]  ;;  %v1399_v29 = vld [vmem:[%s4895_s25 + $0x1e20] sm:$0xff]  ;;  %v485_v56 = vld [vmem:[%s4895_s25 + $0x190] sm:$0xff] }
 0x17e   : > { %2100 = vmatprep.subr.mxu1 %v1408_v13  ;;  %2030 = vmatpush2.msra.mxu0 %v1279_v15  ;;  %v1268_v31 = vld [vmem:[%s4895_s25 + $0x1a08] sm:$0xff]  ;;  %v1267_v34 = vld [vmem:[%s4895_s25 + $0x1a00] sm:$0xff]  ;;  %v613_v57 = vld [vmem:[%s4895_s25 + $0x590] sm:$0xff] }
 0x17f   : > { %2101 = vmatpush2.msra.mxu1 %v1407_v16  ;;  %2031 = vmatprep.subr.mxu0 %v1276_v18  ;;  %v1396_v32 = vld [vmem:[%s4895_s25 + $0x1e08] sm:$0xff]  ;;  %v1395_v35 = vld [vmem:[%s4895_s25 + $0x1e00] sm:$0xff]  ;;  %v482_v59 = vld [vmem:[%s4895_s25 + $0x178] sm:$0xff] }
 0x180   : > { %2102 = vmatprep.subr.mxu1 %v1404_v19  ;;  %2032 = vmatpush2.msra.mxu0 %v1275_v21  ;;  %v610_v60 = vld [vmem:[%s4895_s25 + $0x578] sm:$0xff]  ;;  %v481_v61 = vld [vmem:[%s4895_s25 + $0x170] sm:$0xff] }
 0x181   : > { %2103 = vmatpush2.msra.mxu1 %v1403_v23  ;;  %2033 = vmatprep.subr.mxu0 %v1272_v24  ;;  %v609_v62 = vld [vmem:[%s4895_s25 + $0x570] sm:$0xff]  ;;  %v478_v0 = vld [vmem:[%s4895_s25 + $0x158] sm:$0xff] }
 0x182   : > { %2104 = vmatprep.subr.mxu1 %v1400_v25  ;;  %2034 = vmatpush2.msra.mxu0 %v1271_v28  ;;  %v606_v1 = vld [vmem:[%s4895_s25 + $0x558] sm:$0xff]  ;;  %v477_v3 = vld [vmem:[%s4895_s25 + $0x150] sm:$0xff] }
 0x183   : > { %2105 = vmatpush2.msra.mxu1 %v1399_v29  ;;  %2035 = vmatprep.subr.mxu0 %v1268_v31  ;;  %v605_v4 = vld [vmem:[%s4895_s25 + $0x550] sm:$0xff]  ;;  %v474_v5 = vld [vmem:[%s4895_s25 + $0x138] sm:$0xff] }
 0x184   : > { %2106 = vmatprep.subr.mxu1 %v1396_v32  ;;  %2036 = vmatpush2.msra.mxu0 %v1267_v34  ;;  %v602_v6 = vld [vmem:[%s4895_s25 + $0x538] sm:$0xff]  ;;  %v473_v7 = vld [vmem:[%s4895_s25 + $0x130] sm:$0xff] }
 0x185   : > { %2037 = vmatprep.mubr.f32.mxu0 %v5513_v33  ;;  %2107 = vmatpush2.msra.mxu1 %v1395_v35  ;;  %v601_v8 = vld [vmem:[%s4895_s25 + $0x530] sm:$0xff]  ;;  %v470_v10 = vld [vmem:[%s4895_s25 + $0x118] sm:$0xff] }
 0x186   : > { %2038 = vmatmul.mubr.f32.vlgmr.msra.gmra.mxu0 %v5498_v20  ;;  %2108 = vmatprep.mubr.f32.mxu1 %v5519_v36  ;;  %v598_v12 = vld [vmem:[%s4895_s25 + $0x518] sm:$0xff]  ;;  %v469_v13 = vld [vmem:[%s4895_s25 + $0x110] sm:$0xff] }
 0x187   : > { %2115 = vmatprep.subr.mxu0 %v498_v37  ;;  %2186 = vmatprep.subr.mxu1 %v626_v38  ;;  %v597_v14 = vld [vmem:[%s4895_s25 + $0x510] sm:$0xff]  ;;  %v466_v15 = vld [vmem:[%s4895_s25 + $0xf8] sm:$0xff] }
 0x188   : > { %2109 = vmatmul.mubr.f32.vlgmr.msra.gmra.mxu1 %v5505_v26  ;;  %2116 = vmatpush1.msra.mxu0 %v497_v39  ;;  %v594_v16 = vld [vmem:[%s4895_s25 + $0x4f8] sm:$0xff]  ;;  %v465_v18 = vld [vmem:[%s4895_s25 + $0xf0] sm:$0xff] }
 0x189   : > { %2187 = vmatpush1.msra.mxu1 %v625_v40  ;;  %2117 = vmatprep.subr.mxu0 %v494_v41  ;;  %v593_v19 = vld [vmem:[%s4895_s25 + $0x4f0] sm:$0xff]  ;;  %v462_v21 = vld [vmem:[%s4895_s25 + $0xd8] sm:$0xff] }
 0x18a   : > { %2188 = vmatprep.subr.mxu1 %v622_v42  ;;  %2118 = vmatpush1.msra.mxu0 %v493_v45  ;;  %v590_v23 = vld [vmem:[%s4895_s25 + $0x4d8] sm:$0xff]  ;;  %v461_v24 = vld [vmem:[%s4895_s25 + $0xd0] sm:$0xff] }
 0x18b   : > { %2189 = vmatpush1.msra.mxu1 %v621_v46  ;;  %2119 = vmatprep.subr.mxu0 %v490_v47  ;;  %v589_v25 = vld [vmem:[%s4895_s25 + $0x4d0] sm:$0xff]  ;;  %v458_v28 = vld [vmem:[%s4895_s25 + $0xb8] sm:$0xff] }
 0x18c   : > { %2190 = vmatprep.subr.mxu1 %v618_v48  ;;  %2120 = vmatpush1.msra.mxu0 %v489_v50  ;;  %v586_v29 = vld [vmem:[%s4895_s25 + $0x4b8] sm:$0xff]  ;;  %v457_v31 = vld [vmem:[%s4895_s25 + $0xb0] sm:$0xff] }
 0x18d   : > { %2191 = vmatpush1.msra.mxu1 %v617_v51  ;;  %2121 = vmatprep.subr.mxu0 %v486_v52  ;;  %v585_v32 = vld [vmem:[%s4895_s25 + $0x4b0] sm:$0xff]  ;;  %v454_v34 = vld [vmem:[%s4895_s25 + $0x98] sm:$0xff] }
 0x18e   : > { %2192 = vmatprep.subr.mxu1 %v614_v54  ;;  %2122 = vmatpush1.msra.mxu0 %v485_v56  ;;  %v582_v35 = vld [vmem:[%s4895_s25 + $0x498] sm:$0xff]  ;;  %v453_v37 = vld [vmem:[%s4895_s25 + $0x90] sm:$0xff] }
 0x18f   : > { %2193 = vmatpush1.msra.mxu1 %v613_v57  ;;  %2123 = vmatprep.subr.mxu0 %v482_v59  ;;  %v581_v38 = vld [vmem:[%s4895_s25 + $0x490] sm:$0xff]  ;;  %v450_v39 = vld [vmem:[%s4895_s25 + $0x78] sm:$0xff] }
 0x190   : > { %2194 = vmatprep.subr.mxu1 %v610_v60  ;;  %2124 = vmatpush1.msra.mxu0 %v481_v61  ;;  %v578_v40 = vld [vmem:[%s4895_s25 + $0x478] sm:$0xff]  ;;  %v449_v41 = vld [vmem:[%s4895_s25 + $0x70] sm:$0xff] }
 0x191   : > { %2195 = vmatpush1.msra.mxu1 %v609_v62  ;;  %2125 = vmatprep.subr.mxu0 %v478_v0  ;;  %v577_v42 = vld [vmem:[%s4895_s25 + $0x470] sm:$0xff]  ;;  %v446_v45 = vld [vmem:[%s4895_s25 + $0x58] sm:$0xff] }
 0x192   : > { %2196 = vmatprep.subr.mxu1 %v606_v1  ;;  %2126 = vmatpush1.msra.mxu0 %v477_v3  ;;  %v574_v46 = vld [vmem:[%s4895_s25 + $0x458] sm:$0xff]  ;;  %v445_v47 = vld [vmem:[%s4895_s25 + $0x50] sm:$0xff] }
 0x193   : > { %2197 = vmatpush1.msra.mxu1 %v605_v4  ;;  %2127 = vmatprep.subr.mxu0 %v474_v5  ;;  %v573_v48 = vld [vmem:[%s4895_s25 + $0x450] sm:$0xff]  ;;  %v442_v50 = vld [vmem:[%s4895_s25 + $0x38] sm:$0xff] }
 0x194   : > { %2198 = vmatprep.subr.mxu1 %v602_v6  ;;  %2128 = vmatpush1.msra.mxu0 %v473_v7  ;;  %v570_v51 = vld [vmem:[%s4895_s25 + $0x438] sm:$0xff]  ;;  %v441_v52 = vld [vmem:[%s4895_s25 + $0x30] sm:$0xff] }
 0x195   : > { %2199 = vmatpush1.msra.mxu1 %v601_v8  ;;  %2129 = vmatprep.subr.mxu0 %v470_v10  ;;  %v569_v54 = vld [vmem:[%s4895_s25 + $0x430] sm:$0xff]  ;;  %v438_v56 = vld [vmem:[%s4895_s25 + $0x18] sm:$0xff] }
 0x196   : > { %2200 = vmatprep.subr.mxu1 %v598_v12  ;;  %2130 = vmatpush1.msra.mxu0 %v469_v13  ;;  %v566_v57 = vld [vmem:[%s4895_s25 + $0x418] sm:$0xff]  ;;  %v437_v59 = vld [vmem:[%s4895_s25 + $0x10] sm:$0xff] }
 0x197   : > { %2201 = vmatpush1.msra.mxu1 %v597_v14  ;;  %2131 = vmatprep.subr.mxu0 %v466_v15  ;;  %v565_v60 = vld [vmem:[%s4895_s25 + $0x410] sm:$0xff]  ;;  %v562_v61 = vld [vmem:[%s4895_s25 + $0x3f8] sm:$0xff] }
 0x198   : > { %2202 = vmatprep.subr.mxu1 %v594_v16  ;;  %2132 = vmatpush1.msra.mxu0 %v465_v18  ;;  %v690_v62 = vld [vmem:[%s4895_s25 + $0x7f8] sm:$0xff]  ;;  %v561_v0 = vld [vmem:[%s4895_s25 + $0x3f0] sm:$0xff] }
 0x199   : > { %2203 = vmatpush1.msra.mxu1 %v593_v19  ;;  %2133 = vmatprep.subr.mxu0 %v462_v21  ;;  %v689_v1 = vld [vmem:[%s4895_s25 + $0x7f0] sm:$0xff]  ;;  %v558_v3 = vld [vmem:[%s4895_s25 + $0x3d8] sm:$0xff] }
 0x19a   : > { %2204 = vmatprep.subr.mxu1 %v590_v23  ;;  %2134 = vmatpush1.msra.mxu0 %v461_v24  ;;  %v686_v4 = vld [vmem:[%s4895_s25 + $0x7d8] sm:$0xff]  ;;  %v557_v5 = vld [vmem:[%s4895_s25 + $0x3d0] sm:$0xff] }
 0x19b   : > { %2205 = vmatpush1.msra.mxu1 %v589_v25  ;;  %2135 = vmatprep.subr.mxu0 %v458_v28  ;;  %v685_v6 = vld [vmem:[%s4895_s25 + $0x7d0] sm:$0xff]  ;;  %v554_v7 = vld [vmem:[%s4895_s25 + $0x3b8] sm:$0xff] }
 0x19c   : > { %2206 = vmatprep.subr.mxu1 %v586_v29  ;;  %2136 = vmatpush1.msra.mxu0 %v457_v31  ;;  %v682_v8 = vld [vmem:[%s4895_s25 + $0x7b8] sm:$0xff]  ;;  %v553_v10 = vld [vmem:[%s4895_s25 + $0x3b0] sm:$0xff] }
 0x19d   : > { %2207 = vmatpush1.msra.mxu1 %v585_v32  ;;  %2137 = vmatprep.subr.mxu0 %v454_v34  ;;  %v681_v12 = vld [vmem:[%s4895_s25 + $0x7b0] sm:$0xff]  ;;  %v550_v13 = vld [vmem:[%s4895_s25 + $0x398] sm:$0xff] }
 0x19e   : > { %2208 = vmatprep.subr.mxu1 %v582_v35  ;;  %2138 = vmatpush1.msra.mxu0 %v453_v37  ;;  %v678_v14 = vld [vmem:[%s4895_s25 + $0x798] sm:$0xff]  ;;  %v549_v15 = vld [vmem:[%s4895_s25 + $0x390] sm:$0xff] }
 0x19f   : > { %2209 = vmatpush1.msra.mxu1 %v581_v38  ;;  %2139 = vmatprep.subr.mxu0 %v450_v39  ;;  %v677_v16 = vld [vmem:[%s4895_s25 + $0x790] sm:$0xff]  ;;  %v546_v18 = vld [vmem:[%s4895_s25 + $0x378] sm:$0xff] }
 0x1a0   : > { %2210 = vmatprep.subr.mxu1 %v578_v40  ;;  %2140 = vmatpush1.msra.mxu0 %v449_v41  ;;  %v674_v19 = vld [vmem:[%s4895_s25 + $0x778] sm:$0xff]  ;;  %v545_v21 = vld [vmem:[%s4895_s25 + $0x370] sm:$0xff] }
 0x1a1   : > { %2211 = vmatpush1.msra.mxu1 %v577_v42  ;;  %2141 = vmatprep.subr.mxu0 %v446_v45  ;;  %v673_v23 = vld [vmem:[%s4895_s25 + $0x770] sm:$0xff]  ;;  %v542_v24 = vld [vmem:[%s4895_s25 + $0x358] sm:$0xff] }
 0x1a2   : > { %2212 = vmatprep.subr.mxu1 %v574_v46  ;;  %2142 = vmatpush1.msra.mxu0 %v445_v47  ;;  %v670_v25 = vld [vmem:[%s4895_s25 + $0x758] sm:$0xff]  ;;  %v541_v28 = vld [vmem:[%s4895_s25 + $0x350] sm:$0xff] }
 0x1a3   : > { %2213 = vmatpush1.msra.mxu1 %v573_v48  ;;  %2143 = vmatprep.subr.mxu0 %v442_v50  ;;  %v669_v29 = vld [vmem:[%s4895_s25 + $0x750] sm:$0xff]  ;;  %v538_v31 = vld [vmem:[%s4895_s25 + $0x338] sm:$0xff] }
 0x1a4   : > { %2214 = vmatprep.subr.mxu1 %v570_v51  ;;  %2144 = vmatpush1.msra.mxu0 %v441_v52  ;;  %v666_v32 = vld [vmem:[%s4895_s25 + $0x738] sm:$0xff]  ;;  %v537_v34 = vld [vmem:[%s4895_s25 + $0x330] sm:$0xff] }
 0x1a5   : > { %2215 = vmatpush1.msra.mxu1 %v569_v54  ;;  %2145 = vmatprep.subr.mxu0 %v438_v56  ;;  %v665_v35 = vld [vmem:[%s4895_s25 + $0x730] sm:$0xff]  ;;  %v534_v37 = vld [vmem:[%s4895_s25 + $0x318] sm:$0xff] }
 0x1a6   : > { %2216 = vmatprep.subr.mxu1 %v566_v57  ;;  %2146 = vmatpush1.msra.mxu0 %v437_v59  ;;  %v662_v38 = vld [vmem:[%s4895_s25 + $0x718] sm:$0xff]  ;;  %v533_v39 = vld [vmem:[%s4895_s25 + $0x310] sm:$0xff] }
 0x1a7   : > { %2217 = vmatpush1.msra.mxu1 %v565_v60  ;;  %2147 = vmatprep.subr.mxu0 %v562_v61  ;;  %v661_v40 = vld [vmem:[%s4895_s25 + $0x710] sm:$0xff]  ;;  %v530_v41 = vld [vmem:[%s4895_s25 + $0x2f8] sm:$0xff] }
 0x1a8   : > { %2218 = vmatprep.subr.mxu1 %v690_v62  ;;  %2148 = vmatpush2.msra.mxu0 %v561_v0  ;;  %v658_v42 = vld [vmem:[%s4895_s25 + $0x6f8] sm:$0xff]  ;;  %v529_v45 = vld [vmem:[%s4895_s25 + $0x2f0] sm:$0xff] }
 0x1a9   : > { %2219 = vmatpush2.msra.mxu1 %v689_v1  ;;  %2149 = vmatprep.subr.mxu0 %v558_v3  ;;  %v657_v46 = vld [vmem:[%s4895_s25 + $0x6f0] sm:$0xff]  ;;  %v526_v47 = vld [vmem:[%s4895_s25 + $0x2d8] sm:$0xff] }
 0x1aa   : > { %2220 = vmatprep.subr.mxu1 %v686_v4  ;;  %2150 = vmatpush2.msra.mxu0 %v557_v5  ;;  %v654_v48 = vld [vmem:[%s4895_s25 + $0x6d8] sm:$0xff]  ;;  %v525_v50 = vld [vmem:[%s4895_s25 + $0x2d0] sm:$0xff] }
 0x1ab   : > { %2221 = vmatpush2.msra.mxu1 %v685_v6  ;;  %2151 = vmatprep.subr.mxu0 %v554_v7  ;;  %v653_v51 = vld [vmem:[%s4895_s25 + $0x6d0] sm:$0xff]  ;;  %v522_v52 = vld [vmem:[%s4895_s25 + $0x2b8] sm:$0xff] }
 0x1ac   : > { %2222 = vmatprep.subr.mxu1 %v682_v8  ;;  %2152 = vmatpush2.msra.mxu0 %v553_v10  ;;  %v650_v54 = vld [vmem:[%s4895_s25 + $0x6b8] sm:$0xff]  ;;  %v521_v56 = vld [vmem:[%s4895_s25 + $0x2b0] sm:$0xff] }
 0x1ad   : > { %2223 = vmatpush2.msra.mxu1 %v681_v12  ;;  %2153 = vmatprep.subr.mxu0 %v550_v13  ;;  %v649_v57 = vld [vmem:[%s4895_s25 + $0x6b0] sm:$0xff]  ;;  %v518_v59 = vld [vmem:[%s4895_s25 + $0x298] sm:$0xff] }
 0x1ae   : > { %2224 = vmatprep.subr.mxu1 %v678_v14  ;;  %2154 = vmatpush2.msra.mxu0 %v549_v15  ;;  %v646_v60 = vld [vmem:[%s4895_s25 + $0x698] sm:$0xff]  ;;  %v517_v61 = vld [vmem:[%s4895_s25 + $0x290] sm:$0xff] }
 0x1af   : > { %2225 = vmatpush2.msra.mxu1 %v677_v16  ;;  %2155 = vmatprep.subr.mxu0 %v546_v18  ;;  %v645_v62 = vld [vmem:[%s4895_s25 + $0x690] sm:$0xff]  ;;  %v514_v0 = vld [vmem:[%s4895_s25 + $0x278] sm:$0xff] }
 0x1b0   : > { %2226 = vmatprep.subr.mxu1 %v674_v19  ;;  %2156 = vmatpush2.msra.mxu0 %v545_v21  ;;  %v642_v1 = vld [vmem:[%s4895_s25 + $0x678] sm:$0xff]  ;;  %v513_v3 = vld [vmem:[%s4895_s25 + $0x270] sm:$0xff] }
 0x1b1   : > { %2227 = vmatpush2.msra.mxu1 %v673_v23  ;;  %2157 = vmatprep.subr.mxu0 %v542_v24  ;;  %v641_v4 = vld [vmem:[%s4895_s25 + $0x670] sm:$0xff]  ;;  %v510_v5 = vld [vmem:[%s4895_s25 + $0x258] sm:$0xff] }
 0x1b2   : > { %2228 = vmatprep.subr.mxu1 %v670_v25  ;;  %2158 = vmatpush2.msra.mxu0 %v541_v28  ;;  %v638_v6 = vld [vmem:[%s4895_s25 + $0x658] sm:$0xff]  ;;  %v509_v7 = vld [vmem:[%s4895_s25 + $0x250] sm:$0xff] }
 0x1b3   : > { %2229 = vmatpush2.msra.mxu1 %v669_v29  ;;  %2159 = vmatprep.subr.mxu0 %v538_v31  ;;  %v637_v8 = vld [vmem:[%s4895_s25 + $0x650] sm:$0xff]  ;;  %v506_v10 = vld [vmem:[%s4895_s25 + $0x238] sm:$0xff] }
 0x1b4   : > { %2230 = vmatprep.subr.mxu1 %v666_v32  ;;  %2160 = vmatpush2.msra.mxu0 %v537_v34  ;;  %v634_v12 = vld [vmem:[%s4895_s25 + $0x638] sm:$0xff]  ;;  %v505_v13 = vld [vmem:[%s4895_s25 + $0x230] sm:$0xff] }
 0x1b5   : > { %2231 = vmatpush2.msra.mxu1 %v665_v35  ;;  %2161 = vmatprep.subr.mxu0 %v534_v37  ;;  %v633_v14 = vld [vmem:[%s4895_s25 + $0x630] sm:$0xff]  ;;  %v502_v15 = vld [vmem:[%s4895_s25 + $0x218] sm:$0xff] }
 0x1b6   : > { %2232 = vmatprep.subr.mxu1 %v662_v38  ;;  %2162 = vmatpush2.msra.mxu0 %v533_v39  ;;  %v630_v16 = vld [vmem:[%s4895_s25 + $0x618] sm:$0xff]  ;;  %v501_v18 = vld [vmem:[%s4895_s25 + $0x210] sm:$0xff] }
 0x1b7   : > { %2233 = vmatpush2.msra.mxu1 %v661_v40  ;;  %2163 = vmatprep.subr.mxu0 %v530_v41  ;;  %v629_v19 = vld [vmem:[%s4895_s25 + $0x610] sm:$0xff]  ;;  %v754_v21 = vld [vmem:[%s4895_s25 + $0x9f8] sm:$0xff] }
 0x1b8   : > { %2234 = vmatprep.subr.mxu1 %v658_v42  ;;  %2164 = vmatpush2.msra.mxu0 %v529_v45  ;;  %v882_v23 = vld [vmem:[%s4895_s25 + $0xdf8] sm:$0xff]  ;;  %v753_v24 = vld [vmem:[%s4895_s25 + $0x9f0] sm:$0xff] }
 0x1b9   : > { %2235 = vmatpush2.msra.mxu1 %v657_v46  ;;  %2165 = vmatprep.subr.mxu0 %v526_v47  ;;  %v881_v25 = vld [vmem:[%s4895_s25 + $0xdf0] sm:$0xff]  ;;  %v750_v28 = vld [vmem:[%s4895_s25 + $0x9d8] sm:$0xff] }
 0x1ba   : > { %2236 = vmatprep.subr.mxu1 %v654_v48  ;;  %2166 = vmatpush2.msra.mxu0 %v525_v50  ;;  %v878_v29 = vld [vmem:[%s4895_s25 + $0xdd8] sm:$0xff]  ;;  %v877_v31 = vld [vmem:[%s4895_s25 + $0xdd0] sm:$0xff] }
 0x1bb   : > { %2237 = vmatpush2.msra.mxu1 %v653_v51  ;;  %2167 = vmatprep.subr.mxu0 %v522_v52  ;;  %v874_v32 = vld [vmem:[%s4895_s25 + $0xdb8] sm:$0xff]  ;;  %v741_v37 = vld [vmem:[%s4895_s25 + $0x990] sm:$0xff] }
 0x1bc   : > { %2238 = vmatprep.subr.mxu1 %v650_v54  ;;  %2168 = vmatpush2.msra.mxu0 %v521_v56  ;;  %v742_v34 = vld [vmem:[%s4895_s25 + $0x998] sm:$0xff]  ;;  %v869_v38 = vld [vmem:[%s4895_s25 + $0xd90] sm:$0xff] }
 0x1bd   : > { %2239 = vmatpush2.msra.mxu1 %v649_v57  ;;  %2169 = vmatprep.subr.mxu0 %v518_v59  ;;  %v870_v35 = vld [vmem:[%s4895_s25 + $0xd98] sm:$0xff]  ;;  %v737_v41 = vld [vmem:[%s4895_s25 + $0x970] sm:$0xff] }
 0x1be   : > { %2240 = vmatprep.subr.mxu1 %v646_v60  ;;  %2170 = vmatpush2.msra.mxu0 %v517_v61  ;;  %v738_v39 = vld [vmem:[%s4895_s25 + $0x978] sm:$0xff]  ;;  %v865_v42 = vld [vmem:[%s4895_s25 + $0xd70] sm:$0xff] }
 0x1bf   : > { %2241 = vmatpush2.msra.mxu1 %v645_v62  ;;  %2171 = vmatprep.subr.mxu0 %v514_v0  ;;  %v866_v40 = vld [vmem:[%s4895_s25 + $0xd78] sm:$0xff]  ;;  %v733_v47 = vld [vmem:[%s4895_s25 + $0x950] sm:$0xff] }
 0x1c0   : > { %2242 = vmatprep.subr.mxu1 %v642_v1  ;;  %2172 = vmatpush2.msra.mxu0 %v513_v3  ;;  %v734_v45 = vld [vmem:[%s4895_s25 + $0x958] sm:$0xff]  ;;  %v861_v48 = vld [vmem:[%s4895_s25 + $0xd50] sm:$0xff] }
 0x1c1   : > { %2243 = vmatpush2.msra.mxu1 %v641_v4  ;;  %2173 = vmatprep.subr.mxu0 %v510_v5  ;;  %v862_v46 = vld [vmem:[%s4895_s25 + $0xd58] sm:$0xff]  ;;  %v729_v52 = vld [vmem:[%s4895_s25 + $0x930] sm:$0xff] }
 0x1c2   : > { %2244 = vmatprep.subr.mxu1 %v638_v6  ;;  %2174 = vmatpush2.msra.mxu0 %v509_v7  ;;  %v730_v50 = vld [vmem:[%s4895_s25 + $0x938] sm:$0xff]  ;;  %v857_v54 = vld [vmem:[%s4895_s25 + $0xd30] sm:$0xff] }
 0x1c3   : > { %2245 = vmatpush2.msra.mxu1 %v637_v8  ;;  %2175 = vmatprep.subr.mxu0 %v506_v10  ;;  %v858_v51 = vld [vmem:[%s4895_s25 + $0xd38] sm:$0xff]  ;;  %v725_v59 = vld [vmem:[%s4895_s25 + $0x910] sm:$0xff] }
 0x1c4   : > { %2246 = vmatprep.subr.mxu1 %v634_v12  ;;  %2176 = vmatpush2.msra.mxu0 %v505_v13  ;;  %v726_v56 = vld [vmem:[%s4895_s25 + $0x918] sm:$0xff]  ;;  %v853_v60 = vld [vmem:[%s4895_s25 + $0xd10] sm:$0xff] }
 0x1c5   : > { %2247 = vmatpush2.msra.mxu1 %v633_v14  ;;  %2177 = vmatprep.subr.mxu0 %v502_v15  ;;  %v854_v57 = vld [vmem:[%s4895_s25 + $0xd18] sm:$0xff]  ;;  %v721_v0 = vld [vmem:[%s4895_s25 + $0x8f0] sm:$0xff] }
 0x1c6   : > { %2248 = vmatprep.subr.mxu1 %v630_v16  ;;  %2178 = vmatpush2.msra.mxu0 %v501_v18  ;;  %v722_v61 = vld [vmem:[%s4895_s25 + $0x8f8] sm:$0xff]  ;;  %v849_v1 = vld [vmem:[%s4895_s25 + $0xcf0] sm:$0xff] }
 0x1c7   : > { %2179 = vmatprep.mubr.f32.mxu0 %v5072_v9  ;;  %2249 = vmatpush2.msra.mxu1 %v629_v19  ;;  %v749_v9 = vld [vmem:[%s4895_s25 + $0x9d0] sm:$0xff]  ;;  %v850_v62 = vld [vmem:[%s4895_s25 + $0xcf8] sm:$0xff] }
 0x1c8   : > { %2250 = vmatprep.mubr.f32.mxu1 %v5077_v11  ;;  %2180 = vmatmul.mubr.f32.vlgmr.msra.gmra.mxu0 %v5057_v63  ;;  %v746_v11 = vld [vmem:[%s4895_s25 + $0x9b8] sm:$0xff]  ;;  %v745_v63 = vld [vmem:[%s4895_s25 + $0x9b0] sm:$0xff] }
 0x1c9   : > { %2251 = vmatmul.mubr.f32.vlgmr.msra.gmra.mxu1 %v5062_v2  ;;  %2257 = vmatprep.subr.mxu0 %v754_v21  ;;  %v873_v2 = vld [vmem:[%s4895_s25 + $0xdb0] sm:$0xff]  ;;  %v718_v3 = vld [vmem:[%s4895_s25 + $0x8d8] sm:$0xff] }
 0x1ca   : > { %2328 = vmatprep.subr.mxu1 %v882_v23  ;;  %2258 = vmatpush1.msra.mxu0 %v753_v24  ;;  %v846_v4 = vld [vmem:[%s4895_s25 + $0xcd8] sm:$0xff]  ;;  %v717_v5 = vld [vmem:[%s4895_s25 + $0x8d0] sm:$0xff] }
 0x1cb   : > { %2329 = vmatpush1.msra.mxu1 %v881_v25  ;;  %2259 = vmatprep.subr.mxu0 %v750_v28  ;;  %v845_v6 = vld [vmem:[%s4895_s25 + $0xcd0] sm:$0xff]  ;;  %v714_v7 = vld [vmem:[%s4895_s25 + $0x8b8] sm:$0xff] }
 0x1cc   : > { %2330 = vmatprep.subr.mxu1 %v878_v29  ;;  %2260 = vmatpush1.msra.mxu0 %v749_v9  ;;  %v842_v8 = vld [vmem:[%s4895_s25 + $0xcb8] sm:$0xff]  ;;  %v713_v10 = vld [vmem:[%s4895_s25 + $0x8b0] sm:$0xff] }
 0x1cd   : > { %2331 = vmatpush1.msra.mxu1 %v877_v31  ;;  %2261 = vmatprep.subr.mxu0 %v746_v11  ;;  %v841_v12 = vld [vmem:[%s4895_s25 + $0xcb0] sm:$0xff]  ;;  %v710_v13 = vld [vmem:[%s4895_s25 + $0x898] sm:$0xff] }
 0x1ce   : > { %2332 = vmatprep.subr.mxu1 %v874_v32  ;;  %2262 = vmatpush1.msra.mxu0 %v745_v63  ;;  %v838_v14 = vld [vmem:[%s4895_s25 + $0xc98] sm:$0xff]  ;;  %v709_v15 = vld [vmem:[%s4895_s25 + $0x890] sm:$0xff] }
 0x1cf   : > { %2333 = vmatpush1.msra.mxu1 %v873_v2  ;;  %2263 = vmatprep.subr.mxu0 %v742_v34  ;;  %v837_v16 = vld [vmem:[%s4895_s25 + $0xc90] sm:$0xff]  ;;  %v706_v18 = vld [vmem:[%s4895_s25 + $0x878] sm:$0xff] }
 0x1d0   : > { %2334 = vmatprep.subr.mxu1 %v870_v35  ;;  %2264 = vmatpush1.msra.mxu0 %v741_v37  ;;  %v834_v19 = vld [vmem:[%s4895_s25 + $0xc78] sm:$0xff]  ;;  %v705_v21 = vld [vmem:[%s4895_s25 + $0x870] sm:$0xff] }
 0x1d1   : > { %2335 = vmatpush1.msra.mxu1 %v869_v38  ;;  %2265 = vmatprep.subr.mxu0 %v738_v39  ;;  %v833_v23 = vld [vmem:[%s4895_s25 + $0xc70] sm:$0xff]  ;;  %v702_v24 = vld [vmem:[%s4895_s25 + $0x858] sm:$0xff] }
 0x1d2   : > { %2336 = vmatprep.subr.mxu1 %v866_v40  ;;  %2266 = vmatpush1.msra.mxu0 %v737_v41  ;;  %v830_v25 = vld [vmem:[%s4895_s25 + $0xc58] sm:$0xff]  ;;  %v701_v28 = vld [vmem:[%s4895_s25 + $0x850] sm:$0xff] }
 0x1d3   : > { %2337 = vmatpush1.msra.mxu1 %v865_v42  ;;  %2267 = vmatprep.subr.mxu0 %v734_v45  ;;  %v829_v29 = vld [vmem:[%s4895_s25 + $0xc50] sm:$0xff]  ;;  %v698_v9 = vld [vmem:[%s4895_s25 + $0x838] sm:$0xff] }
 0x1d4   : > { %2338 = vmatprep.subr.mxu1 %v862_v46  ;;  %2268 = vmatpush1.msra.mxu0 %v733_v47  ;;  %v826_v31 = vld [vmem:[%s4895_s25 + $0xc38] sm:$0xff]  ;;  %v697_v11 = vld [vmem:[%s4895_s25 + $0x830] sm:$0xff] }
 0x1d5   : > { %2339 = vmatpush1.msra.mxu1 %v861_v48  ;;  %2269 = vmatprep.subr.mxu0 %v730_v50  ;;  %v825_v32 = vld [vmem:[%s4895_s25 + $0xc30] sm:$0xff]  ;;  %v694_v63 = vld [vmem:[%s4895_s25 + $0x818] sm:$0xff] }
 0x1d6   : > { %2340 = vmatprep.subr.mxu1 %v858_v51  ;;  %2270 = vmatpush1.msra.mxu0 %v729_v52  ;;  %v822_v2 = vld [vmem:[%s4895_s25 + $0xc18] sm:$0xff]  ;;  %v693_v34 = vld [vmem:[%s4895_s25 + $0x810] sm:$0xff] }
 0x1d7   : > { %2341 = vmatpush1.msra.mxu1 %v857_v54  ;;  %2271 = vmatprep.subr.mxu0 %v726_v56  ;;  %v821_v35 = vld [vmem:[%s4895_s25 + $0xc10] sm:$0xff]  ;;  %v818_v37 = vld [vmem:[%s4895_s25 + $0xbf8] sm:$0xff] }
 0x1d8   : > { %2342 = vmatprep.subr.mxu1 %v854_v57  ;;  %2272 = vmatpush1.msra.mxu0 %v725_v59  ;;  %v946_v38 = vld [vmem:[%s4895_s25 + $0xff8] sm:$0xff]  ;;  %v817_v39 = vld [vmem:[%s4895_s25 + $0xbf0] sm:$0xff] }
 0x1d9   : > { %2343 = vmatpush1.msra.mxu1 %v853_v60  ;;  %2273 = vmatprep.subr.mxu0 %v722_v61  ;;  %v945_v40 = vld [vmem:[%s4895_s25 + $0xff0] sm:$0xff]  ;;  %v814_v41 = vld [vmem:[%s4895_s25 + $0xbd8] sm:$0xff] }
 0x1da   : > { %2344 = vmatprep.subr.mxu1 %v850_v62  ;;  %2274 = vmatpush1.msra.mxu0 %v721_v0  ;;  %v942_v42 = vld [vmem:[%s4895_s25 + $0xfd8] sm:$0xff]  ;;  %v813_v45 = vld [vmem:[%s4895_s25 + $0xbd0] sm:$0xff] }
 0x1db   : > { %2345 = vmatpush1.msra.mxu1 %v849_v1  ;;  %2275 = vmatprep.subr.mxu0 %v718_v3  ;;  %v941_v46 = vld [vmem:[%s4895_s25 + $0xfd0] sm:$0xff]  ;;  %v810_v47 = vld [vmem:[%s4895_s25 + $0xbb8] sm:$0xff] }
 0x1dc   : > { %2346 = vmatprep.subr.mxu1 %v846_v4  ;;  %2276 = vmatpush1.msra.mxu0 %v717_v5  ;;  %v938_v48 = vld [vmem:[%s4895_s25 + $0xfb8] sm:$0xff]  ;;  %v809_v50 = vld [vmem:[%s4895_s25 + $0xbb0] sm:$0xff] }
 0x1dd   : > { %2347 = vmatpush1.msra.mxu1 %v845_v6  ;;  %2277 = vmatprep.subr.mxu0 %v714_v7  ;;  %v937_v51 = vld [vmem:[%s4895_s25 + $0xfb0] sm:$0xff]  ;;  %v806_v52 = vld [vmem:[%s4895_s25 + $0xb98] sm:$0xff] }
 0x1de   : > { %2348 = vmatprep.subr.mxu1 %v842_v8  ;;  %2278 = vmatpush1.msra.mxu0 %v713_v10  ;;  %v934_v54 = vld [vmem:[%s4895_s25 + $0xf98] sm:$0xff]  ;;  %v805_v56 = vld [vmem:[%s4895_s25 + $0xb90] sm:$0xff] }
 0x1df   : > { %2349 = vmatpush1.msra.mxu1 %v841_v12  ;;  %2279 = vmatprep.subr.mxu0 %v710_v13  ;;  %v933_v57 = vld [vmem:[%s4895_s25 + $0xf90] sm:$0xff]  ;;  %v802_v59 = vld [vmem:[%s4895_s25 + $0xb78] sm:$0xff] }
 0x1e0   : > { %2350 = vmatprep.subr.mxu1 %v838_v14  ;;  %2280 = vmatpush1.msra.mxu0 %v709_v15  ;;  %v930_v60 = vld [vmem:[%s4895_s25 + $0xf78] sm:$0xff]  ;;  %v801_v61 = vld [vmem:[%s4895_s25 + $0xb70] sm:$0xff] }
 0x1e1   : > { %2351 = vmatpush1.msra.mxu1 %v837_v16  ;;  %2281 = vmatprep.subr.mxu0 %v706_v18  ;;  %v929_v62 = vld [vmem:[%s4895_s25 + $0xf70] sm:$0xff]  ;;  %v798_v0 = vld [vmem:[%s4895_s25 + $0xb58] sm:$0xff] }
 0x1e2   : > { %2352 = vmatprep.subr.mxu1 %v834_v19  ;;  %2282 = vmatpush1.msra.mxu0 %v705_v21  ;;  %v926_v1 = vld [vmem:[%s4895_s25 + $0xf58] sm:$0xff]  ;;  %v797_v3 = vld [vmem:[%s4895_s25 + $0xb50] sm:$0xff] }
 0x1e3   : > { %2353 = vmatpush1.msra.mxu1 %v833_v23  ;;  %2283 = vmatprep.subr.mxu0 %v702_v24  ;;  %v925_v4 = vld [vmem:[%s4895_s25 + $0xf50] sm:$0xff]  ;;  %v794_v5 = vld [vmem:[%s4895_s25 + $0xb38] sm:$0xff] }
 0x1e4   : > { %2354 = vmatprep.subr.mxu1 %v830_v25  ;;  %2284 = vmatpush1.msra.mxu0 %v701_v28  ;;  %v922_v6 = vld [vmem:[%s4895_s25 + $0xf38] sm:$0xff]  ;;  %v793_v7 = vld [vmem:[%s4895_s25 + $0xb30] sm:$0xff] }
 0x1e5   : > { %2355 = vmatpush1.msra.mxu1 %v829_v29  ;;  %2285 = vmatprep.subr.mxu0 %v698_v9  ;;  %v921_v8 = vld [vmem:[%s4895_s25 + $0xf30] sm:$0xff]  ;;  %v790_v10 = vld [vmem:[%s4895_s25 + $0xb18] sm:$0xff] }
 0x1e6   : > { %2356 = vmatprep.subr.mxu1 %v826_v31  ;;  %2286 = vmatpush1.msra.mxu0 %v697_v11  ;;  %v918_v12 = vld [vmem:[%s4895_s25 + $0xf18] sm:$0xff]  ;;  %v789_v13 = vld [vmem:[%s4895_s25 + $0xb10] sm:$0xff] }
 0x1e7   : > { %2357 = vmatpush1.msra.mxu1 %v825_v32  ;;  %2287 = vmatprep.subr.mxu0 %v694_v63  ;;  %v917_v14 = vld [vmem:[%s4895_s25 + $0xf10] sm:$0xff]  ;;  %v786_v15 = vld [vmem:[%s4895_s25 + $0xaf8] sm:$0xff] }
 0x1e8   : > { %2358 = vmatprep.subr.mxu1 %v822_v2  ;;  %2288 = vmatpush1.msra.mxu0 %v693_v34  ;;  %v914_v16 = vld [vmem:[%s4895_s25 + $0xef8] sm:$0xff]  ;;  %v785_v18 = vld [vmem:[%s4895_s25 + $0xaf0] sm:$0xff] }
 0x1e9   : > { %2359 = vmatpush1.msra.mxu1 %v821_v35  ;;  %2289 = vmatprep.subr.mxu0 %v818_v37  ;;  %v913_v19 = vld [vmem:[%s4895_s25 + $0xef0] sm:$0xff]  ;;  %v782_v21 = vld [vmem:[%s4895_s25 + $0xad8] sm:$0xff] }
 0x1ea   : > { %2360 = vmatprep.subr.mxu1 %v946_v38  ;;  %2290 = vmatpush2.msra.mxu0 %v817_v39  ;;  %v910_v23 = vld [vmem:[%s4895_s25 + $0xed8] sm:$0xff]  ;;  %v781_v24 = vld [vmem:[%s4895_s25 + $0xad0] sm:$0xff] }
 0x1eb   : > { %2361 = vmatpush2.msra.mxu1 %v945_v40  ;;  %2291 = vmatprep.subr.mxu0 %v814_v41  ;;  %v909_v25 = vld [vmem:[%s4895_s25 + $0xed0] sm:$0xff]  ;;  %v778_v28 = vld [vmem:[%s4895_s25 + $0xab8] sm:$0xff] }
 0x1ec   : > { %2362 = vmatprep.subr.mxu1 %v942_v42  ;;  %2292 = vmatpush2.msra.mxu0 %v813_v45  ;;  %v906_v29 = vld [vmem:[%s4895_s25 + $0xeb8] sm:$0xff]  ;;  %v777_v9 = vld [vmem:[%s4895_s25 + $0xab0] sm:$0xff] }
 0x1ed   : > { %2363 = vmatpush2.msra.mxu1 %v941_v46  ;;  %2293 = vmatprep.subr.mxu0 %v810_v47  ;;  %v905_v31 = vld [vmem:[%s4895_s25 + $0xeb0] sm:$0xff]  ;;  %v774_v11 = vld [vmem:[%s4895_s25 + $0xa98] sm:$0xff] }
 0x1ee   : > { %2364 = vmatprep.subr.mxu1 %v938_v48  ;;  %2294 = vmatpush2.msra.mxu0 %v809_v50  ;;  %v902_v32 = vld [vmem:[%s4895_s25 + $0xe98] sm:$0xff]  ;;  %v773_v63 = vld [vmem:[%s4895_s25 + $0xa90] sm:$0xff] }
 0x1ef   : > { %2365 = vmatpush2.msra.mxu1 %v937_v51  ;;  %2295 = vmatprep.subr.mxu0 %v806_v52  ;;  %v901_v2 = vld [vmem:[%s4895_s25 + $0xe90] sm:$0xff]  ;;  %v770_v34 = vld [vmem:[%s4895_s25 + $0xa78] sm:$0xff] }
 0x1f0   : > { %2366 = vmatprep.subr.mxu1 %v934_v54  ;;  %2296 = vmatpush2.msra.mxu0 %v805_v56  ;;  %v898_v35 = vld [vmem:[%s4895_s25 + $0xe78] sm:$0xff]  ;;  %v769_v37 = vld [vmem:[%s4895_s25 + $0xa70] sm:$0xff] }
 0x1f1   : > { %2367 = vmatpush2.msra.mxu1 %v933_v57  ;;  %2297 = vmatprep.subr.mxu0 %v802_v59  ;;  %v897_v38 = vld [vmem:[%s4895_s25 + $0xe70] sm:$0xff]  ;;  %v766_v39 = vld [vmem:[%s4895_s25 + $0xa58] sm:$0xff] }
 0x1f2   : > { %2368 = vmatprep.subr.mxu1 %v930_v60  ;;  %2298 = vmatpush2.msra.mxu0 %v801_v61  ;;  %v894_v40 = vld [vmem:[%s4895_s25 + $0xe58] sm:$0xff]  ;;  %v765_v41 = vld [vmem:[%s4895_s25 + $0xa50] sm:$0xff] }
 0x1f3   : > { %2369 = vmatpush2.msra.mxu1 %v929_v62  ;;  %2299 = vmatprep.subr.mxu0 %v798_v0  ;;  %v893_v42 = vld [vmem:[%s4895_s25 + $0xe50] sm:$0xff]  ;;  %v762_v45 = vld [vmem:[%s4895_s25 + $0xa38] sm:$0xff] }
 0x1f4   : > { %2370 = vmatprep.subr.mxu1 %v926_v1  ;;  %2300 = vmatpush2.msra.mxu0 %v797_v3  ;;  %v890_v46 = vld [vmem:[%s4895_s25 + $0xe38] sm:$0xff]  ;;  %v761_v47 = vld [vmem:[%s4895_s25 + $0xa30] sm:$0xff] }
 0x1f5   : > { %2371 = vmatpush2.msra.mxu1 %v925_v4  ;;  %2301 = vmatprep.subr.mxu0 %v794_v5  ;;  %v889_v48 = vld [vmem:[%s4895_s25 + $0xe30] sm:$0xff]  ;;  %v758_v50 = vld [vmem:[%s4895_s25 + $0xa18] sm:$0xff] }
 0x1f6   : > { %2372 = vmatprep.subr.mxu1 %v922_v6  ;;  %2302 = vmatpush2.msra.mxu0 %v793_v7  ;;  %v886_v51 = vld [vmem:[%s4895_s25 + $0xe18] sm:$0xff]  ;;  %v757_v52 = vld [vmem:[%s4895_s25 + $0xa10] sm:$0xff] }
 0x1f7   : > { %2373 = vmatpush2.msra.mxu1 %v921_v8  ;;  %2303 = vmatprep.subr.mxu0 %v790_v10  ;;  %v885_v54 = vld [vmem:[%s4895_s25 + $0xe10] sm:$0xff]  ;;  %v1010_v56 = vld [vmem:[%s4895_s25 + $0x11f8] sm:$0xff] }
 0x1f8   : > { %2374 = vmatprep.subr.mxu1 %v918_v12  ;;  %2304 = vmatpush2.msra.mxu0 %v789_v13  ;;  %v1138_v57 = vld [vmem:[%s4895_s25 + $0x15f8] sm:$0xff]  ;;  %v1009_v59 = vld [vmem:[%s4895_s25 + $0x11f0] sm:$0xff] }
 0x1f9   : > { %2375 = vmatpush2.msra.mxu1 %v917_v14  ;;  %2305 = vmatprep.subr.mxu0 %v786_v15  ;;  %v1137_v60 = vld [vmem:[%s4895_s25 + $0x15f0] sm:$0xff]  ;;  %v1006_v61 = vld [vmem:[%s4895_s25 + $0x11d8] sm:$0xff] }
 0x1fa   : > { %2376 = vmatprep.subr.mxu1 %v914_v16  ;;  %2306 = vmatpush2.msra.mxu0 %v785_v18  ;;  %v1134_v62 = vld [vmem:[%s4895_s25 + $0x15d8] sm:$0xff]  ;;  %v1133_v0 = vld [vmem:[%s4895_s25 + $0x15d0] sm:$0xff] }
 0x1fb   : > { %2377 = vmatpush2.msra.mxu1 %v913_v19  ;;  %2307 = vmatprep.subr.mxu0 %v782_v21  ;;  %v1130_v1 = vld [vmem:[%s4895_s25 + $0x15b8] sm:$0xff]  ;;  %v1129_v3 = vld [vmem:[%s4895_s25 + $0x15b0] sm:$0xff] }
 0x1fc   : > { %2378 = vmatprep.subr.mxu1 %v910_v23  ;;  %2308 = vmatpush2.msra.mxu0 %v781_v24  ;;  %v998_v4 = vld [vmem:[%s4895_s25 + $0x1198] sm:$0xff]  ;;  %v997_v5 = vld [vmem:[%s4895_s25 + $0x1190] sm:$0xff] }
 0x1fd   : > { %2379 = vmatpush2.msra.mxu1 %v909_v25  ;;  %2309 = vmatprep.subr.mxu0 %v778_v28  ;;  %v1125_v6 = vld [vmem:[%s4895_s25 + $0x1590] sm:$0xff]  ;;  %v994_v7 = vld [vmem:[%s4895_s25 + $0x1178] sm:$0xff] }
 0x1fe   : > { %2380 = vmatprep.subr.mxu1 %v906_v29  ;;  %2310 = vmatpush2.msra.mxu0 %v777_v9  ;;  %v1122_v8 = vld [vmem:[%s4895_s25 + $0x1578] sm:$0xff]  ;;  %v993_v10 = vld [vmem:[%s4895_s25 + $0x1170] sm:$0xff] }
 0x1ff   : > { %2381 = vmatpush2.msra.mxu1 %v905_v31  ;;  %2311 = vmatprep.subr.mxu0 %v774_v11  ;;  %v1121_v12 = vld [vmem:[%s4895_s25 + $0x1570] sm:$0xff]  ;;  %v990_v13 = vld [vmem:[%s4895_s25 + $0x1158] sm:$0xff] }
 0x200   : > { %2382 = vmatprep.subr.mxu1 %v902_v32  ;;  %2312 = vmatpush2.msra.mxu0 %v773_v63  ;;  %v1118_v14 = vld [vmem:[%s4895_s25 + $0x1558] sm:$0xff]  ;;  %v989_v15 = vld [vmem:[%s4895_s25 + $0x1150] sm:$0xff] }
 0x201   : > { %2383 = vmatpush2.msra.mxu1 %v901_v2  ;;  %2313 = vmatprep.subr.mxu0 %v770_v34  ;;  %v1117_v16 = vld [vmem:[%s4895_s25 + $0x1550] sm:$0xff]  ;;  %v986_v18 = vld [vmem:[%s4895_s25 + $0x1138] sm:$0xff] }
 0x202   : > { %2384 = vmatprep.subr.mxu1 %v898_v35  ;;  %2314 = vmatpush2.msra.mxu0 %v769_v37  ;;  %v1114_v19 = vld [vmem:[%s4895_s25 + $0x1538] sm:$0xff]  ;;  %v985_v21 = vld [vmem:[%s4895_s25 + $0x1130] sm:$0xff] }
 0x203   : > { %2385 = vmatpush2.msra.mxu1 %v897_v38  ;;  %2315 = vmatprep.subr.mxu0 %v766_v39  ;;  %v1113_v23 = vld [vmem:[%s4895_s25 + $0x1530] sm:$0xff]  ;;  %v982_v24 = vld [vmem:[%s4895_s25 + $0x1118] sm:$0xff] }
 0x204   : > { %2386 = vmatprep.subr.mxu1 %v894_v40  ;;  %2316 = vmatpush2.msra.mxu0 %v765_v41  ;;  %v1110_v25 = vld [vmem:[%s4895_s25 + $0x1518] sm:$0xff]  ;;  %v981_v28 = vld [vmem:[%s4895_s25 + $0x1110] sm:$0xff] }
 0x205   : > { %2387 = vmatpush2.msra.mxu1 %v893_v42  ;;  %2317 = vmatprep.subr.mxu0 %v762_v45  ;;  %v1109_v29 = vld [vmem:[%s4895_s25 + $0x1510] sm:$0xff]  ;;  %v978_v9 = vld [vmem:[%s4895_s25 + $0x10f8] sm:$0xff] }
 0x206   : > { %2388 = vmatprep.subr.mxu1 %v890_v46  ;;  %2318 = vmatpush2.msra.mxu0 %v761_v47  ;;  %v1106_v31 = vld [vmem:[%s4895_s25 + $0x14f8] sm:$0xff]  ;;  %v977_v11 = vld [vmem:[%s4895_s25 + $0x10f0] sm:$0xff] }
 0x207   : > { %2389 = vmatpush2.msra.mxu1 %v889_v48  ;;  %2319 = vmatprep.subr.mxu0 %v758_v50  ;;  %v1105_v32 = vld [vmem:[%s4895_s25 + $0x14f0] sm:$0xff]  ;;  %v974_v63 = vld [vmem:[%s4895_s25 + $0x10d8] sm:$0xff] }
 0x208   : > { %2390 = vmatprep.subr.mxu1 %v886_v51  ;;  %2320 = vmatpush2.msra.mxu0 %v757_v52  ;;  %v1102_v2 = vld [vmem:[%s4895_s25 + $0x14d8] sm:$0xff]  ;;  %v973_v34 = vld [vmem:[%s4895_s25 + $0x10d0] sm:$0xff] }
 0x209   : > { %2321 = vmatprep.mubr.f32.mxu0 %v5219_v27  ;;  %2391 = vmatpush2.msra.mxu1 %v885_v54  ;;  %v1005_v27 = vld [vmem:[%s4895_s25 + $0x11d0] sm:$0xff]  ;;  %v970_v37 = vld [vmem:[%s4895_s25 + $0x10b8] sm:$0xff] }
 0x20a   : > { %2322 = vmatmul.mubr.f32.vlgmr.msra.gmra.mxu0 %v5204_v17  ;;  %2392 = vmatprep.mubr.f32.mxu1 %v5225_v30  ;;  %v1002_v17 = vld [vmem:[%s4895_s25 + $0x11b8] sm:$0xff]  ;;  %v1001_v30 = vld [vmem:[%s4895_s25 + $0x11b0] sm:$0xff] }
 0x20b   : > { %2399 = vmatprep.subr.mxu0 %v1010_v56  ;;  %2470 = vmatprep.subr.mxu1 %v1138_v57  ;;  %v1101_v35 = vld [vmem:[%s4895_s25 + $0x14d0] sm:$0xff]  ;;  %v1098_v38 = vld [vmem:[%s4895_s25 + $0x14b8] sm:$0xff] }
 0x20c   : > { %2393 = vmatmul.mubr.f32.vlgmr.msra.gmra.mxu1 %v5211_v22  ;;  %2400 = vmatpush1.msra.mxu0 %v1009_v59  ;;  %v1126_v22 = vld [vmem:[%s4895_s25 + $0x1598] sm:$0xff]  ;;  %v969_v39 = vld [vmem:[%s4895_s25 + $0x10b0] sm:$0xff] }
 0x20d   : > { %2471 = vmatpush1.msra.mxu1 %v1137_v60  ;;  %2401 = vmatprep.subr.mxu0 %v1006_v61  ;;  %v1097_v40 = vld [vmem:[%s4895_s25 + $0x14b0] sm:$0xff]  ;;  %v966_v41 = vld [vmem:[%s4895_s25 + $0x1098] sm:$0xff] }
 0x20e   : > { %2472 = vmatprep.subr.mxu1 %v1134_v62  ;;  %2402 = vmatpush1.msra.mxu0 %v1005_v27  ;;  %v1094_v42 = vld [vmem:[%s4895_s25 + $0x1498] sm:$0xff]  ;;  %v965_v45 = vld [vmem:[%s4895_s25 + $0x1090] sm:$0xff] }
 0x20f   : > { %2473 = vmatpush1.msra.mxu1 %v1133_v0  ;;  %2403 = vmatprep.subr.mxu0 %v1002_v17  ;;  %v1093_v46 = vld [vmem:[%s4895_s25 + $0x1490] sm:$0xff]  ;;  %v962_v47 = vld [vmem:[%s4895_s25 + $0x1078] sm:$0xff] }
 0x210   : > { %2474 = vmatprep.subr.mxu1 %v1130_v1  ;;  %2404 = vmatpush1.msra.mxu0 %v1001_v30  ;;  %v1090_v48 = vld [vmem:[%s4895_s25 + $0x1478] sm:$0xff]  ;;  %v961_v50 = vld [vmem:[%s4895_s25 + $0x1070] sm:$0xff] }
 0x211   : > { %2475 = vmatpush1.msra.mxu1 %v1129_v3  ;;  %2405 = vmatprep.subr.mxu0 %v998_v4  ;;  %v1089_v51 = vld [vmem:[%s4895_s25 + $0x1470] sm:$0xff]  ;;  %v958_v52 = vld [vmem:[%s4895_s25 + $0x1058] sm:$0xff] }
 0x212   : > { %2476 = vmatprep.subr.mxu1 %v1126_v22  ;;  %2406 = vmatpush1.msra.mxu0 %v997_v5  ;;  %v1086_v54 = vld [vmem:[%s4895_s25 + $0x1458] sm:$0xff]  ;;  %v957_v56 = vld [vmem:[%s4895_s25 + $0x1050] sm:$0xff] }
 0x213   : > { %2477 = vmatpush1.msra.mxu1 %v1125_v6  ;;  %2407 = vmatprep.subr.mxu0 %v994_v7  ;;  %v1085_v57 = vld [vmem:[%s4895_s25 + $0x1450] sm:$0xff]  ;;  %v954_v59 = vld [vmem:[%s4895_s25 + $0x1038] sm:$0xff] }
 0x214   : > { %2478 = vmatprep.subr.mxu1 %v1122_v8  ;;  %2408 = vmatpush1.msra.mxu0 %v993_v10  ;;  %v1082_v60 = vld [vmem:[%s4895_s25 + $0x1438] sm:$0xff]  ;;  %v953_v61 = vld [vmem:[%s4895_s25 + $0x1030] sm:$0xff] }
 0x215   : > { %2479 = vmatpush1.msra.mxu1 %v1121_v12  ;;  %2409 = vmatprep.subr.mxu0 %v990_v13  ;;  %v1081_v62 = vld [vmem:[%s4895_s25 + $0x1430] sm:$0xff]  ;;  %v950_v27 = vld [vmem:[%s4895_s25 + $0x1018] sm:$0xff] }
 0x216   : > { %2480 = vmatprep.subr.mxu1 %v1118_v14  ;;  %2410 = vmatpush1.msra.mxu0 %v989_v15  ;;  %v1078_v0 = vld [vmem:[%s4895_s25 + $0x1418] sm:$0xff]  ;;  %v949_v17 = vld [vmem:[%s4895_s25 + $0x1010] sm:$0xff] }
 0x217   : > { %2481 = vmatpush1.msra.mxu1 %v1117_v16  ;;  %2411 = vmatprep.subr.mxu0 %v986_v18  ;;  %v1077_v1 = vld [vmem:[%s4895_s25 + $0x1410] sm:$0xff]  ;;  %v1074_v30 = vld [vmem:[%s4895_s25 + $0x13f8] sm:$0xff]  ;;  %v1613_v18 = vpop.f32.mrf.mxu0 }
 0x218   : > { %2482 = vmatprep.subr.mxu1 %v1114_v19  ;;  %2412 = vmatpush1.msra.mxu0 %v985_v21  ;;  %v1202_v3 = vld [vmem:[%s4895_s25 + $0x17f8] sm:$0xff]  ;;  %v1073_v4 = vld [vmem:[%s4895_s25 + $0x13f0] sm:$0xff] }
 0x219   : > { %2483 = vmatpush1.msra.mxu1 %v1113_v23  ;;  %2413 = vmatprep.subr.mxu0 %v982_v24  ;;  %v1201_v22 = vld [vmem:[%s4895_s25 + $0x17f0] sm:$0xff]  ;;  %v1070_v5 = vld [vmem:[%s4895_s25 + $0x13d8] sm:$0xff] }
 0x21a   : > { %2484 = vmatprep.subr.mxu1 %v1110_v25  ;;  %2414 = vmatpush1.msra.mxu0 %v981_v28  ;;  %v1198_v6 = vld [vmem:[%s4895_s25 + $0x17d8] sm:$0xff]  ;;  %v1069_v7 = vld [vmem:[%s4895_s25 + $0x13d0] sm:$0xff] }
 0x21b   : > { %2485 = vmatpush1.msra.mxu1 %v1109_v29  ;;  %2415 = vmatprep.subr.mxu0 %v978_v9  ;;  %v1197_v8 = vld [vmem:[%s4895_s25 + $0x17d0] sm:$0xff]  ;;  %v1066_v10 = vld [vmem:[%s4895_s25 + $0x13b8] sm:$0xff] }
 0x21c   : > { %2486 = vmatprep.subr.mxu1 %v1106_v31  ;;  %2416 = vmatpush1.msra.mxu0 %v977_v11  ;;  %v1194_v12 = vld [vmem:[%s4895_s25 + $0x17b8] sm:$0xff]  ;;  %v1065_v13 = vld [vmem:[%s4895_s25 + $0x13b0] sm:$0xff]  ;;  %v1684_v31 = vpop.f32.mrf.mxu1  ;;  %v1615_v11 = vpop.f32.mrf.mxu0 }
 0x21d   : > { %2487 = vmatpush1.msra.mxu1 %v1105_v32  ;;  %2417 = vmatprep.subr.mxu0 %v974_v63  ;;  %v1193_v14 = vld [vmem:[%s4895_s25 + $0x17b0] sm:$0xff]  ;;  %v1062_v15 = vld [vmem:[%s4895_s25 + $0x1398] sm:$0xff] }
 0x21e   : > { %2488 = vmatprep.subr.mxu1 %v1102_v2  ;;  %2418 = vmatpush1.msra.mxu0 %v973_v34  ;;  %v1190_v16 = vld [vmem:[%s4895_s25 + $0x1798] sm:$0xff]  ;;  %v1061_v19 = vld [vmem:[%s4895_s25 + $0x1390] sm:$0xff] }
 0x21f   : > { %2489 = vmatpush1.msra.mxu1 %v1101_v35  ;;  %2419 = vmatprep.subr.mxu0 %v970_v37  ;;  %v1189_v21 = vld [vmem:[%s4895_s25 + $0x1790] sm:$0xff]  ;;  %v1058_v23 = vld [vmem:[%s4895_s25 + $0x1378] sm:$0xff]  ;;  %v1755_v35 = vpop.f32.mrf.mxu0 }
 0x220   : > { %2490 = vmatprep.subr.mxu1 %v1098_v38  ;;  %2420 = vmatpush1.msra.mxu0 %v969_v39  ;;  %v1186_v24 = vld [vmem:[%s4895_s25 + $0x1778] sm:$0xff]  ;;  %v1057_v25 = vld [vmem:[%s4895_s25 + $0x1370] sm:$0xff] }
 0x221   : > { %2491 = vmatpush1.msra.mxu1 %v1097_v40  ;;  %2421 = vmatprep.subr.mxu0 %v966_v41  ;;  %v1185_v28 = vld [vmem:[%s4895_s25 + $0x1770] sm:$0xff]  ;;  %v1054_v29 = vld [vmem:[%s4895_s25 + $0x1358] sm:$0xff]  ;;  %v1686_v41 = vpop.f32.mrf.mxu1 }
 0x222   : > { %2492 = vmatprep.subr.mxu1 %v1094_v42  ;;  %2422 = vmatpush1.msra.mxu0 %v965_v45  ;;  %v1182_v9 = vld [vmem:[%s4895_s25 + $0x1758] sm:$0xff]  ;;  %v1053_v32 = vld [vmem:[%s4895_s25 + $0x1350] sm:$0xff] }
 0x223   : > { %2493 = vmatpush1.msra.mxu1 %v1093_v46  ;;  %2423 = vmatprep.subr.mxu0 %v962_v47  ;;  %v1181_v63 = vld [vmem:[%s4895_s25 + $0x1750] sm:$0xff]  ;;  %v1050_v2 = vld [vmem:[%s4895_s25 + $0x1338] sm:$0xff]  ;;  %v1685_v46 = vadd.f32 %v1684_v31, %v1613_v18 }
 0x224   : > { %2494 = vmatprep.subr.mxu1 %v1090_v48  ;;  %2424 = vmatpush1.msra.mxu0 %v961_v50  ;;  %v1178_v34 = vld [vmem:[%s4895_s25 + $0x1738] sm:$0xff]  ;;  %v1049_v37 = vld [vmem:[%s4895_s25 + $0x1330] sm:$0xff]  ;;  %v1826_v50 = vpop.f32.mrf.mxu1 }
 0x225   : > { %2495 = vmatpush1.msra.mxu1 %v1089_v51  ;;  %2425 = vmatprep.subr.mxu0 %v958_v52  ;;  %v1177_v38 = vld [vmem:[%s4895_s25 + $0x1730] sm:$0xff]  ;;  %v1046_v39 = vld [vmem:[%s4895_s25 + $0x1318] sm:$0xff]  ;;  %v1757_v51 = vpop.f32.mrf.mxu0 }
 0x226   : > { %2496 = vmatprep.subr.mxu1 %v1086_v54  ;;  %2426 = vmatpush1.msra.mxu0 %v957_v56  ;;  %v1174_v40 = vld [vmem:[%s4895_s25 + $0x1718] sm:$0xff]  ;;  %v1045_v42 = vld [vmem:[%s4895_s25 + $0x1310] sm:$0xff]  ;;  %v1687_v56 = vadd.f32 %v1686_v41, %v1615_v11 }
 0x227   : > { %2497 = vmatpush1.msra.mxu1 %v1085_v57  ;;  %2427 = vmatprep.subr.mxu0 %v954_v59  ;;  %v1173_v45 = vld [vmem:[%s4895_s25 + $0x1710] sm:$0xff]  ;;  %v1042_v47 = vld [vmem:[%s4895_s25 + $0x12f8] sm:$0xff]  ;;  %v1756_v57 = vadd.f32 %v1755_v35, %v1685_v46 }
 0x228   : > { %2498 = vmatprep.subr.mxu1 %v1082_v60  ;;  %2428 = vmatpush1.msra.mxu0 %v953_v61  ;;  %v1170_v48 = vld [vmem:[%s4895_s25 + $0x16f8] sm:$0xff]  ;;  %v1041_v52 = vld [vmem:[%s4895_s25 + $0x12f0] sm:$0xff]  ;;  %v1897_v61 = vpop.f32.mrf.mxu0 }
 0x229   : > { %2499 = vmatpush1.msra.mxu1 %v1081_v62  ;;  %2429 = vmatprep.subr.mxu0 %v950_v27  ;;  %v1169_v54 = vld [vmem:[%s4895_s25 + $0x16f0] sm:$0xff]  ;;  %v1038_v59 = vld [vmem:[%s4895_s25 + $0x12d8] sm:$0xff] }
 0x22a   : > { %2500 = vmatprep.subr.mxu1 %v1078_v0  ;;  %2430 = vmatpush1.msra.mxu0 %v949_v17  ;;  %v1166_v60 = vld [vmem:[%s4895_s25 + $0x16d8] sm:$0xff]  ;;  %v1037_v62 = vld [vmem:[%s4895_s25 + $0x12d0] sm:$0xff]  ;;  %v1758_v0 = vadd.f32 %v1757_v51, %v1687_v56 }
 0x22b   : > { %2501 = vmatpush1.msra.mxu1 %v1077_v1  ;;  %2431 = vmatprep.subr.mxu0 %v1074_v30  ;;  %v1165_v27 = vld [vmem:[%s4895_s25 + $0x16d0] sm:$0xff]  ;;  %v1034_v17 = vld [vmem:[%s4895_s25 + $0x12b8] sm:$0xff]  ;;  %v1828_v30 = vpop.f32.mrf.mxu1 }
 0x22c   : > { %2502 = vmatprep.subr.mxu1 %v1202_v3  ;;  %2432 = vmatpush2.msra.mxu0 %v1073_v4  ;;  %v1162_v1 = vld [vmem:[%s4895_s25 + $0x16b8] sm:$0xff]  ;;  %v1033_v3 = vld [vmem:[%s4895_s25 + $0x12b0] sm:$0xff] }
 0x22d   : > { %2503 = vmatpush2.msra.mxu1 %v1201_v22  ;;  %2433 = vmatprep.subr.mxu0 %v1070_v5  ;;  %v1161_v4 = vld [vmem:[%s4895_s25 + $0x16b0] sm:$0xff]  ;;  %v1827_v22 = vadd.f32 %v1826_v50, %v1756_v57  ;;  %v1030_v5 = vld [vmem:[%s4895_s25 + $0x1298] sm:$0xff] }
 0x22e   : > { %2504 = vmatprep.subr.mxu1 %v1198_v6  ;;  %2434 = vmatpush2.msra.mxu0 %v1069_v7  ;;  %v1158_v6 = vld [vmem:[%s4895_s25 + $0x1698] sm:$0xff]  ;;  %v1968_v7 = vpop.f32.mrf.mxu1  ;;  %v1025_v18 = vld [vmem:[%s4895_s25 + $0x1270] sm:$0xff] }
 0x22f   : > { %2505 = vmatpush2.msra.mxu1 %v1197_v8  ;;  %2435 = vmatprep.subr.mxu0 %v1066_v10  ;;  %v1899_v8 = vpop.f32.mrf.mxu0  ;;  %v1029_v10 = vld [vmem:[%s4895_s25 + $0x1290] sm:$0xff]  ;;  %v1018_v31 = vld [vmem:[%s4895_s25 + $0x1238] sm:$0xff] }
 0x230   : > { %2506 = vmatprep.subr.mxu1 %v1194_v12  ;;  %2436 = vmatpush2.msra.mxu0 %v1065_v13  ;;  %v1157_v12 = vld [vmem:[%s4895_s25 + $0x1690] sm:$0xff]  ;;  %v1829_v13 = vadd.f32 %v1828_v30, %v1758_v0  ;;  %v1146_v11 = vld [vmem:[%s4895_s25 + $0x1638] sm:$0xff] }
 0x231   : > { %2507 = vmatpush2.msra.mxu1 %v1193_v14  ;;  %2437 = vmatprep.subr.mxu0 %v1062_v15  ;;  %v1898_v14 = vadd.f32 %v1897_v61, %v1827_v22  ;;  %v1026_v15 = vld [vmem:[%s4895_s25 + $0x1278] sm:$0xff]  ;;  %v1385_v61 = vld [vmem:[%s4895_s25 + $0x1db0] sm:$0xff] }
 0x232   : > { %2508 = vmatprep.subr.mxu1 %v1190_v16  ;;  %2438 = vmatpush2.msra.mxu0 %v1061_v19  ;;  %v1154_v16 = vld [vmem:[%s4895_s25 + $0x1678] sm:$0xff]  ;;  %v1153_v19 = vld [vmem:[%s4895_s25 + $0x1670] sm:$0xff] }
 0x233   : > { %2509 = vmatpush2.msra.mxu1 %v1189_v21  ;;  %2439 = vmatprep.subr.mxu0 %v1058_v23  ;;  %v1900_v21 = vadd.f32 %v1899_v8, %v1829_v13  ;;  %v1022_v23 = vld [vmem:[%s4895_s25 + $0x1258] sm:$0xff]  ;;  %v1381_v0 = vld [vmem:[%s4895_s25 + $0x1d90] sm:$0xff] }
 0x234   : > { %2510 = vmatprep.subr.mxu1 %v1186_v24  ;;  %2440 = vmatpush2.msra.mxu0 %v1057_v25  ;;  %v1150_v24 = vld [vmem:[%s4895_s25 + $0x1658] sm:$0xff]  ;;  %v1970_v25 = vpop.f32.mrf.mxu1  ;;  %v1249_v30 = vld [vmem:[%s4895_s25 + $0x1970] sm:$0xff] }
 0x235   : > { %2511 = vmatpush2.msra.mxu1 %v1185_v28  ;;  %2441 = vmatprep.subr.mxu0 %v1054_v29  ;;  %v1021_v28 = vld [vmem:[%s4895_s25 + $0x1250] sm:$0xff]  ;;  %v1014_v35 = vld [vmem:[%s4895_s25 + $0x1218] sm:$0xff] }
 0x236   : > { %2512 = vmatprep.subr.mxu1 %v1182_v9  ;;  %2442 = vmatpush2.msra.mxu0 %v1053_v32  ;;  %v1149_v29 = vld [vmem:[%s4895_s25 + $0x1650] sm:$0xff]  ;;  %v1969_v9 = vadd.f32 %v1968_v7, %v1898_v14  ;;  %v1394_v50 = vld [vmem:[%s4895_s25 + $0x1df8] sm:$0xff] }
 0x237   : > { %2513 = vmatpush2.msra.mxu1 %v1181_v63  ;;  %2443 = vmatprep.subr.mxu0 %v1050_v2  ;;  %v1017_v32 = vld [vmem:[%s4895_s25 + $0x1230] sm:$0xff]  ;;  %v1262_v56 = vld [vmem:[%s4895_s25 + $0x19d8] sm:$0xff] }
 0x238   : > { %2514 = vmatprep.subr.mxu1 %v1178_v34  ;;  %2444 = vmatpush2.msra.mxu0 %v1049_v37  ;;  %v1145_v63 = vld [vmem:[%s4895_s25 + $0x1630] sm:$0xff]  ;;  %v1971_v34 = vadd.f32 %v1970_v25, %v1900_v21  ;;  %v1142_v37 = vld [vmem:[%s4895_s25 + $0x1618] sm:$0xff] }
 0x239   : > { %2515 = vmatpush2.msra.mxu1 %v1177_v38  ;;  %2445 = vmatprep.subr.mxu0 %v1046_v39  ;;  %v1013_v39 = vld [vmem:[%s4895_s25 + $0x1210] sm:$0xff]  ;;  %v1390_v57 = vld [vmem:[%s4895_s25 + $0x1dd8] sm:$0xff] }
 0x23a   : > { %2516 = vmatprep.subr.mxu1 %v1174_v40  ;;  %2446 = vmatpush2.msra.mxu0 %v1045_v42  ;;  %v1141_v42 = vld [vmem:[%s4895_s25 + $0x1610] sm:$0xff]  ;;  %v1374_v22 = vld [vmem:[%s4895_s25 + $0x1d58] sm:$0xff] }
 0x23b   : > { %2517 = vmatpush2.msra.mxu1 %v1173_v45  ;;  %2447 = vmatprep.subr.mxu0 %v1042_v47  ;;  %v1266_v47 = vld [vmem:[%s4895_s25 + $0x19f8] sm:$0xff]  ;;  %v1233_v21 = vld [vmem:[%s4895_s25 + $0x18f0] sm:$0xff] }
 0x23c   : > { %2518 = vmatprep.subr.mxu1 %v1170_v48  ;;  %2448 = vmatpush2.msra.mxu0 %v1041_v52  ;;  %v1265_v52 = vld [vmem:[%s4895_s25 + $0x19f0] sm:$0xff]  ;;  %v1242_v7 = vld [vmem:[%s4895_s25 + $0x1938] sm:$0xff] }
 0x23d   : > { %2519 = vmatpush2.msra.mxu1 %v1169_v54  ;;  %2449 = vmatprep.subr.mxu0 %v1038_v59  ;;  %v1393_v54 = vld [vmem:[%s4895_s25 + $0x1df0] sm:$0xff]  ;;  %v1370_v8 = vld [vmem:[%s4895_s25 + $0x1d38] sm:$0xff] }
 0x23e   : > { %2520 = vmatprep.subr.mxu1 %v1166_v60  ;;  %2450 = vmatpush2.msra.mxu0 %v1037_v62  ;;  %v1389_v59 = vld [vmem:[%s4895_s25 + $0x1dd0] sm:$0xff]  ;;  %v1386_v60 = vld [vmem:[%s4895_s25 + $0x1db8] sm:$0xff] }
 0x23f   : > { %2521 = vmatpush2.msra.mxu1 %v1165_v27  ;;  %2451 = vmatprep.subr.mxu0 %v1034_v17  ;;  %v1254_v62 = vld [vmem:[%s4895_s25 + $0x1998] sm:$0xff]  ;;  %v1253_v27 = vld [vmem:[%s4895_s25 + $0x1990] sm:$0xff] }
 0x240   : > { %2522 = vmatprep.subr.mxu1 %v1162_v1  ;;  %2452 = vmatpush2.msra.mxu0 %v1033_v3  ;;  %v1250_v17 = vld [vmem:[%s4895_s25 + $0x1978] sm:$0xff]  ;;  %v1377_v3 = vld [vmem:[%s4895_s25 + $0x1d70] sm:$0xff] }
 0x241   : > { %2523 = vmatpush2.msra.mxu1 %v1161_v4  ;;  %2453 = vmatprep.subr.mxu0 %v1030_v5  ;;  %v1378_v1 = vld [vmem:[%s4895_s25 + $0x1d78] sm:$0xff]  ;;  %v1245_v5 = vld [vmem:[%s4895_s25 + $0x1950] sm:$0xff] }
 0x242   : > { %2524 = vmatprep.subr.mxu1 %v1158_v6  ;;  %2454 = vmatpush2.msra.mxu0 %v1029_v10  ;;  %v1246_v4 = vld [vmem:[%s4895_s25 + $0x1958] sm:$0xff]  ;;  %v1373_v6 = vld [vmem:[%s4895_s25 + $0x1d50] sm:$0xff] }
 0x243   : > { %2525 = vmatpush2.msra.mxu1 %v1157_v12  ;;  %2455 = vmatprep.subr.mxu0 %v1026_v15  ;;  %v1241_v10 = vld [vmem:[%s4895_s25 + $0x1930] sm:$0xff]  ;;  %v1238_v13 = vld [vmem:[%s4895_s25 + $0x1918] sm:$0xff] }
 0x244   : > { %2526 = vmatprep.subr.mxu1 %v1154_v16  ;;  %2456 = vmatpush2.msra.mxu0 %v1025_v18  ;;  %v1369_v12 = vld [vmem:[%s4895_s25 + $0x1d30] sm:$0xff]  ;;  %v1366_v14 = vld [vmem:[%s4895_s25 + $0x1d18] sm:$0xff] }
 0x245   : > { %2527 = vmatpush2.msra.mxu1 %v1153_v19  ;;  %2457 = vmatprep.subr.mxu0 %v1022_v23  ;;  %v1237_v15 = vld [vmem:[%s4895_s25 + $0x1910] sm:$0xff]  ;;  %v1234_v18 = vld [vmem:[%s4895_s25 + $0x18f8] sm:$0xff] }
 0x246   : > { %2528 = vmatprep.subr.mxu1 %v1150_v24  ;;  %v2039_v2 = vpop.f32.mrf.mxu0  ;;  %2458 = vmatpush2.msra.mxu0 %v1021_v28  ;;  %v1365_v16 = vld [vmem:[%s4895_s25 + $0x1d10] sm:$0xff]  ;;  %v1362_v19 = vld [vmem:[%s4895_s25 + $0x1cf8] sm:$0xff] }
 0x247   : > { %2529 = vmatpush2.msra.mxu1 %v1149_v29  ;;  %v2040_v38 = vadd.f32 %v2039_v2, %v1969_v9  ;;  %2459 = vmatprep.subr.mxu0 %v1018_v31  ;;  %v1361_v23 = vld [vmem:[%s4895_s25 + $0x1cf0] sm:$0xff]  ;;  %v1230_v24 = vld [vmem:[%s4895_s25 + $0x18d8] sm:$0xff] }
 0x248   : > { %2530 = vmatprep.subr.mxu1 %v1146_v11  ;;  %v2110_v40 = vpop.f32.mrf.mxu1  ;;  %v2041_v41 = vpop.f32.mrf.mxu0  ;;  %2460 = vmatpush2.msra.mxu0 %v1017_v32  ;;  %v1358_v25 = vld [vmem:[%s4895_s25 + $0x1cd8] sm:$0xff]  ;;  %v1229_v28 = vld [vmem:[%s4895_s25 + $0x18d0] sm:$0xff] }
 0x249   : > { %2531 = vmatpush2.msra.mxu1 %v1145_v63  ;;  %v5917_v45 = vadd.f32 %v2110_v40, %v2040_v38  ;;  %v2042_v46 = vadd.f32 %v2041_v41, %v1971_v34  ;;  %2461 = vmatprep.subr.mxu0 %v1014_v35  ;;  %v1357_v29 = vld [vmem:[%s4895_s25 + $0x1cd0] sm:$0xff]  ;;  %v1226_v9 = vld [vmem:[%s4895_s25 + $0x18b8] sm:$0xff] }
 0x24a   : > { %2532 = vmatprep.subr.mxu1 %v1142_v37  ;;  %v2112_v48 = vpop.f32.mrf.mxu1  ;;  %2462 = vmatpush2.msra.mxu0 %v1013_v39  ;;  %v1354_v31 = vld [vmem:[%s4895_s25 + $0x1cb8] sm:$0xff]  ;;  %v1225_v11 = vld [vmem:[%s4895_s25 + $0x18b0] sm:$0xff] }
 0x24b   : > { %2463 = vmatprep.mubr.f32.mxu0 %v5366_v55  ;;  %v5922_v51 = vadd.f32 %v2112_v48, %v2042_v46  ;;  %2533 = vmatpush2.msra.mxu1 %v1141_v42  ;;  %v1261_v55 = vld [vmem:[%s4895_s25 + $0x19d0] sm:$0xff]  ;;  %v1222_v63 = vld [vmem:[%s4895_s25 + $0x1898] sm:$0xff] }
 0x24c   : > { %2464 = vmatmul.mubr.f32.vlgmr.msra.gmra.mxu0 %v5351_v44  ;;  %2534 = vmatprep.mubr.f32.mxu1 %v5372_v58  ;;  %v1258_v44 = vld [vmem:[%s4895_s25 + $0x19b8] sm:$0xff]  ;;  %v1257_v58 = vld [vmem:[%s4895_s25 + $0x19b0] sm:$0xff] }
 0x24d   : > { %2541 = vmatprep.subr.mxu0 %v1266_v47  ;;  %2612 = vmatprep.subr.mxu1 %v1394_v50  ;;  %v1353_v32 = vld [vmem:[%s4895_s25 + $0x1cb0] sm:$0xff]  ;;  %v1350_v2 = vld [vmem:[%s4895_s25 + $0x1c98] sm:$0xff] }
 0x24e   : > { %2535 = vmatmul.mubr.f32.vlgmr.msra.gmra.mxu1 %v5358_v49  ;;  %2542 = vmatpush1.msra.mxu0 %v1265_v52  ;;  %v1382_v49 = vld [vmem:[%s4895_s25 + $0x1d98] sm:$0xff]  ;;  %v1221_v34 = vld [vmem:[%s4895_s25 + $0x1890] sm:$0xff] }
 0x24f   : > { %2613 = vmatpush1.msra.mxu1 %v1393_v54  ;;  %2543 = vmatprep.subr.mxu0 %v1262_v56  ;;  %v1349_v35 = vld [vmem:[%s4895_s25 + $0x1c90] sm:$0xff]  ;;  %v1218_v37 = vld [vmem:[%s4895_s25 + $0x1878] sm:$0xff] }
 0x250   : > { %2614 = vmatprep.subr.mxu1 %v1390_v57  ;;  %2544 = vmatpush1.msra.mxu0 %v1261_v55  ;;  %v1346_v38 = vld [vmem:[%s4895_s25 + $0x1c78] sm:$0xff]  ;;  %v1217_v39 = vld [vmem:[%s4895_s25 + $0x1870] sm:$0xff] }
 0x251   : > { %2615 = vmatpush1.msra.mxu1 %v1389_v59  ;;  %2545 = vmatprep.subr.mxu0 %v1258_v44  ;;  %v1345_v40 = vld [vmem:[%s4895_s25 + $0x1c70] sm:$0xff]  ;;  %v1214_v41 = vld [vmem:[%s4895_s25 + $0x1858] sm:$0xff] }
 0x252   : > { %2616 = vmatprep.subr.mxu1 %v1386_v60  ;;  %2546 = vmatpush1.msra.mxu0 %v1257_v58  ;;  %v1342_v42 = vld [vmem:[%s4895_s25 + $0x1c58] sm:$0xff]  ;;  %v1213_v46 = vld [vmem:[%s4895_s25 + $0x1850] sm:$0xff] }
 0x253   : > { %2617 = vmatpush1.msra.mxu1 %v1385_v61  ;;  %2547 = vmatprep.subr.mxu0 %v1254_v62  ;;  %v1341_v47 = vld [vmem:[%s4895_s25 + $0x1c50] sm:$0xff]  ;;  %v1210_v48 = vld [vmem:[%s4895_s25 + $0x1838] sm:$0xff] }
 0x254   : > { %2618 = vmatprep.subr.mxu1 %v1382_v49  ;;  %2548 = vmatpush1.msra.mxu0 %v1253_v27  ;;  %v1338_v50 = vld [vmem:[%s4895_s25 + $0x1c38] sm:$0xff]  ;;  %v1209_v52 = vld [vmem:[%s4895_s25 + $0x1830] sm:$0xff] }
 0x255   : > { %2619 = vmatpush1.msra.mxu1 %v1381_v0  ;;  %2549 = vmatprep.subr.mxu0 %v1250_v17  ;;  %v1337_v54 = vld [vmem:[%s4895_s25 + $0x1c30] sm:$0xff]  ;;  %v1206_v56 = vld [vmem:[%s4895_s25 + $0x1818] sm:$0xff] }
 0x256   : > { %2620 = vmatprep.subr.mxu1 %v1378_v1  ;;  %2550 = vmatpush1.msra.mxu0 %v1249_v30  ;;  %v1334_v57 = vld [vmem:[%s4895_s25 + $0x1c18] sm:$0xff]  ;;  %v1205_v55 = vld [vmem:[%s4895_s25 + $0x1810] sm:$0xff] }
 0x257   : > { %2621 = vmatpush1.msra.mxu1 %v1377_v3  ;;  %2551 = vmatprep.subr.mxu0 %v1246_v4  ;;  %v1333_v59 = vld [vmem:[%s4895_s25 + $0x1c10] sm:$0xff]  ;;  %v1330_v44 = vld [vmem:[%s4895_s25 + $0x1bf8] sm:$0xff] }
 0x258   : > { %2622 = vmatprep.subr.mxu1 %v1374_v22  ;;  %2552 = vmatpush1.msra.mxu0 %v1245_v5  ;;  %v1458_v60 = vld [vmem:[%s4895_s25 + $0x1ff8] sm:$0xff]  ;;  %v1329_v58 = vld [vmem:[%s4895_s25 + $0x1bf0] sm:$0xff] }
 0x259   : > { %2623 = vmatpush1.msra.mxu1 %v1373_v6  ;;  %2553 = vmatprep.subr.mxu0 %v1242_v7  ;;  %v1457_v61 = vld [vmem:[%s4895_s25 + $0x1ff0] sm:$0xff]  ;;  %v1326_v62 = vld [vmem:[%s4895_s25 + $0x1bd8] sm:$0xff] }
 0x25a   : > { %2624 = vmatprep.subr.mxu1 %v1370_v8  ;;  %2554 = vmatpush1.msra.mxu0 %v1241_v10  ;;  %v1454_v49 = vld [vmem:[%s4895_s25 + $0x1fd8] sm:$0xff]  ;;  %v1325_v27 = vld [vmem:[%s4895_s25 + $0x1bd0] sm:$0xff] }
 0x25b   : > { %2625 = vmatpush1.msra.mxu1 %v1369_v12  ;;  %2555 = vmatprep.subr.mxu0 %v1238_v13  ;;  %v1453_v0 = vld [vmem:[%s4895_s25 + $0x1fd0] sm:$0xff]  ;;  %v1322_v17 = vld [vmem:[%s4895_s25 + $0x1bb8] sm:$0xff] }
 0x25c   : > { %2626 = vmatprep.subr.mxu1 %v1366_v14  ;;  %2556 = vmatpush1.msra.mxu0 %v1237_v15  ;;  %v1450_v1 = vld [vmem:[%s4895_s25 + $0x1fb8] sm:$0xff]  ;;  %v1321_v30 = vld [vmem:[%s4895_s25 + $0x1bb0] sm:$0xff] }
 0x25d   : > { %2627 = vmatpush1.msra.mxu1 %v1365_v16  ;;  %2557 = vmatprep.subr.mxu0 %v1234_v18  ;;  %v1449_v3 = vld [vmem:[%s4895_s25 + $0x1fb0] sm:$0xff]  ;;  %v1318_v4 = vld [vmem:[%s4895_s25 + $0x1b98] sm:$0xff] }
 0x25e   : > { %2628 = vmatprep.subr.mxu1 %v1362_v19  ;;  %2558 = vmatpush1.msra.mxu0 %v1233_v21  ;;  %v1446_v22 = vld [vmem:[%s4895_s25 + $0x1f98] sm:$0xff]  ;;  %v1317_v5 = vld [vmem:[%s4895_s25 + $0x1b90] sm:$0xff] }
 0x25f   : > { %2629 = vmatpush1.msra.mxu1 %v1361_v23  ;;  %2559 = vmatprep.subr.mxu0 %v1230_v24  ;;  %v1445_v6 = vld [vmem:[%s4895_s25 + $0x1f90] sm:$0xff]  ;;  %v1314_v7 = vld [vmem:[%s4895_s25 + $0x1b78] sm:$0xff] }
 0x260   : > { %2630 = vmatprep.subr.mxu1 %v1358_v25  ;;  %2560 = vmatpush1.msra.mxu0 %v1229_v28  ;;  %v1442_v8 = vld [vmem:[%s4895_s25 + $0x1f78] sm:$0xff]  ;;  %v1313_v10 = vld [vmem:[%s4895_s25 + $0x1b70] sm:$0xff] }
 0x261   : > { %2631 = vmatpush1.msra.mxu1 %v1357_v29  ;;  %2561 = vmatprep.subr.mxu0 %v1226_v9  ;;  %v1441_v12 = vld [vmem:[%s4895_s25 + $0x1f70] sm:$0xff]  ;;  %v1310_v13 = vld [vmem:[%s4895_s25 + $0x1b58] sm:$0xff] }
 0x262   : > { %2632 = vmatprep.subr.mxu1 %v1354_v31  ;;  %2562 = vmatpush1.msra.mxu0 %v1225_v11  ;;  %v1438_v14 = vld [vmem:[%s4895_s25 + $0x1f58] sm:$0xff]  ;;  %v1309_v15 = vld [vmem:[%s4895_s25 + $0x1b50] sm:$0xff] }
 0x263   : > { %2633 = vmatpush1.msra.mxu1 %v1353_v32  ;;  %2563 = vmatprep.subr.mxu0 %v1222_v63  ;;  %v1437_v16 = vld [vmem:[%s4895_s25 + $0x1f50] sm:$0xff]  ;;  %v1306_v18 = vld [vmem:[%s4895_s25 + $0x1b38] sm:$0xff] }
 0x264   : > { %2634 = vmatprep.subr.mxu1 %v1350_v2  ;;  %2564 = vmatpush1.msra.mxu0 %v1221_v34  ;;  %v1434_v19 = vld [vmem:[%s4895_s25 + $0x1f38] sm:$0xff]  ;;  %v1305_v21 = vld [vmem:[%s4895_s25 + $0x1b30] sm:$0xff] }
 0x265   : > { %2635 = vmatpush1.msra.mxu1 %v1349_v35  ;;  %2565 = vmatprep.subr.mxu0 %v1218_v37  ;;  %v1433_v23 = vld [vmem:[%s4895_s25 + $0x1f30] sm:$0xff]  ;;  %v1302_v24 = vld [vmem:[%s4895_s25 + $0x1b18] sm:$0xff] }
 0x266   : > { %2636 = vmatprep.subr.mxu1 %v1346_v38  ;;  %2566 = vmatpush1.msra.mxu0 %v1217_v39  ;;  %v1430_v25 = vld [vmem:[%s4895_s25 + $0x1f18] sm:$0xff]  ;;  %v1301_v28 = vld [vmem:[%s4895_s25 + $0x1b10] sm:$0xff] }
 0x267   : > { %2637 = vmatpush1.msra.mxu1 %v1345_v40  ;;  %2567 = vmatprep.subr.mxu0 %v1214_v41  ;;  %v1429_v29 = vld [vmem:[%s4895_s25 + $0x1f10] sm:$0xff]  ;;  %v1298_v9 = vld [vmem:[%s4895_s25 + $0x1af8] sm:$0xff] }
 0x268   : > { %2638 = vmatprep.subr.mxu1 %v1342_v42  ;;  %2568 = vmatpush1.msra.mxu0 %v1213_v46  ;;  %v1426_v31 = vld [vmem:[%s4895_s25 + $0x1ef8] sm:$0xff]  ;;  %v1297_v11 = vld [vmem:[%s4895_s25 + $0x1af0] sm:$0xff] }
 0x269   : > { %2639 = vmatpush1.msra.mxu1 %v1341_v47  ;;  %2569 = vmatprep.subr.mxu0 %v1210_v48  ;;  %v1425_v32 = vld [vmem:[%s4895_s25 + $0x1ef0] sm:$0xff]  ;;  %v1294_v63 = vld [vmem:[%s4895_s25 + $0x1ad8] sm:$0xff] }
 0x26a   : > { %2640 = vmatprep.subr.mxu1 %v1338_v50  ;;  %2570 = vmatpush1.msra.mxu0 %v1209_v52  ;;  %v1422_v2 = vld [vmem:[%s4895_s25 + $0x1ed8] sm:$0xff]  ;;  %v1293_v34 = vld [vmem:[%s4895_s25 + $0x1ad0] sm:$0xff] }
 0x26b   : > { %2641 = vmatpush1.msra.mxu1 %v1337_v54  ;;  %2571 = vmatprep.subr.mxu0 %v1206_v56  ;;  %v1421_v35 = vld [vmem:[%s4895_s25 + $0x1ed0] sm:$0xff]  ;;  %v1290_v37 = vld [vmem:[%s4895_s25 + $0x1ab8] sm:$0xff] }
 0x26c   : > { %2642 = vmatprep.subr.mxu1 %v1334_v57  ;;  %2572 = vmatpush1.msra.mxu0 %v1205_v55  ;;  %v1418_v38 = vld [vmem:[%s4895_s25 + $0x1eb8] sm:$0xff]  ;;  %v1289_v39 = vld [vmem:[%s4895_s25 + $0x1ab0] sm:$0xff] }
 0x26d   : > { %2643 = vmatpush1.msra.mxu1 %v1333_v59  ;;  %2573 = vmatprep.subr.mxu0 %v1330_v44  ;;  %v1417_v40 = vld [vmem:[%s4895_s25 + $0x1eb0] sm:$0xff]  ;;  %v1286_v41 = vld [vmem:[%s4895_s25 + $0x1a98] sm:$0xff] }
 0x26e   : > { %2644 = vmatprep.subr.mxu1 %v1458_v60  ;;  %2574 = vmatpush2.msra.mxu0 %v1329_v58  ;;  %v1414_v42 = vld [vmem:[%s4895_s25 + $0x1e98] sm:$0xff]  ;;  %v1285_v46 = vld [vmem:[%s4895_s25 + $0x1a90] sm:$0xff] }
 0x26f   : > { %2645 = vmatpush2.msra.mxu1 %v1457_v61  ;;  %2575 = vmatprep.subr.mxu0 %v1326_v62  ;;  %v1413_v47 = vld [vmem:[%s4895_s25 + $0x1e90] sm:$0xff]  ;;  %v1282_v48 = vld [vmem:[%s4895_s25 + $0x1a78] sm:$0xff] }
 0x270   : > { %2646 = vmatprep.subr.mxu1 %v1454_v49  ;;  %2576 = vmatpush2.msra.mxu0 %v1325_v27  ;;  %v1410_v50 = vld [vmem:[%s4895_s25 + $0x1e78] sm:$0xff]  ;;  %v1281_v52 = vld [vmem:[%s4895_s25 + $0x1a70] sm:$0xff] }
 0x271   : > { %2647 = vmatpush2.msra.mxu1 %v1453_v0  ;;  %2577 = vmatprep.subr.mxu0 %v1322_v17  ;;  %v1409_v54 = vld [vmem:[%s4895_s25 + $0x1e70] sm:$0xff]  ;;  %v1278_v56 = vld [vmem:[%s4895_s25 + $0x1a58] sm:$0xff] }
 0x272   : > { %2648 = vmatprep.subr.mxu1 %v1450_v1  ;;  %2578 = vmatpush2.msra.mxu0 %v1321_v30  ;;  %v1406_v57 = vld [vmem:[%s4895_s25 + $0x1e58] sm:$0xff]  ;;  %v1277_v55 = vld [vmem:[%s4895_s25 + $0x1a50] sm:$0xff] }
 0x273   : > { %2649 = vmatpush2.msra.mxu1 %v1449_v3  ;;  %2579 = vmatprep.subr.mxu0 %v1318_v4  ;;  %v1405_v59 = vld [vmem:[%s4895_s25 + $0x1e50] sm:$0xff]  ;;  %v1274_v44 = vld [vmem:[%s4895_s25 + $0x1a38] sm:$0xff] }
 0x274   : > { %2650 = vmatprep.subr.mxu1 %v1446_v22  ;;  %2580 = vmatpush2.msra.mxu0 %v1317_v5  ;;  %v1402_v60 = vld [vmem:[%s4895_s25 + $0x1e38] sm:$0xff]  ;;  %v1273_v58 = vld [vmem:[%s4895_s25 + $0x1a30] sm:$0xff] }
 0x275   : > { %2651 = vmatpush2.msra.mxu1 %v1445_v6  ;;  %2581 = vmatprep.subr.mxu0 %v1314_v7  ;;  %v1401_v61 = vld [vmem:[%s4895_s25 + $0x1e30] sm:$0xff]  ;;  %v1270_v62 = vld [vmem:[%s4895_s25 + $0x1a18] sm:$0xff] }
 0x276   : > { %2652 = vmatprep.subr.mxu1 %v1442_v8  ;;  %2582 = vmatpush2.msra.mxu0 %v1313_v10  ;;  %v1398_v49 = vld [vmem:[%s4895_s25 + $0x1e18] sm:$0xff]  ;;  %v1269_v27 = vld [vmem:[%s4895_s25 + $0x1a10] sm:$0xff] }
 0x277   : > { %2653 = vmatpush2.msra.mxu1 %v1441_v12  ;;  %2583 = vmatprep.subr.mxu0 %v1310_v13  ;;  %v1397_v0 = vld [vmem:[%s4895_s25 + $0x1e10] sm:$0xff] }
 0x278   : > { %2654 = vmatprep.subr.mxu1 %v1438_v14  ;;  %2584 = vmatpush2.msra.mxu0 %v1309_v15 }
 0x279   : > { %2655 = vmatpush2.msra.mxu1 %v1437_v16  ;;  %2585 = vmatprep.subr.mxu0 %v1306_v18 }
 0x27a   : > { %2656 = vmatprep.subr.mxu1 %v1434_v19  ;;  %2586 = vmatpush2.msra.mxu0 %v1305_v21 }
 0x27b   : > { %2657 = vmatpush2.msra.mxu1 %v1433_v23  ;;  %2587 = vmatprep.subr.mxu0 %v1302_v24 }
 0x27c   : > { %2658 = vmatprep.subr.mxu1 %v1430_v25  ;;  %2588 = vmatpush2.msra.mxu0 %v1301_v28 }
 0x27d   : > { %2659 = vmatpush2.msra.mxu1 %v1429_v29  ;;  %2589 = vmatprep.subr.mxu0 %v1298_v9 }
 0x27e   : > { %2660 = vmatprep.subr.mxu1 %v1426_v31  ;;  %2590 = vmatpush2.msra.mxu0 %v1297_v11 }
 0x27f   : > { %2661 = vmatpush2.msra.mxu1 %v1425_v32  ;;  %2591 = vmatprep.subr.mxu0 %v1294_v63 }
 0x280   : > { %2662 = vmatprep.subr.mxu1 %v1422_v2  ;;  %2592 = vmatpush2.msra.mxu0 %v1293_v34 }
 0x281   : > { %2663 = vmatpush2.msra.mxu1 %v1421_v35  ;;  %2593 = vmatprep.subr.mxu0 %v1290_v37 }
 0x282   : > { %2664 = vmatprep.subr.mxu1 %v1418_v38  ;;  %2594 = vmatpush2.msra.mxu0 %v1289_v39 }
 0x283   : > { %2665 = vmatpush2.msra.mxu1 %v1417_v40  ;;  %2595 = vmatprep.subr.mxu0 %v1286_v41 }
 0x284   : > { %2666 = vmatprep.subr.mxu1 %v1414_v42  ;;  %2596 = vmatpush2.msra.mxu0 %v1285_v46 }
 0x285   : > { %2667 = vmatpush2.msra.mxu1 %v1413_v47  ;;  %2597 = vmatprep.subr.mxu0 %v1282_v48 }
 0x286   : > { %2668 = vmatprep.subr.mxu1 %v1410_v50  ;;  %2598 = vmatpush2.msra.mxu0 %v1281_v52 }
 0x287   : > { %2669 = vmatpush2.msra.mxu1 %v1409_v54  ;;  %2599 = vmatprep.subr.mxu0 %v1278_v56 }
 0x288   : > { %2670 = vmatprep.subr.mxu1 %v1406_v57  ;;  %2600 = vmatpush2.msra.mxu0 %v1277_v55  ;;  %v2181_v17 = vpop.f32.mrf.mxu0 }
 0x289   : > { %2671 = vmatpush2.msra.mxu1 %v1405_v59  ;;  %2601 = vmatprep.subr.mxu0 %v1274_v44  ;;  %v2252_v1 = vpop.f32.mrf.mxu1 }
 0x28a   : > { %2672 = vmatprep.subr.mxu1 %v1402_v60  ;;  %2602 = vmatpush2.msra.mxu0 %v1273_v58  ;;  %v2183_v30 = vpop.f32.mrf.mxu0  ;;  %v2253_v22 = vadd.f32 %v2252_v1, %v2181_v17 }
 0x28b   : > { %2673 = vmatpush2.msra.mxu1 %v1401_v61  ;;  %2603 = vmatprep.subr.mxu0 %v1270_v62  ;;  %v2254_v4 = vpop.f32.mrf.mxu1 }
 0x28c   : > { %2674 = vmatprep.subr.mxu1 %v1398_v49  ;;  %2604 = vmatpush2.msra.mxu0 %v1269_v27  ;;  %v2255_v7 = vadd.f32 %v2254_v4, %v2183_v30 }
 0x28d   : > { %2605 = vmatprep.mubr.f32.mxu0 %v5513_v33  ;;  %2675 = vmatpush2.msra.mxu1 %v1397_v0 }
 0x28e   : > { %2676 = vmatprep.mubr.f32.mxu1 %v5519_v36  ;;  %2606 = vmatmul.mubr.f32.vlgmr.msra.gmra.mxu0 %v5498_v20 }
 0x28f   : > { %2677 = vmatmul.mubr.f32.vlgmr.msra.gmra.mxu1 %v5505_v26 }
 0x2ca   : > { %v2323_v3 = vpop.f32.mrf.mxu0 }
 0x2cb   : > { %v2324_v8 = vadd.f32 %v2323_v3, %v2253_v22 }
 0x2cc   : > { %v2394_v5 = vpop.f32.mrf.mxu1  ;;  %v2325_v6 = vpop.f32.mrf.mxu0 }
 0x2cd   : > { %v2326_v12 = vadd.f32 %v2325_v6, %v2255_v7  ;;  %v2395_v13 = vadd.f32 %v2394_v5, %v2324_v8 }
 0x2ce   : > { %v2396_v33 = vpop.f32.mrf.mxu1 }
 0x2cf   : > { %v2397_v15 = vadd.f32 %v2396_v33, %v2326_v12 }
 0x30c   : > { %v2465_v10 = vpop.f32.mrf.mxu0 }
 0x30d   : > { %v2466_v20 = vadd.f32 %v2465_v10, %v2395_v13 }
 0x30e   : > { %v2536_v14 = vpop.f32.mrf.mxu1  ;;  %v2467_v36 = vpop.f32.mrf.mxu0 }
 0x30f   : > { %v2468_v16 = vadd.f32 %v2467_v36, %v2397_v15  ;;  %v2537_v18 = vadd.f32 %v2536_v14, %v2466_v20 }
 0x310   : > { %v2538_v26 = vpop.f32.mrf.mxu1 }
 0x311   : > { %v2539_v23 = vadd.f32 %v2538_v26, %v2468_v16 }
 0x34e   : > { %v2607_v19 = vpop.f32.mrf.mxu0 }
 0x34f   : > { %v2678_v21 = vpop.f32.mrf.mxu1  ;;  %v2608_v24 = vadd.f32 %v2607_v19, %v2537_v18  ;;  %2686 = sbr.rel (%p6376_p10) target bundleno = 860 (0x35c), region = 84 }
 0x350   : > { %v2609_v25 = vpop.f32.mrf.mxu0 }
 0x351   : > { %v2679_v28 = vadd.f32 %v2678_v21, %v2608_v24  ;;  %v2610_v29 = vadd.f32 %v2609_v25, %v2539_v23  ;;  %v2680_v9 = vpop.f32.mrf.mxu1 }
 0x353   : > { %v2681_v31 = vadd.f32 %v2680_v9, %v2610_v29 }
 0x354   : > { %v2691_v11 = vcombine.low %v5917_v45, %v5922_v51 }
 0x355   : > { %v2692_v32 = vcombine.low %v2679_v28, %v2681_v31 }
 0x356   : > { %v2699_v63 = vrot.slane %v2691_v11, %v5046_v53 }
 0x357   : > { %v2706_v2 = vrot.slane %v2692_v32, %v5046_v53 }
 0x359   : > { %v2707_v34 = vcombine.low %v2699_v63, %v2706_v2 }
 0x35b   : > { %2709 = vst [vmem:[#allocation2] sm:$0xff] %v2707_v34 }
 0x35c PF: > { %p6377_p11 = scmp.eq.s32.totalorder %s4762_s16, 0 }
 0x35e   : > { %2713 = sbr.rel (%p6377_p11) target bundleno = 876 (0x36c), region = 88 }
 0x363   : > { %v2719_v35 = vcombine.low %v5917_v45, %v5922_v51  ;;  %v2720_v37 = vcombine.low %v2679_v28, %v2681_v31  ;;  %v2714_v40 = vld [vmem:[#allocation2] sm:$0xff] }
 0x365   : > { %v2727_v38 = vrot.slane %v2719_v35, %v5046_v53  ;;  %v2734_v39 = vrot.slane %v2720_v37, %v5046_v53 }
 0x367   : > { %v2735_v41 = vcombine.low %v2727_v38, %v2734_v39 }
 0x369   : > { %v2737_v42 = vadd.f32 %v2735_v41, %v2714_v40 }
 0x36b   : > { %2738 = vst [vmem:[#allocation2] sm:$0xff] %v2737_v42 }
 0x36c PF: > { %p4293_p13 = scmp.ne.s32.totalorder %s4762_s16, 7 }
 0x36e   : > { %2742 = sbr.rel (%p4293_p13) target bundleno = 1921 (0x781), region = 92 }
 0x373   : > { %v2843_v46 = vld [vmem:[#allocation8 + $0x1e8] sm:$0xff]  ;;  %v2842_v48 = vld [vmem:[#allocation8 + $0x1e0] sm:$0xff]  ;;  %vm4153_vm0 = vcmask 1024  }
 0x374   : > { %v2971_v47 = vld [vmem:[#allocation8 + $0x5e8] sm:$0xff]  ;;  %3082 = vmatprep.subr.mxu0 %v2843_v46  ;;  %v2970_v50 = vld [vmem:[#allocation8 + $0x5e0] sm:$0xff] }
 0x375   : > { %3153 = vmatprep.subr.mxu1 %v2971_v47  ;;  %v2839_v45 = vld [vmem:[#allocation8 + $0x1c8] sm:$0xff]  ;;  %3083 = vmatpush1.msra.mxu0 %v2842_v48  ;;  %v2838_v52 = vld [vmem:[#allocation8 + $0x1c0] sm:$0xff] }
 0x376   : > { %v2967_v51 = vld [vmem:[#allocation8 + $0x5c8] sm:$0xff]  ;;  %3154 = vmatpush1.msra.mxu1 %v2970_v50  ;;  %v2966_v54 = vld [vmem:[#allocation8 + $0x5c0] sm:$0xff]  ;;  %3084 = vmatprep.subr.mxu0 %v2839_v45 }
 0x377   : > { %v2835_v56 = vld [vmem:[#allocation8 + $0x1a8] sm:$0xff]  ;;  %3155 = vmatprep.subr.mxu1 %v2967_v51  ;;  %v2834_v55 = vld [vmem:[#allocation8 + $0x1a0] sm:$0xff]  ;;  %3085 = vmatpush1.msra.mxu0 %v2838_v52 }
 0x378   : > { %v2963_v57 = vld [vmem:[#allocation8 + $0x5a8] sm:$0xff]  ;;  %v2962_v59 = vld [vmem:[#allocation8 + $0x5a0] sm:$0xff]  ;;  %3156 = vmatpush1.msra.mxu1 %v2966_v54  ;;  %3086 = vmatprep.subr.mxu0 %v2835_v56 }
 0x379   : > { %v2831_v44 = vld [vmem:[#allocation8 + $0x188] sm:$0xff]  ;;  %3157 = vmatprep.subr.mxu1 %v2963_v57  ;;  %v2830_v58 = vld [vmem:[#allocation8 + $0x180] sm:$0xff]  ;;  %3087 = vmatpush1.msra.mxu0 %v2834_v55 }
 0x37a   : > { %v2959_v60 = vld [vmem:[#allocation8 + $0x588] sm:$0xff]  ;;  %v2958_v61 = vld [vmem:[#allocation8 + $0x580] sm:$0xff]  ;;  %3158 = vmatpush1.msra.mxu1 %v2962_v59  ;;  %3088 = vmatprep.subr.mxu0 %v2831_v44 }
 0x37b   : > { %v2827_v62 = vld [vmem:[#allocation8 + $0x168] sm:$0xff]  ;;  %3159 = vmatprep.subr.mxu1 %v2959_v60  ;;  %v2826_v27 = vld [vmem:[#allocation8 + $0x160] sm:$0xff]  ;;  %3089 = vmatpush1.msra.mxu0 %v2830_v58 }
 0x37c   : > { %v2955_v49 = vld [vmem:[#allocation8 + $0x568] sm:$0xff]  ;;  %v2954_v0 = vld [vmem:[#allocation8 + $0x560] sm:$0xff]  ;;  %3160 = vmatpush1.msra.mxu1 %v2958_v61  ;;  %3090 = vmatprep.subr.mxu0 %v2827_v62 }
 0x37d   : > { %v2823_v17 = vld [vmem:[#allocation8 + $0x148] sm:$0xff]  ;;  %3161 = vmatprep.subr.mxu1 %v2955_v49  ;;  %v2822_v30 = vld [vmem:[#allocation8 + $0x140] sm:$0xff]  ;;  %3091 = vmatpush1.msra.mxu0 %v2826_v27 }
 0x37e   : > { %v2951_v1 = vld [vmem:[#allocation8 + $0x548] sm:$0xff]  ;;  %v2950_v3 = vld [vmem:[#allocation8 + $0x540] sm:$0xff]  ;;  %3162 = vmatpush1.msra.mxu1 %v2954_v0  ;;  %3092 = vmatprep.subr.mxu0 %v2823_v17 }
 0x37f   : > { %v2819_v4 = vld [vmem:[#allocation8 + $0x128] sm:$0xff]  ;;  %3163 = vmatprep.subr.mxu1 %v2951_v1  ;;  %v2818_v5 = vld [vmem:[#allocation8 + $0x120] sm:$0xff]  ;;  %3093 = vmatpush1.msra.mxu0 %v2822_v30  ;;  %v6071_v30 = vsub.s32 0, %v5034_v43 }
 0x380   : > { %v2947_v22 = vld [vmem:[#allocation8 + $0x528] sm:$0xff]  ;;  %v2946_v6 = vld [vmem:[#allocation8 + $0x520] sm:$0xff]  ;;  %3164 = vmatpush1.msra.mxu1 %v2950_v3  ;;  %3094 = vmatprep.subr.mxu0 %v2819_v4  ;;  %v6074_v3 = vsub.s32 1, %v5034_v43  ;;  %v6077_v4 = vsub.s32 2, %v5034_v43 }
 0x381   : > { %v2815_v7 = vld [vmem:[#allocation8 + $0x108] sm:$0xff]  ;;  %3165 = vmatprep.subr.mxu1 %v2947_v22  ;;  %v2814_v10 = vld [vmem:[#allocation8 + $0x100] sm:$0xff]  ;;  %3095 = vmatpush1.msra.mxu0 %v2818_v5 }
 0x382   : > { %v2943_v8 = vld [vmem:[#allocation8 + $0x508] sm:$0xff]  ;;  %v2942_v12 = vld [vmem:[#allocation8 + $0x500] sm:$0xff]  ;;  %3166 = vmatpush1.msra.mxu1 %v2946_v6  ;;  %3096 = vmatprep.subr.mxu0 %v2815_v7  ;;  %v6080_v6 = vsub.s32 3, %v5034_v43 }
 0x383   : > { %v2811_v33 = vld [vmem:[#allocation8 + $0xe8] sm:$0xff]  ;;  %3167 = vmatprep.subr.mxu1 %v2943_v8  ;;  %v2810_v14 = vld [vmem:[#allocation8 + $0xe0] sm:$0xff]  ;;  %3097 = vmatpush1.msra.mxu0 %v2814_v10 }
 0x384   : > { %v2939_v13 = vld [vmem:[#allocation8 + $0x4e8] sm:$0xff]  ;;  %v2938_v36 = vld [vmem:[#allocation8 + $0x4e0] sm:$0xff]  ;;  %3168 = vmatpush1.msra.mxu1 %v2942_v12  ;;  %3098 = vmatprep.subr.mxu0 %v2811_v33  ;;  %v2744_v33 = vld [vmem:[#allocation6] sm:$0xf] }
 0x385   : > { %v2807_v15 = vld [vmem:[#allocation8 + $0xc8] sm:$0xff]  ;;  %3169 = vmatprep.subr.mxu1 %v2939_v13  ;;  %v2806_v16 = vld [vmem:[#allocation8 + $0xc0] sm:$0xff]  ;;  %3099 = vmatpush1.msra.mxu0 %v2810_v14  ;;  %v2757_v43 = vrot.slane %v2744_v33, %v6077_v4 }
 0x386   : > { %v2935_v20 = vld [vmem:[#allocation8 + $0x4c8] sm:$0xff]  ;;  %v2934_v26 = vld [vmem:[#allocation8 + $0x4c0] sm:$0xff]  ;;  %3170 = vmatpush1.msra.mxu1 %v2938_v36  ;;  %3100 = vmatprep.subr.mxu0 %v2807_v15  ;;  %v2749_v36 = vrot.slane %v2744_v33, %v6071_v30  ;;  %v2753_v15 = vrot.slane %v2744_v33, %v6074_v3 }
 0x387   : > { %v2803_v18 = vld [vmem:[#allocation8 + $0xa8] sm:$0xff]  ;;  %3171 = vmatprep.subr.mxu1 %v2935_v20  ;;  %v2802_v21 = vld [vmem:[#allocation8 + $0xa0] sm:$0xff]  ;;  %3101 = vmatpush1.msra.mxu0 %v2806_v16 }
 0x388   : > { %v2931_v19 = vld [vmem:[#allocation8 + $0x4a8] sm:$0xff]  ;;  %v2930_v23 = vld [vmem:[#allocation8 + $0x4a0] sm:$0xff]  ;;  %3172 = vmatpush1.msra.mxu1 %v2934_v26  ;;  %3102 = vmatprep.subr.mxu0 %v2803_v18  ;;  %v2761_v26 = vrot.slane %v2744_v33, %v6080_v6  ;;  %v2841_v33 = vld [vmem:[#allocation8 + $0x1d8] sm:$0xff] }
 0x389   : > { %v2799_v24 = vld [vmem:[#allocation8 + $0x88] sm:$0xff]  ;;  %3173 = vmatprep.subr.mxu1 %v2931_v19  ;;  %v2798_v28 = vld [vmem:[#allocation8 + $0x80] sm:$0xff]  ;;  %3103 = vmatpush1.msra.mxu0 %v2802_v21  ;;  %v2762_v21 = vcombine.low %v2749_v36, %v2753_v15  ;;  %v2968_v36 = vld [vmem:[#allocation8 + $0x5d0] sm:$0xff] }
 0x38a   : > { %v2927_v25 = vld [vmem:[#allocation8 + $0x488] sm:$0xff]  ;;  %v2926_v29 = vld [vmem:[#allocation8 + $0x480] sm:$0xff]  ;;  %3174 = vmatpush1.msra.mxu1 %v2930_v23  ;;  %3104 = vmatprep.subr.mxu0 %v2799_v24  ;;  %v2837_v15 = vld [vmem:[#allocation8 + $0x1b8] sm:$0xff] }
 0x38b   : > { %v2795_v9 = vld [vmem:[#allocation8 + $0x68] sm:$0xff]  ;;  %3175 = vmatprep.subr.mxu1 %v2927_v25  ;;  %v2794_v11 = vld [vmem:[#allocation8 + $0x60] sm:$0xff]  ;;  %3105 = vmatpush1.msra.mxu0 %v2798_v28  ;;  %v2763_v25 = vcombine.low %v2757_v43, %v2761_v26  ;;  %v2965_v43 = vld [vmem:[#allocation8 + $0x5b8] sm:$0xff] }
 0x38c   : > { %v2923_v31 = vld [vmem:[#allocation8 + $0x468] sm:$0xff]  ;;  %v2922_v32 = vld [vmem:[#allocation8 + $0x460] sm:$0xff]  ;;  %3176 = vmatpush1.msra.mxu1 %v2926_v29  ;;  %3106 = vmatprep.subr.mxu0 %v2795_v9  ;;  %v2770_v9 = vrot.slane %v2762_v21, %v5046_v53  ;;  %v2833_v26 = vld [vmem:[#allocation8 + $0x198] sm:$0xff] }
 0x38d   : > { %v2791_v63 = vld [vmem:[#allocation8 + $0x48] sm:$0xff]  ;;  %3177 = vmatprep.subr.mxu1 %v2923_v31  ;;  %v2790_v34 = vld [vmem:[#allocation8 + $0x40] sm:$0xff]  ;;  %3107 = vmatpush1.msra.mxu0 %v2794_v11  ;;  %v2960_v21 = vld [vmem:[#allocation8 + $0x590] sm:$0xff] }
 0x38e   : > { %v2919_v2 = vld [vmem:[#allocation8 + $0x448] sm:$0xff]  ;;  %v2918_v35 = vld [vmem:[#allocation8 + $0x440] sm:$0xff]  ;;  %3178 = vmatpush1.msra.mxu1 %v2922_v32  ;;  %3108 = vmatprep.subr.mxu0 %v2791_v63  ;;  %v2777_v32 = vrot.slane %v2763_v25, %v5046_v53  ;;  %v2828_v25 = vld [vmem:[#allocation8 + $0x170] sm:$0xff] }
 0x38f   : > { %v2787_v37 = vld [vmem:[#allocation8 + $0x28] sm:$0xff]  ;;  %3179 = vmatprep.subr.mxu1 %v2919_v2  ;;  %v2786_v39 = vld [vmem:[#allocation8 + $0x20] sm:$0xff]  ;;  %3109 = vmatpush1.msra.mxu0 %v2790_v34  ;;  %v2743_v34 = vld [vmem:[#allocation2] sm:$0xff] }
 0x390   : > { %v2915_v38 = vld [vmem:[#allocation8 + $0x428] sm:$0xff]  ;;  %v2914_v40 = vld [vmem:[#allocation8 + $0x420] sm:$0xff]  ;;  %3180 = vmatpush1.msra.mxu1 %v2918_v35  ;;  %3110 = vmatprep.subr.mxu0 %v2787_v37 }
 0x391   : > { %v2783_v41 = vld [vmem:[#allocation8 + $0x8] sm:$0xff]  ;;  %3181 = vmatprep.subr.mxu1 %v2915_v38  ;;  %v2782_v46 = vld [vmem:[#allocation8] sm:$0xff]  ;;  %3111 = vmatpush1.msra.mxu0 %v2786_v39  ;;  %v2778_v38 = vcombine.low %v2770_v9, %v2777_v32  ;;  %v2953_v9 = vld [vmem:[#allocation8 + $0x558] sm:$0xff] }
 0x392   : > { %v2911_v42 = vld [vmem:[#allocation8 + $0x408] sm:$0xff]  ;;  %v2910_v47 = vld [vmem:[#allocation8 + $0x400] sm:$0xff]  ;;  %3182 = vmatpush1.msra.mxu1 %v2914_v40  ;;  %3112 = vmatprep.subr.mxu0 %v2783_v41  ;;  %v2821_v32 = vld [vmem:[#allocation8 + $0x138] sm:$0xff] }
 0x393   : > { %v2907_v48 = vld [vmem:[#allocation8 + $0x3e8] sm:$0xff]  ;;  %3183 = vmatprep.subr.mxu1 %v2911_v42  ;;  %v2906_v45 = vld [vmem:[#allocation8 + $0x3e0] sm:$0xff]  ;;  %3113 = vmatpush1.msra.mxu0 %v2782_v46  ;;  %v2780_v46 = vadd.f32 %v2778_v38, %v2743_v34  ;;  %v2948_v34 = vld [vmem:[#allocation8 + $0x530] sm:$0xff] }
 0x394   : > { %v3035_v50 = vld [vmem:[#allocation8 + $0x7e8] sm:$0xff]  ;;  %v3034_v51 = vld [vmem:[#allocation8 + $0x7e0] sm:$0xff]  ;;  %3184 = vmatpush1.msra.mxu1 %v2910_v47  ;;  %3114 = vmatprep.subr.mxu0 %v2907_v48  ;;  %v2816_v38 = vld [vmem:[#allocation8 + $0x110] sm:$0xff] }
 0x395   : > { %v2903_v52 = vld [vmem:[#allocation8 + $0x3c8] sm:$0xff]  ;;  %3185 = vmatprep.subr.mxu1 %v3035_v50  ;;  %v2902_v56 = vld [vmem:[#allocation8 + $0x3c0] sm:$0xff]  ;;  %3115 = vmatpush2.msra.mxu0 %v2906_v45 }
 0x396   : > { %v3031_v54 = vld [vmem:[#allocation8 + $0x7c8] sm:$0xff]  ;;  %v3030_v57 = vld [vmem:[#allocation8 + $0x7c0] sm:$0xff]  ;;  %3186 = vmatpush2.msra.mxu1 %v3034_v51  ;;  %3116 = vmatprep.subr.mxu0 %v2903_v52  ;;  %v2781_v51 = vmax.f32 %v2780_v46, 0.0  ;;  %v2940_v46 = vld [vmem:[#allocation8 + $0x4f0] sm:$0xff] }
 0x397   : > { %v2899_v55 = vld [vmem:[#allocation8 + $0x3a8] sm:$0xff]  ;;  %3187 = vmatprep.subr.mxu1 %v3031_v54  ;;  %v2898_v44 = vld [vmem:[#allocation8 + $0x3a0] sm:$0xff]  ;;  %3117 = vmatpush2.msra.mxu0 %v2902_v56 }
 0x398   : > { %v3027_v59 = vld [vmem:[#allocation8 + $0x7a8] sm:$0xff]  ;;  %v3026_v60 = vld [vmem:[#allocation8 + $0x7a0] sm:$0xff]  ;;  %3188 = vmatpush2.msra.mxu1 %v3030_v57  ;;  %3118 = vmatprep.subr.mxu0 %v2899_v55  ;;  %v6089_v55 = vrot.slane %v2781_v51, %v5046_v53 }
 0x399   : > { %v2895_v58 = vld [vmem:[#allocation8 + $0x388] sm:$0xff]  ;;  %3189 = vmatprep.subr.mxu1 %v3027_v59  ;;  %v2894_v62 = vld [vmem:[#allocation8 + $0x380] sm:$0xff]  ;;  %3119 = vmatpush2.msra.mxu0 %v2898_v44  ;;  %v3061_v59 = vcombine.high %v2781_v51, %v2781_v51  ;;  %v2805_v51 = vld [vmem:[#allocation8 + $0xb8] sm:$0xff] }
 0x39a   : > { %v3023_v61 = vld [vmem:[#allocation8 + $0x788] sm:$0xff]  ;;  %v3022_v49 = vld [vmem:[#allocation8 + $0x780] sm:$0xff]  ;;  %3190 = vmatpush2.msra.mxu1 %v3026_v60  ;;  %3120 = vmatprep.subr.mxu0 %v2895_v58 }
 0x39b   : > { %v2891_v27 = vld [vmem:[#allocation8 + $0x368] sm:$0xff]  ;;  %3191 = vmatprep.subr.mxu1 %v3023_v61  ;;  %v2890_v17 = vld [vmem:[#allocation8 + $0x360] sm:$0xff]  ;;  %3121 = vmatpush2.msra.mxu0 %v2894_v62  ;;  %v6092_v62 = vrot.slane %v3061_v59, %v5046_v53  ;;  %v2929_v59 = vld [vmem:[#allocation8 + $0x498] sm:$0xff] }
 0x39c   : > { %v3019_v0 = vld [vmem:[#allocation8 + $0x768] sm:$0xff]  ;;  %v3018_v1 = vld [vmem:[#allocation8 + $0x760] sm:$0xff]  ;;  %3192 = vmatpush2.msra.mxu1 %v3022_v49  ;;  %3122 = vmatprep.subr.mxu0 %v2891_v27 }
 0x39d   : > { %v2887_v22 = vld [vmem:[#allocation8 + $0x348] sm:$0xff]  ;;  %3193 = vmatprep.subr.mxu1 %v3019_v0  ;;  %v2886_v7 = vld [vmem:[#allocation8 + $0x340] sm:$0xff]  ;;  %3123 = vmatpush2.msra.mxu0 %v2890_v17  ;;  %v6100_v53 = vcombine.high %v6092_v62, %v6092_v62 }
 0x39e   : > { %v3015_v5 = vld [vmem:[#allocation8 + $0x748] sm:$0xff]  ;;  %v3014_v8 = vld [vmem:[#allocation8 + $0x740] sm:$0xff]  ;;  %3194 = vmatpush2.msra.mxu1 %v3018_v1  ;;  %3124 = vmatprep.subr.mxu0 %v2887_v22  ;;  %v6096_v1 = vcombine.high %v6089_v55, %v6089_v55 }
 0x39f   : > { %v2883_v10 = vld [vmem:[#allocation8 + $0x328] sm:$0xff]  ;;  %3195 = vmatprep.subr.mxu1 %v3015_v5  ;;  %v2882_v13 = vld [vmem:[#allocation8 + $0x320] sm:$0xff]  ;;  %3125 = vmatpush2.msra.mxu0 %v2886_v7  ;;  %v2845_v7 = vld [vmem:[#allocation8 + $0x1f8] sm:$0xff] }
 0x3a0   : > { %v3011_v12 = vld [vmem:[#allocation8 + $0x728] sm:$0xff]  ;;  %v3010_v14 = vld [vmem:[#allocation8 + $0x720] sm:$0xff]  ;;  %3196 = vmatpush2.msra.mxu1 %v3014_v8  ;;  %3126 = vmatprep.subr.mxu0 %v2883_v10  ;;  %v2973_v8 = vld [vmem:[#allocation8 + $0x5f8] sm:$0xff] }
 0x3a1   : > { %v2879_v20 = vld [vmem:[#allocation8 + $0x308] sm:$0xff]  ;;  %3197 = vmatprep.subr.mxu1 %v3011_v12  ;;  %v2878_v18 = vld [vmem:[#allocation8 + $0x300] sm:$0xff]  ;;  %3127 = vmatpush2.msra.mxu0 %v2882_v13  ;;  %v2844_v10 = vld [vmem:[#allocation8 + $0x1f0] sm:$0xff] }
 0x3a2   : > { %v3007_v16 = vld [vmem:[#allocation8 + $0x708] sm:$0xff]  ;;  %v3006_v19 = vld [vmem:[#allocation8 + $0x700] sm:$0xff]  ;;  %3198 = vmatpush2.msra.mxu1 %v3010_v14  ;;  %3128 = vmatprep.subr.mxu0 %v2879_v20  ;;  %v2972_v12 = vld [vmem:[#allocation8 + $0x5f0] sm:$0xff] }
 0x3a3   : > { %v2875_v23 = vld [vmem:[#allocation8 + $0x2e8] sm:$0xff]  ;;  %3199 = vmatprep.subr.mxu1 %v3007_v16  ;;  %v2874_v28 = vld [vmem:[#allocation8 + $0x2e0] sm:$0xff]  ;;  %3129 = vmatpush2.msra.mxu0 %v2878_v18  ;;  %v2969_v13 = vld [vmem:[#allocation8 + $0x5d8] sm:$0xff] }
 0x3a4   : > { %v3003_v24 = vld [vmem:[#allocation8 + $0x6e8] sm:$0xff]  ;;  %v3002_v29 = vld [vmem:[#allocation8 + $0x6e0] sm:$0xff]  ;;  %3200 = vmatpush2.msra.mxu1 %v3006_v19  ;;  %3130 = vmatprep.subr.mxu0 %v2875_v23  ;;  %v2840_v14 = vld [vmem:[#allocation8 + $0x1d0] sm:$0xff] }
 0x3a5   : > { %v2871_v31 = vld [vmem:[#allocation8 + $0x2c8] sm:$0xff]  ;;  %3201 = vmatprep.subr.mxu1 %v3003_v24  ;;  %v2870_v63 = vld [vmem:[#allocation8 + $0x2c0] sm:$0xff]  ;;  %3131 = vmatpush2.msra.mxu0 %v2874_v28  ;;  %v2836_v20 = vld [vmem:[#allocation8 + $0x1b0] sm:$0xff] }
 0x3a6   : > { %v2999_v11 = vld [vmem:[#allocation8 + $0x6c8] sm:$0xff]  ;;  %v2998_v2 = vld [vmem:[#allocation8 + $0x6c0] sm:$0xff]  ;;  %3202 = vmatpush2.msra.mxu1 %v3002_v29  ;;  %3132 = vmatprep.subr.mxu0 %v2871_v31  ;;  %v2964_v16 = vld [vmem:[#allocation8 + $0x5b0] sm:$0xff] }
 0x3a7   : > { %v2867_v35 = vld [vmem:[#allocation8 + $0x2a8] sm:$0xff]  ;;  %3203 = vmatprep.subr.mxu1 %v2999_v11  ;;  %v2866_v39 = vld [vmem:[#allocation8 + $0x2a0] sm:$0xff]  ;;  %3133 = vmatpush2.msra.mxu0 %v2870_v63  ;;  %v2961_v18 = vld [vmem:[#allocation8 + $0x598] sm:$0xff] }
 0x3a8   : > { %v2995_v37 = vld [vmem:[#allocation8 + $0x6a8] sm:$0xff]  ;;  %v2994_v40 = vld [vmem:[#allocation8 + $0x6a0] sm:$0xff]  ;;  %3204 = vmatpush2.msra.mxu1 %v2998_v2  ;;  %3134 = vmatprep.subr.mxu0 %v2867_v35  ;;  %v2832_v19 = vld [vmem:[#allocation8 + $0x190] sm:$0xff] }
 0x3a9   : > { %v2863_v41 = vld [vmem:[#allocation8 + $0x288] sm:$0xff]  ;;  %3205 = vmatprep.subr.mxu1 %v2995_v37  ;;  %v2862_v47 = vld [vmem:[#allocation8 + $0x280] sm:$0xff]  ;;  %3135 = vmatpush2.msra.mxu0 %v2866_v39  ;;  %v2829_v23 = vld [vmem:[#allocation8 + $0x178] sm:$0xff] }
 0x3aa   : > { %v2991_v42 = vld [vmem:[#allocation8 + $0x688] sm:$0xff]  ;;  %v2990_v48 = vld [vmem:[#allocation8 + $0x680] sm:$0xff]  ;;  %3206 = vmatpush2.msra.mxu1 %v2994_v40  ;;  %3136 = vmatprep.subr.mxu0 %v2863_v41  ;;  %v2957_v24 = vld [vmem:[#allocation8 + $0x578] sm:$0xff] }
 0x3ab   : > { %v2859_v50 = vld [vmem:[#allocation8 + $0x268] sm:$0xff]  ;;  %3207 = vmatprep.subr.mxu1 %v2991_v42  ;;  %v2858_v52 = vld [vmem:[#allocation8 + $0x260] sm:$0xff]  ;;  %3137 = vmatpush2.msra.mxu0 %v2862_v47  ;;  %v2956_v28 = vld [vmem:[#allocation8 + $0x570] sm:$0xff] }
 0x3ac   : > { %v2987_v45 = vld [vmem:[#allocation8 + $0x668] sm:$0xff]  ;;  %v2986_v54 = vld [vmem:[#allocation8 + $0x660] sm:$0xff]  ;;  %3208 = vmatpush2.msra.mxu1 %v2990_v48  ;;  %3138 = vmatprep.subr.mxu0 %v2859_v50  ;;  %v2825_v29 = vld [vmem:[#allocation8 + $0x158] sm:$0xff] }
 0x3ad   : > { %v2855_v56 = vld [vmem:[#allocation8 + $0x248] sm:$0xff]  ;;  %3209 = vmatprep.subr.mxu1 %v2987_v45  ;;  %v2854_v44 = vld [vmem:[#allocation8 + $0x240] sm:$0xff]  ;;  %3139 = vmatpush2.msra.mxu0 %v2858_v52  ;;  %v2824_v31 = vld [vmem:[#allocation8 + $0x150] sm:$0xff] }
 0x3ae   : > { %v2983_v57 = vld [vmem:[#allocation8 + $0x648] sm:$0xff]  ;;  %v2982_v60 = vld [vmem:[#allocation8 + $0x640] sm:$0xff]  ;;  %3210 = vmatpush2.msra.mxu1 %v2986_v54  ;;  %3140 = vmatprep.subr.mxu0 %v2855_v56  ;;  %v2952_v11 = vld [vmem:[#allocation8 + $0x550] sm:$0xff] }
 0x3af   : > { %v2851_v58 = vld [vmem:[#allocation8 + $0x228] sm:$0xff]  ;;  %3211 = vmatprep.subr.mxu1 %v2983_v57  ;;  %v2850_v49 = vld [vmem:[#allocation8 + $0x220] sm:$0xff]  ;;  %3141 = vmatpush2.msra.mxu0 %v2854_v44  ;;  %v2949_v63 = vld [vmem:[#allocation8 + $0x538] sm:$0xff] }
 0x3b0   : > { %v2979_v61 = vld [vmem:[#allocation8 + $0x628] sm:$0xff]  ;;  %v2978_v27 = vld [vmem:[#allocation8 + $0x620] sm:$0xff]  ;;  %3212 = vmatpush2.msra.mxu1 %v2982_v60  ;;  %3142 = vmatprep.subr.mxu0 %v2851_v58  ;;  %v2820_v2 = vld [vmem:[#allocation8 + $0x130] sm:$0xff] }
 0x3b1   : > { %v2847_v0 = vld [vmem:[#allocation8 + $0x208] sm:$0xff]  ;;  %3213 = vmatprep.subr.mxu1 %v2979_v61  ;;  %v2846_v22 = vld [vmem:[#allocation8 + $0x200] sm:$0xff]  ;;  %3143 = vmatpush2.msra.mxu0 %v2850_v49  ;;  %v2817_v35 = vld [vmem:[#allocation8 + $0x118] sm:$0xff] }
 0x3b2   : > { %v2975_v17 = vld [vmem:[#allocation8 + $0x608] sm:$0xff]  ;;  %3214 = vmatpush2.msra.mxu1 %v2978_v27  ;;  %v2974_v5 = vld [vmem:[#allocation8 + $0x600] sm:$0xff]  ;;  %3144 = vmatprep.subr.mxu0 %v2847_v0  ;;  %v2945_v37 = vld [vmem:[#allocation8 + $0x518] sm:$0xff] }
 0x3b3   : > { %3215 = vmatprep.subr.mxu1 %v2975_v17  ;;  %3145 = vmatpush2.msra.mxu0 %v2846_v22  ;;  %v2944_v39 = vld [vmem:[#allocation8 + $0x510] sm:$0xff]  ;;  %v2813_v40 = vld [vmem:[#allocation8 + $0xf8] sm:$0xff] }
 0x3b4   : > { %3146 = vmatprep.mubr.f32.mxu0 %v6096_v1  ;;  %3216 = vmatpush2.msra.mxu1 %v2974_v5  ;;  %v2941_v41 = vld [vmem:[#allocation8 + $0x4f8] sm:$0xff]  ;;  %v2812_v42 = vld [vmem:[#allocation8 + $0xf0] sm:$0xff] }
 0x3b5   : > { %3147 = vmatmul.mubr.f32.vlgmr.msra.gmra.mxu0 %v6089_v55  ;;  %3217 = vmatprep.mubr.f32.mxu1 %v6100_v53  ;;  %v2809_v47 = vld [vmem:[#allocation8 + $0xd8] sm:$0xff]  ;;  %v2808_v50 = vld [vmem:[#allocation8 + $0xd0] sm:$0xff] }
 0x3b6   : > { %3224 = vmatprep.subr.mxu0 %v2845_v7  ;;  %3295 = vmatprep.subr.mxu1 %v2973_v8  ;;  %v2937_v48 = vld [vmem:[#allocation8 + $0x4d8] sm:$0xff]  ;;  %v2936_v45 = vld [vmem:[#allocation8 + $0x4d0] sm:$0xff] }
 0x3b7   : > { %3218 = vmatmul.mubr.f32.vlgmr.msra.gmra.mxu1 %v6092_v62  ;;  %3225 = vmatpush1.msra.mxu0 %v2844_v10  ;;  %v2933_v52 = vld [vmem:[#allocation8 + $0x4b8] sm:$0xff]  ;;  %v2804_v54 = vld [vmem:[#allocation8 + $0xb0] sm:$0xff] }
 0x3b8   : > { %3296 = vmatpush1.msra.mxu1 %v2972_v12  ;;  %3226 = vmatprep.subr.mxu0 %v2841_v33  ;;  %v2932_v56 = vld [vmem:[#allocation8 + $0x4b0] sm:$0xff]  ;;  %v2801_v57 = vld [vmem:[#allocation8 + $0x98] sm:$0xff] }
 0x3b9   : > { %3297 = vmatprep.subr.mxu1 %v2969_v13  ;;  %3227 = vmatpush1.msra.mxu0 %v2840_v14  ;;  %v2800_v44 = vld [vmem:[#allocation8 + $0x90] sm:$0xff]  ;;  %v2797_v58 = vld [vmem:[#allocation8 + $0x78] sm:$0xff] }
 0x3ba   : > { %3298 = vmatpush1.msra.mxu1 %v2968_v36  ;;  %3228 = vmatprep.subr.mxu0 %v2837_v15  ;;  %v2928_v60 = vld [vmem:[#allocation8 + $0x490] sm:$0xff]  ;;  %v2925_v61 = vld [vmem:[#allocation8 + $0x478] sm:$0xff] }
 0x3bb   : > { %3299 = vmatprep.subr.mxu1 %v2965_v43  ;;  %3229 = vmatpush1.msra.mxu0 %v2836_v20  ;;  %v2796_v49 = vld [vmem:[#allocation8 + $0x70] sm:$0xff]  ;;  %v2793_v0 = vld [vmem:[#allocation8 + $0x58] sm:$0xff] }
 0x3bc   : > { %3300 = vmatpush1.msra.mxu1 %v2964_v16  ;;  %3230 = vmatprep.subr.mxu0 %v2833_v26  ;;  %v2924_v27 = vld [vmem:[#allocation8 + $0x470] sm:$0xff]  ;;  %v2921_v17 = vld [vmem:[#allocation8 + $0x458] sm:$0xff] }
 0x3bd   : > { %3301 = vmatprep.subr.mxu1 %v2961_v18  ;;  %3231 = vmatpush1.msra.mxu0 %v2832_v19  ;;  %v2792_v22 = vld [vmem:[#allocation8 + $0x50] sm:$0xff]  ;;  %v2789_v7 = vld [vmem:[#allocation8 + $0x38] sm:$0xff] }
 0x3be   : > { %3302 = vmatpush1.msra.mxu1 %v2960_v21  ;;  %3232 = vmatprep.subr.mxu0 %v2829_v23  ;;  %v2920_v5 = vld [vmem:[#allocation8 + $0x450] sm:$0xff]  ;;  %v2917_v8 = vld [vmem:[#allocation8 + $0x438] sm:$0xff] }
 0x3bf   : > { %3303 = vmatprep.subr.mxu1 %v2957_v24  ;;  %3233 = vmatpush1.msra.mxu0 %v2828_v25  ;;  %v2788_v10 = vld [vmem:[#allocation8 + $0x30] sm:$0xff]  ;;  %v2785_v33 = vld [vmem:[#allocation8 + $0x18] sm:$0xff] }
 0x3c0   : > { %3304 = vmatpush1.msra.mxu1 %v2956_v28  ;;  %3234 = vmatprep.subr.mxu0 %v2825_v29  ;;  %v2916_v12 = vld [vmem:[#allocation8 + $0x430] sm:$0xff]  ;;  %v2913_v13 = vld [vmem:[#allocation8 + $0x418] sm:$0xff] }
 0x3c1   : > { %3305 = vmatprep.subr.mxu1 %v2953_v9  ;;  %3235 = vmatpush1.msra.mxu0 %v2824_v31  ;;  %v2784_v14 = vld [vmem:[#allocation8 + $0x10] sm:$0xff]  ;;  %v2909_v15 = vld [vmem:[#allocation8 + $0x3f8] sm:$0xff] }
 0x3c2   : > { %3306 = vmatpush1.msra.mxu1 %v2952_v11  ;;  %3236 = vmatprep.subr.mxu0 %v2821_v32  ;;  %v2912_v36 = vld [vmem:[#allocation8 + $0x410] sm:$0xff]  ;;  %v3037_v43 = vld [vmem:[#allocation8 + $0x7f8] sm:$0xff] }
 0x3c3   : > { %3307 = vmatprep.subr.mxu1 %v2949_v63  ;;  %3237 = vmatpush1.msra.mxu0 %v2820_v2  ;;  %v2908_v20 = vld [vmem:[#allocation8 + $0x3f0] sm:$0xff]  ;;  %v2905_v26 = vld [vmem:[#allocation8 + $0x3d8] sm:$0xff] }
 0x3c4   : > { %3308 = vmatpush1.msra.mxu1 %v2948_v34  ;;  %3238 = vmatprep.subr.mxu0 %v2817_v35  ;;  %v3036_v16 = vld [vmem:[#allocation8 + $0x7f0] sm:$0xff]  ;;  %v3033_v18 = vld [vmem:[#allocation8 + $0x7d8] sm:$0xff] }
 0x3c5   : > { %3309 = vmatprep.subr.mxu1 %v2945_v37  ;;  %3239 = vmatpush1.msra.mxu0 %v2816_v38  ;;  %v2904_v19 = vld [vmem:[#allocation8 + $0x3d0] sm:$0xff]  ;;  %v2901_v23 = vld [vmem:[#allocation8 + $0x3b8] sm:$0xff] }
 0x3c6   : > { %3310 = vmatpush1.msra.mxu1 %v2944_v39  ;;  %3240 = vmatprep.subr.mxu0 %v2813_v40  ;;  %v3032_v21 = vld [vmem:[#allocation8 + $0x7d0] sm:$0xff]  ;;  %v3029_v24 = vld [vmem:[#allocation8 + $0x7b8] sm:$0xff] }
 0x3c7   : > { %3311 = vmatprep.subr.mxu1 %v2941_v41  ;;  %3241 = vmatpush1.msra.mxu0 %v2812_v42  ;;  %v2900_v25 = vld [vmem:[#allocation8 + $0x3b0] sm:$0xff]  ;;  %v2897_v29 = vld [vmem:[#allocation8 + $0x398] sm:$0xff] }
 0x3c8   : > { %3312 = vmatpush1.msra.mxu1 %v2940_v46  ;;  %3242 = vmatprep.subr.mxu0 %v2809_v47  ;;  %v3028_v28 = vld [vmem:[#allocation8 + $0x7b0] sm:$0xff]  ;;  %v3025_v9 = vld [vmem:[#allocation8 + $0x798] sm:$0xff] }
 0x3c9   : > { %3313 = vmatprep.subr.mxu1 %v2937_v48  ;;  %3243 = vmatpush1.msra.mxu0 %v2808_v50  ;;  %v2896_v31 = vld [vmem:[#allocation8 + $0x390] sm:$0xff]  ;;  %v2893_v32 = vld [vmem:[#allocation8 + $0x378] sm:$0xff] }
 0x3ca   : > { %3314 = vmatpush1.msra.mxu1 %v2936_v45  ;;  %3244 = vmatprep.subr.mxu0 %v2805_v51  ;;  %v3024_v11 = vld [vmem:[#allocation8 + $0x790] sm:$0xff]  ;;  %v3021_v63 = vld [vmem:[#allocation8 + $0x778] sm:$0xff] }
 0x3cb   : > { %3315 = vmatprep.subr.mxu1 %v2933_v52  ;;  %3245 = vmatpush1.msra.mxu0 %v2804_v54  ;;  %v2892_v2 = vld [vmem:[#allocation8 + $0x370] sm:$0xff]  ;;  %v2889_v35 = vld [vmem:[#allocation8 + $0x358] sm:$0xff] }
 0x3cc   : > { %3316 = vmatpush1.msra.mxu1 %v2932_v56  ;;  %3246 = vmatprep.subr.mxu0 %v2801_v57  ;;  %v3020_v34 = vld [vmem:[#allocation8 + $0x770] sm:$0xff]  ;;  %v3017_v37 = vld [vmem:[#allocation8 + $0x758] sm:$0xff] }
 0x3cd   : > { %3317 = vmatprep.subr.mxu1 %v2929_v59  ;;  %3247 = vmatpush1.msra.mxu0 %v2800_v44  ;;  %v2888_v38 = vld [vmem:[#allocation8 + $0x350] sm:$0xff]  ;;  %v2885_v40 = vld [vmem:[#allocation8 + $0x338] sm:$0xff] }
 0x3ce   : > { %3318 = vmatpush1.msra.mxu1 %v2928_v60  ;;  %3248 = vmatprep.subr.mxu0 %v2797_v58  ;;  %v3016_v39 = vld [vmem:[#allocation8 + $0x750] sm:$0xff]  ;;  %v3013_v41 = vld [vmem:[#allocation8 + $0x738] sm:$0xff] }
 0x3cf   : > { %3319 = vmatprep.subr.mxu1 %v2925_v61  ;;  %3249 = vmatpush1.msra.mxu0 %v2796_v49  ;;  %v2884_v42 = vld [vmem:[#allocation8 + $0x330] sm:$0xff]  ;;  %v2881_v47 = vld [vmem:[#allocation8 + $0x318] sm:$0xff] }
 0x3d0   : > { %3320 = vmatpush1.msra.mxu1 %v2924_v27  ;;  %3250 = vmatprep.subr.mxu0 %v2793_v0  ;;  %v3012_v46 = vld [vmem:[#allocation8 + $0x730] sm:$0xff]  ;;  %v3009_v48 = vld [vmem:[#allocation8 + $0x718] sm:$0xff] }
 0x3d1   : > { %3321 = vmatprep.subr.mxu1 %v2921_v17  ;;  %3251 = vmatpush1.msra.mxu0 %v2792_v22  ;;  %v2880_v50 = vld [vmem:[#allocation8 + $0x310] sm:$0xff]  ;;  %v2877_v51 = vld [vmem:[#allocation8 + $0x2f8] sm:$0xff] }
 0x3d2   : > { %3322 = vmatpush1.msra.mxu1 %v2920_v5  ;;  %3252 = vmatprep.subr.mxu0 %v2789_v7  ;;  %v3008_v45 = vld [vmem:[#allocation8 + $0x710] sm:$0xff]  ;;  %v3005_v52 = vld [vmem:[#allocation8 + $0x6f8] sm:$0xff] }
 0x3d3   : > { %3323 = vmatprep.subr.mxu1 %v2917_v8  ;;  %3253 = vmatpush1.msra.mxu0 %v2788_v10  ;;  %v2876_v54 = vld [vmem:[#allocation8 + $0x2f0] sm:$0xff]  ;;  %v2873_v57 = vld [vmem:[#allocation8 + $0x2d8] sm:$0xff] }
 0x3d4   : > { %3324 = vmatpush1.msra.mxu1 %v2916_v12  ;;  %3254 = vmatprep.subr.mxu0 %v2785_v33  ;;  %v3004_v56 = vld [vmem:[#allocation8 + $0x6f0] sm:$0xff]  ;;  %v3001_v59 = vld [vmem:[#allocation8 + $0x6d8] sm:$0xff] }
 0x3d5   : > { %3325 = vmatprep.subr.mxu1 %v2913_v13  ;;  %3255 = vmatpush1.msra.mxu0 %v2784_v14  ;;  %v2872_v44 = vld [vmem:[#allocation8 + $0x2d0] sm:$0xff]  ;;  %v2869_v58 = vld [vmem:[#allocation8 + $0x2b8] sm:$0xff] }
 0x3d6   : > { %3326 = vmatpush1.msra.mxu1 %v2912_v36  ;;  %3256 = vmatprep.subr.mxu0 %v2909_v15  ;;  %v3000_v60 = vld [vmem:[#allocation8 + $0x6d0] sm:$0xff]  ;;  %v2997_v61 = vld [vmem:[#allocation8 + $0x6b8] sm:$0xff] }
 0x3d7   : > { %3327 = vmatprep.subr.mxu1 %v3037_v43  ;;  %3257 = vmatpush2.msra.mxu0 %v2908_v20  ;;  %v2868_v49 = vld [vmem:[#allocation8 + $0x2b0] sm:$0xff]  ;;  %v2865_v0 = vld [vmem:[#allocation8 + $0x298] sm:$0xff] }
 0x3d8   : > { %3328 = vmatpush2.msra.mxu1 %v3036_v16  ;;  %3258 = vmatprep.subr.mxu0 %v2905_v26  ;;  %v2996_v27 = vld [vmem:[#allocation8 + $0x6b0] sm:$0xff]  ;;  %v2993_v17 = vld [vmem:[#allocation8 + $0x698] sm:$0xff] }
 0x3d9   : > { %3329 = vmatprep.subr.mxu1 %v3033_v18  ;;  %3259 = vmatpush2.msra.mxu0 %v2904_v19  ;;  %v2864_v22 = vld [vmem:[#allocation8 + $0x290] sm:$0xff]  ;;  %v2861_v7 = vld [vmem:[#allocation8 + $0x278] sm:$0xff] }
 0x3da   : > { %3330 = vmatpush2.msra.mxu1 %v3032_v21  ;;  %3260 = vmatprep.subr.mxu0 %v2901_v23  ;;  %v2992_v5 = vld [vmem:[#allocation8 + $0x690] sm:$0xff]  ;;  %v2989_v8 = vld [vmem:[#allocation8 + $0x678] sm:$0xff] }
 0x3db   : > { %3331 = vmatprep.subr.mxu1 %v3029_v24  ;;  %3261 = vmatpush2.msra.mxu0 %v2900_v25  ;;  %v2860_v10 = vld [vmem:[#allocation8 + $0x270] sm:$0xff]  ;;  %v2857_v33 = vld [vmem:[#allocation8 + $0x258] sm:$0xff]  ;;  %v3430_v24 = vld [vmem:[#allocation11 + $0x1e0] sm:$0xff] }
 0x3dc   : > { %3332 = vmatpush2.msra.mxu1 %v3028_v28  ;;  %3262 = vmatprep.subr.mxu0 %v2897_v29  ;;  %v2988_v12 = vld [vmem:[#allocation8 + $0x670] sm:$0xff]  ;;  %v2985_v13 = vld [vmem:[#allocation8 + $0x658] sm:$0xff]  ;;  %v3426_v28 = vld [vmem:[#allocation11 + $0x1c0] sm:$0xff] }
 0x3dd   : > { %3333 = vmatprep.subr.mxu1 %v3025_v9  ;;  %3263 = vmatpush2.msra.mxu0 %v2896_v31  ;;  %v2856_v14 = vld [vmem:[#allocation8 + $0x250] sm:$0xff]  ;;  %v2853_v15 = vld [vmem:[#allocation8 + $0x238] sm:$0xff]  ;;  %v3422_v9 = vld [vmem:[#allocation11 + $0x1a0] sm:$0xff] }
 0x3de   : > { %3334 = vmatpush2.msra.mxu1 %v3024_v11  ;;  %3264 = vmatprep.subr.mxu0 %v2893_v32  ;;  %v2984_v36 = vld [vmem:[#allocation8 + $0x650] sm:$0xff]  ;;  %v2981_v43 = vld [vmem:[#allocation8 + $0x638] sm:$0xff] }
 0x3df   : > { %3335 = vmatprep.subr.mxu1 %v3021_v63  ;;  %3265 = vmatpush2.msra.mxu0 %v2892_v2  ;;  %v2852_v20 = vld [vmem:[#allocation8 + $0x230] sm:$0xff]  ;;  %v2849_v26 = vld [vmem:[#allocation8 + $0x218] sm:$0xff]  ;;  %v3410_v2 = vld [vmem:[#allocation11 + $0x140] sm:$0xff] }
 0x3e0   : > { %3336 = vmatpush2.msra.mxu1 %v3020_v34  ;;  %3266 = vmatprep.subr.mxu0 %v2889_v35  ;;  %v2980_v16 = vld [vmem:[#allocation8 + $0x630] sm:$0xff]  ;;  %v2977_v18 = vld [vmem:[#allocation8 + $0x618] sm:$0xff]  ;;  %v3554_v34 = vld [vmem:[#allocation11 + $0x5c0] sm:$0xff] }
 0x3e1   : > { %3337 = vmatprep.subr.mxu1 %v3017_v37  ;;  %3267 = vmatpush2.msra.mxu0 %v2888_v38  ;;  %v2848_v19 = vld [vmem:[#allocation8 + $0x210] sm:$0xff]  ;;  %v3406_v38 = vld [vmem:[#allocation11 + $0x120] sm:$0xff] }
 0x3e2   : > { %3338 = vmatpush2.msra.mxu1 %v3016_v39  ;;  %3268 = vmatprep.subr.mxu0 %v2885_v40  ;;  %v2976_v21 = vld [vmem:[#allocation8 + $0x610] sm:$0xff]  ;;  %v3550_v39 = vld [vmem:[#allocation11 + $0x5a0] sm:$0xff] }
 0x3e3   : > { %3339 = vmatprep.subr.mxu1 %v3013_v41  ;;  %3269 = vmatpush2.msra.mxu0 %v2884_v42  ;;  %v3431_v23 = vld [vmem:[#allocation11 + $0x1e8] sm:$0xff]  ;;  %v3402_v42 = vld [vmem:[#allocation11 + $0x100] sm:$0xff] }
 0x3e4   : > { %3340 = vmatpush2.msra.mxu1 %v3012_v46  ;;  %3270 = vmatprep.subr.mxu0 %v2881_v47  ;;  %v3427_v25 = vld [vmem:[#allocation11 + $0x1c8] sm:$0xff]  ;;  %v3546_v46 = vld [vmem:[#allocation11 + $0x580] sm:$0xff] }
 0x3e5   : > { %3341 = vmatprep.subr.mxu1 %v3009_v48  ;;  %3271 = vmatpush2.msra.mxu0 %v2880_v50  ;;  %v3423_v29 = vld [vmem:[#allocation11 + $0x1a8] sm:$0xff]  ;;  %v3398_v50 = vld [vmem:[#allocation11 + $0xe0] sm:$0xff] }
 0x3e6   : > { %3342 = vmatpush2.msra.mxu1 %v3008_v45  ;;  %3272 = vmatprep.subr.mxu0 %v2877_v51  ;;  %v3419_v31 = vld [vmem:[#allocation11 + $0x188] sm:$0xff]  ;;  %v3542_v45 = vld [vmem:[#allocation11 + $0x560] sm:$0xff] }
 0x3e7   : > { %3343 = vmatprep.subr.mxu1 %v3005_v52  ;;  %3273 = vmatpush2.msra.mxu0 %v2876_v54  ;;  %v3415_v11 = vld [vmem:[#allocation11 + $0x168] sm:$0xff]  ;;  %v3394_v54 = vld [vmem:[#allocation11 + $0xc0] sm:$0xff] }
 0x3e8   : > { %3344 = vmatpush2.msra.mxu1 %v3004_v56  ;;  %3274 = vmatprep.subr.mxu0 %v2873_v57  ;;  %v3559_v32 = vld [vmem:[#allocation11 + $0x5e8] sm:$0xff]  ;;  %v3538_v56 = vld [vmem:[#allocation11 + $0x540] sm:$0xff] }
 0x3e9   : > { %3345 = vmatprep.subr.mxu1 %v3001_v59  ;;  %3275 = vmatpush2.msra.mxu0 %v2872_v44  ;;  %v3555_v63 = vld [vmem:[#allocation11 + $0x5c8] sm:$0xff]  ;;  %v3390_v44 = vld [vmem:[#allocation11 + $0xa0] sm:$0xff] }
 0x3ea   : > { %3346 = vmatpush2.msra.mxu1 %v3000_v60  ;;  %3276 = vmatprep.subr.mxu0 %v2869_v58  ;;  %v3407_v35 = vld [vmem:[#allocation11 + $0x128] sm:$0xff]  ;;  %v3534_v60 = vld [vmem:[#allocation11 + $0x520] sm:$0xff] }
 0x3eb   : > { %3347 = vmatprep.subr.mxu1 %v2997_v61  ;;  %3277 = vmatpush2.msra.mxu0 %v2868_v49  ;;  %v3551_v37 = vld [vmem:[#allocation11 + $0x5a8] sm:$0xff]  ;;  %v3386_v49 = vld [vmem:[#allocation11 + $0x80] sm:$0xff] }
 0x3ec   : > { %3348 = vmatpush2.msra.mxu1 %v2996_v27  ;;  %3278 = vmatprep.subr.mxu0 %v2865_v0  ;;  %v3403_v40 = vld [vmem:[#allocation11 + $0x108] sm:$0xff]  ;;  %v3530_v27 = vld [vmem:[#allocation11 + $0x500] sm:$0xff] }
 0x3ed   : > { %3349 = vmatprep.subr.mxu1 %v2993_v17  ;;  %3279 = vmatpush2.msra.mxu0 %v2864_v22  ;;  %v3547_v41 = vld [vmem:[#allocation11 + $0x588] sm:$0xff]  ;;  %v3382_v22 = vld [vmem:[#allocation11 + $0x60] sm:$0xff] }
 0x3ee   : > { %3350 = vmatpush2.msra.mxu1 %v2992_v5  ;;  %3280 = vmatprep.subr.mxu0 %v2861_v7  ;;  %v3399_v47 = vld [vmem:[#allocation11 + $0xe8] sm:$0xff]  ;;  %v3526_v5 = vld [vmem:[#allocation11 + $0x4e0] sm:$0xff] }
 0x3ef   : > { %3351 = vmatprep.subr.mxu1 %v2989_v8  ;;  %3281 = vmatpush2.msra.mxu0 %v2860_v10  ;;  %v3543_v48 = vld [vmem:[#allocation11 + $0x568] sm:$0xff]  ;;  %v3378_v10 = vld [vmem:[#allocation11 + $0x40] sm:$0xff] }
 0x3f0   : > { %3352 = vmatpush2.msra.mxu1 %v2988_v12  ;;  %3282 = vmatprep.subr.mxu0 %v2857_v33  ;;  %v3395_v51 = vld [vmem:[#allocation11 + $0xc8] sm:$0xff]  ;;  %v3522_v12 = vld [vmem:[#allocation11 + $0x4c0] sm:$0xff] }
 0x3f1   : > { %3353 = vmatprep.subr.mxu1 %v2985_v13  ;;  %3283 = vmatpush2.msra.mxu0 %v2856_v14  ;;  %v3539_v52 = vld [vmem:[#allocation11 + $0x548] sm:$0xff]  ;;  %v3374_v14 = vld [vmem:[#allocation11 + $0x20] sm:$0xff] }
 0x3f2   : > { %3354 = vmatpush2.msra.mxu1 %v2984_v36  ;;  %3284 = vmatprep.subr.mxu0 %v2853_v15  ;;  %v3391_v57 = vld [vmem:[#allocation11 + $0xa8] sm:$0xff]  ;;  %v3518_v36 = vld [vmem:[#allocation11 + $0x4a0] sm:$0xff] }
 0x3f3   : > { %3355 = vmatprep.subr.mxu1 %v2981_v43  ;;  %3285 = vmatpush2.msra.mxu0 %v2852_v20  ;;  %v3535_v59 = vld [vmem:[#allocation11 + $0x528] sm:$0xff]  ;;  %v3370_v20 = vld [vmem:[#allocation11] sm:$0xff] }
 0x3f4   : > { %3356 = vmatpush2.msra.mxu1 %v2980_v16  ;;  %3286 = vmatprep.subr.mxu0 %v2849_v26  ;;  %v3387_v58 = vld [vmem:[#allocation11 + $0x88] sm:$0xff]  ;;  %v3514_v16 = vld [vmem:[#allocation11 + $0x480] sm:$0xff] }
 0x3f5   : > { %3357 = vmatprep.subr.mxu1 %v2977_v18  ;;  %3287 = vmatpush2.msra.mxu0 %v2848_v19  ;;  %v3531_v61 = vld [vmem:[#allocation11 + $0x508] sm:$0xff]  ;;  %v3494_v19 = vld [vmem:[#allocation11 + $0x3e0] sm:$0xff] }
 0x3f6   : > { %3288 = vmatprep.mubr.f32.mxu0 %v6096_v1  ;;  %3358 = vmatpush2.msra.mxu1 %v2976_v21  ;;  %v3418_v1 = vld [vmem:[#allocation11 + $0x180] sm:$0xff]  ;;  %v3383_v0 = vld [vmem:[#allocation11 + $0x68] sm:$0xff] }
 0x3f7   : > { %3359 = vmatprep.mubr.f32.mxu1 %v6100_v53  ;;  %3289 = vmatmul.mubr.f32.vlgmr.msra.gmra.mxu0 %v6089_v55  ;;  %v3414_v53 = vld [vmem:[#allocation11 + $0x160] sm:$0xff]  ;;  %v3527_v17 = vld [vmem:[#allocation11 + $0x4e8] sm:$0xff] }
 0x3f8   : > { %3360 = vmatmul.mubr.f32.vlgmr.msra.gmra.mxu1 %v6092_v62  ;;  %3648 = vmatprep.subr.mxu0 %v3431_v23  ;;  %v3558_v55 = vld [vmem:[#allocation11 + $0x5e0] sm:$0xff]  ;;  %v3411_v62 = vld [vmem:[#allocation11 + $0x148] sm:$0xff] }
 0x3f9   : > { %3649 = vmatpush1.msra.mxu0 %v3430_v24  ;;  %3719 = vmatprep.subr.mxu1 %v3559_v32  ;;  %v3379_v7 = vld [vmem:[#allocation11 + $0x48] sm:$0xff]  ;;  %v3510_v21 = vld [vmem:[#allocation11 + $0x460] sm:$0xff] }
 0x3fa   : > { %3650 = vmatprep.subr.mxu0 %v3427_v25  ;;  %3720 = vmatpush1.msra.mxu1 %v3558_v55  ;;  %v3523_v8 = vld [vmem:[#allocation11 + $0x4c8] sm:$0xff]  ;;  %v3490_v25 = vld [vmem:[#allocation11 + $0x3c0] sm:$0xff] }
 0x3fb   : > { %3651 = vmatpush1.msra.mxu0 %v3426_v28  ;;  %3721 = vmatprep.subr.mxu1 %v3555_v63  ;;  %v3375_v33 = vld [vmem:[#allocation11 + $0x28] sm:$0xff]  ;;  %v3506_v28 = vld [vmem:[#allocation11 + $0x440] sm:$0xff] }
 0x3fc   : > { %3652 = vmatprep.subr.mxu0 %v3423_v29  ;;  %3722 = vmatpush1.msra.mxu1 %v3554_v34  ;;  %v3519_v13 = vld [vmem:[#allocation11 + $0x4a8] sm:$0xff]  ;;  %v3498_v55 = vld [vmem:[#allocation11 + $0x400] sm:$0xff] }
 0x3fd   : > { %3653 = vmatpush1.msra.mxu0 %v3422_v9  ;;  %3723 = vmatprep.subr.mxu1 %v3551_v37  ;;  %v3371_v15 = vld [vmem:[#allocation11 + $0x8] sm:$0xff]  ;;  %v3622_v34 = vld [vmem:[#allocation11 + $0x7e0] sm:$0xff] }
 0x3fe   : > { %3654 = vmatprep.subr.mxu0 %v3419_v31  ;;  %3724 = vmatpush1.msra.mxu1 %v3550_v39  ;;  %v3515_v43 = vld [vmem:[#allocation11 + $0x488] sm:$0xff]  ;;  %v3486_v31 = vld [vmem:[#allocation11 + $0x3a0] sm:$0xff] }
 0x3ff   : > { %3655 = vmatpush1.msra.mxu0 %v3418_v1  ;;  %3725 = vmatprep.subr.mxu1 %v3547_v41  ;;  %v3495_v26 = vld [vmem:[#allocation11 + $0x3e8] sm:$0xff]  ;;  %v3502_v1 = vld [vmem:[#allocation11 + $0x420] sm:$0xff] }
 0x400   : > { %3656 = vmatprep.subr.mxu0 %v3415_v11  ;;  %3726 = vmatpush1.msra.mxu1 %v3546_v46  ;;  %v3511_v18 = vld [vmem:[#allocation11 + $0x468] sm:$0xff]  ;;  %v3618_v39 = vld [vmem:[#allocation11 + $0x7c0] sm:$0xff] }
 0x401   : > { %3657 = vmatpush1.msra.mxu0 %v3414_v53  ;;  %3727 = vmatprep.subr.mxu1 %v3543_v48  ;;  %v3491_v23 = vld [vmem:[#allocation11 + $0x3c8] sm:$0xff]  ;;  %v3482_v53 = vld [vmem:[#allocation11 + $0x380] sm:$0xff] }
 0x402   : > { %3658 = vmatprep.subr.mxu0 %v3411_v62  ;;  %3728 = vmatpush1.msra.mxu1 %v3542_v45  ;;  %v3507_v24 = vld [vmem:[#allocation11 + $0x448] sm:$0xff]  ;;  %v3614_v46 = vld [vmem:[#allocation11 + $0x7a0] sm:$0xff] }
 0x403   : > { %3659 = vmatpush1.msra.mxu0 %v3410_v2  ;;  %3729 = vmatprep.subr.mxu1 %v3539_v52  ;;  %v3487_v29 = vld [vmem:[#allocation11 + $0x3a8] sm:$0xff]  ;;  %v3478_v2 = vld [vmem:[#allocation11 + $0x360] sm:$0xff] }
 0x404   : > { %3660 = vmatprep.subr.mxu0 %v3407_v35  ;;  %3730 = vmatpush1.msra.mxu1 %v3538_v56  ;;  %v3503_v9 = vld [vmem:[#allocation11 + $0x428] sm:$0xff]  ;;  %v3610_v45 = vld [vmem:[#allocation11 + $0x780] sm:$0xff] }
 0x405   : > { %3661 = vmatpush1.msra.mxu0 %v3406_v38  ;;  %3731 = vmatprep.subr.mxu1 %v3535_v59  ;;  %v3483_v11 = vld [vmem:[#allocation11 + $0x388] sm:$0xff]  ;;  %v3474_v38 = vld [vmem:[#allocation11 + $0x340] sm:$0xff] }
 0x406   : > { %3662 = vmatprep.subr.mxu0 %v3403_v40  ;;  %3732 = vmatpush1.msra.mxu1 %v3534_v60  ;;  %v3499_v32 = vld [vmem:[#allocation11 + $0x408] sm:$0xff]  ;;  %v3606_v56 = vld [vmem:[#allocation11 + $0x760] sm:$0xff] }
 0x407   : > { %3663 = vmatpush1.msra.mxu0 %v3402_v42  ;;  %3733 = vmatprep.subr.mxu1 %v3531_v61  ;;  %v3479_v62 = vld [vmem:[#allocation11 + $0x368] sm:$0xff]  ;;  %v3470_v42 = vld [vmem:[#allocation11 + $0x320] sm:$0xff] }
 0x408   : > { %3664 = vmatprep.subr.mxu0 %v3399_v47  ;;  %3734 = vmatpush1.msra.mxu1 %v3530_v27  ;;  %v3623_v63 = vld [vmem:[#allocation11 + $0x7e8] sm:$0xff]  ;;  %v3602_v60 = vld [vmem:[#allocation11 + $0x740] sm:$0xff] }
 0x409   : > { %3665 = vmatpush1.msra.mxu0 %v3398_v50  ;;  %3735 = vmatprep.subr.mxu1 %v3527_v17  ;;  %v3475_v35 = vld [vmem:[#allocation11 + $0x348] sm:$0xff]  ;;  %v3466_v50 = vld [vmem:[#allocation11 + $0x300] sm:$0xff] }
 0x40a   : > { %3666 = vmatprep.subr.mxu0 %v3395_v51  ;;  %3736 = vmatpush1.msra.mxu1 %v3526_v5  ;;  %v3619_v37 = vld [vmem:[#allocation11 + $0x7c8] sm:$0xff]  ;;  %v3598_v27 = vld [vmem:[#allocation11 + $0x720] sm:$0xff] }
 0x40b   : > { %3667 = vmatpush1.msra.mxu0 %v3394_v54  ;;  %3737 = vmatprep.subr.mxu1 %v3523_v8  ;;  %v3471_v40 = vld [vmem:[#allocation11 + $0x328] sm:$0xff]  ;;  %v3462_v54 = vld [vmem:[#allocation11 + $0x2e0] sm:$0xff] }
 0x40c   : > { %3668 = vmatprep.subr.mxu0 %v3391_v57  ;;  %3738 = vmatpush1.msra.mxu1 %v3522_v12  ;;  %v3615_v41 = vld [vmem:[#allocation11 + $0x7a8] sm:$0xff]  ;;  %v3594_v5 = vld [vmem:[#allocation11 + $0x700] sm:$0xff] }
 0x40d   : > { %3669 = vmatpush1.msra.mxu0 %v3390_v44  ;;  %3739 = vmatprep.subr.mxu1 %v3519_v13  ;;  %v3467_v47 = vld [vmem:[#allocation11 + $0x308] sm:$0xff]  ;;  %v3458_v44 = vld [vmem:[#allocation11 + $0x2c0] sm:$0xff] }
 0x40e   : > { %3670 = vmatprep.subr.mxu0 %v3387_v58  ;;  %3740 = vmatpush1.msra.mxu1 %v3518_v36  ;;  %v3611_v48 = vld [vmem:[#allocation11 + $0x788] sm:$0xff]  ;;  %v3590_v12 = vld [vmem:[#allocation11 + $0x6e0] sm:$0xff] }
 0x40f   : > { %3671 = vmatpush1.msra.mxu0 %v3386_v49  ;;  %3741 = vmatprep.subr.mxu1 %v3515_v43  ;;  %v3463_v51 = vld [vmem:[#allocation11 + $0x2e8] sm:$0xff]  ;;  %v3454_v49 = vld [vmem:[#allocation11 + $0x2a0] sm:$0xff] }
 0x410   : > { %3672 = vmatprep.subr.mxu0 %v3383_v0  ;;  %3742 = vmatpush1.msra.mxu1 %v3514_v16  ;;  %v3607_v52 = vld [vmem:[#allocation11 + $0x768] sm:$0xff]  ;;  %v3586_v36 = vld [vmem:[#allocation11 + $0x6c0] sm:$0xff] }
 0x411   : > { %3673 = vmatpush1.msra.mxu0 %v3382_v22  ;;  %3743 = vmatprep.subr.mxu1 %v3511_v18  ;;  %v3459_v57 = vld [vmem:[#allocation11 + $0x2c8] sm:$0xff]  ;;  %v3450_v22 = vld [vmem:[#allocation11 + $0x280] sm:$0xff] }
 0x412   : > { %3674 = vmatprep.subr.mxu0 %v3379_v7  ;;  %3744 = vmatpush1.msra.mxu1 %v3510_v21  ;;  %v3603_v59 = vld [vmem:[#allocation11 + $0x748] sm:$0xff]  ;;  %v3582_v16 = vld [vmem:[#allocation11 + $0x6a0] sm:$0xff]  ;;  %v3433_v21 = vld [vmem:[#allocation11 + $0x1f8] sm:$0xff] }
 0x413   : > { %3675 = vmatpush1.msra.mxu0 %v3378_v10  ;;  %3745 = vmatprep.subr.mxu1 %v3507_v24  ;;  %v3455_v58 = vld [vmem:[#allocation11 + $0x2a8] sm:$0xff]  ;;  %v3446_v10 = vld [vmem:[#allocation11 + $0x260] sm:$0xff] }
 0x414   : > { %3676 = vmatprep.subr.mxu0 %v3375_v33  ;;  %3746 = vmatpush1.msra.mxu1 %v3506_v28  ;;  %v3599_v61 = vld [vmem:[#allocation11 + $0x728] sm:$0xff] }
 0x415   : > { %3677 = vmatpush1.msra.mxu0 %v3374_v14  ;;  %3747 = vmatprep.subr.mxu1 %v3503_v9  ;;  %v3451_v0 = vld [vmem:[#allocation11 + $0x288] sm:$0xff]  ;;  %v3442_v14 = vld [vmem:[#allocation11 + $0x240] sm:$0xff] }
 0x416   : > { %3678 = vmatprep.subr.mxu0 %v3371_v15  ;;  %3748 = vmatpush1.msra.mxu1 %v3502_v1  ;;  %v3595_v17 = vld [vmem:[#allocation11 + $0x708] sm:$0xff] }
 0x417   : > { %3679 = vmatpush1.msra.mxu0 %v3370_v20  ;;  %3749 = vmatprep.subr.mxu1 %v3499_v32  ;;  %v3447_v7 = vld [vmem:[#allocation11 + $0x268] sm:$0xff]  ;;  %v3438_v20 = vld [vmem:[#allocation11 + $0x220] sm:$0xff]  ;;  %v3561_v32 = vld [vmem:[#allocation11 + $0x5f8] sm:$0xff] }
 0x418   : > { %3680 = vmatprep.subr.mxu0 %v3495_v26  ;;  %3750 = vmatpush1.msra.mxu1 %v3498_v55  ;;  %v3591_v8 = vld [vmem:[#allocation11 + $0x6e8] sm:$0xff] }
 0x419   : > { %3681 = vmatpush2.msra.mxu0 %v3494_v19  ;;  %3751 = vmatprep.subr.mxu1 %v3623_v63  ;;  %v3443_v33 = vld [vmem:[#allocation11 + $0x248] sm:$0xff]  ;;  %v3434_v19 = vld [vmem:[#allocation11 + $0x200] sm:$0xff] }
 0x41a   : > { %3682 = vmatprep.subr.mxu0 %v3491_v23  ;;  %3752 = vmatpush2.msra.mxu1 %v3622_v34  ;;  %v3587_v13 = vld [vmem:[#allocation11 + $0x6c8] sm:$0xff]  ;;  %v3578_v23 = vld [vmem:[#allocation11 + $0x680] sm:$0xff] }
 0x41b   : > { %3683 = vmatpush2.msra.mxu0 %v3490_v25  ;;  %3753 = vmatprep.subr.mxu1 %v3619_v37  ;;  %v3439_v15 = vld [vmem:[#allocation11 + $0x228] sm:$0xff]  ;;  %v3574_v25 = vld [vmem:[#allocation11 + $0x660] sm:$0xff] }
 0x41c   : > { %3684 = vmatprep.subr.mxu0 %v3487_v29  ;;  %3754 = vmatpush2.msra.mxu1 %v3618_v39  ;;  %v3583_v43 = vld [vmem:[#allocation11 + $0x6a8] sm:$0xff]  ;;  %v3570_v29 = vld [vmem:[#allocation11 + $0x640] sm:$0xff] }
 0x41d   : > { %3685 = vmatpush2.msra.mxu0 %v3486_v31  ;;  %3755 = vmatprep.subr.mxu1 %v3615_v41  ;;  %v3435_v26 = vld [vmem:[#allocation11 + $0x208] sm:$0xff]  ;;  %v3566_v31 = vld [vmem:[#allocation11 + $0x620] sm:$0xff] }
 0x41e   : > { %3686 = vmatprep.subr.mxu0 %v3483_v11  ;;  %3756 = vmatpush2.msra.mxu1 %v3614_v46  ;;  %v3579_v18 = vld [vmem:[#allocation11 + $0x688] sm:$0xff]  ;;  %v3562_v11 = vld [vmem:[#allocation11 + $0x600] sm:$0xff]  ;;  %v3432_v46 = vld [vmem:[#allocation11 + $0x1f0] sm:$0xff] }
 0x41f   : > { %3687 = vmatpush2.msra.mxu0 %v3482_v53  ;;  %3757 = vmatprep.subr.mxu1 %v3611_v48  ;;  %v3575_v24 = vld [vmem:[#allocation11 + $0x668] sm:$0xff]  ;;  %v6110_v53 = vld [vmem:[#allocation9] sm:$0xf]  ;;  %v3428_v48 = vld [vmem:[#allocation11 + $0x1d0] sm:$0xff] }
 0x420   : > { %3688 = vmatprep.subr.mxu0 %v3479_v62  ;;  %3758 = vmatpush2.msra.mxu1 %v3610_v45  ;;  %v3571_v28 = vld [vmem:[#allocation11 + $0x648] sm:$0xff]  ;;  %v3043_v55 = vrot.slane %v6110_v53, %v6071_v30  ;;  %v3047_v62 = vrot.slane %v6110_v53, %v6074_v3  ;;  %v3424_v45 = vld [vmem:[#allocation11 + $0x1b0] sm:$0xff] }
 0x421   : > { %3689 = vmatpush2.msra.mxu0 %v3478_v2  ;;  %3759 = vmatprep.subr.mxu1 %v3607_v52  ;;  %v3567_v9 = vld [vmem:[#allocation11 + $0x628] sm:$0xff]  ;;  %v3420_v52 = vld [vmem:[#allocation11 + $0x190] sm:$0xff] }
 0x422   : > { %3690 = vmatprep.subr.mxu0 %v3475_v35  ;;  %3760 = vmatpush2.msra.mxu1 %v3606_v56  ;;  %v3563_v1 = vld [vmem:[#allocation11 + $0x608] sm:$0xff]  ;;  %v3416_v56 = vld [vmem:[#allocation11 + $0x170] sm:$0xff] }
 0x423   : > { %3691 = vmatpush2.msra.mxu0 %v3474_v38  ;;  %3761 = vmatprep.subr.mxu1 %v3603_v59  ;;  %v3412_v59 = vld [vmem:[#allocation11 + $0x150] sm:$0xff] }
 0x424   : > { %3692 = vmatprep.subr.mxu0 %v3471_v40  ;;  %3762 = vmatpush2.msra.mxu1 %v3602_v60  ;;  %v3408_v60 = vld [vmem:[#allocation11 + $0x130] sm:$0xff] }
 0x425   : > { %3693 = vmatpush2.msra.mxu0 %v3470_v42  ;;  %3763 = vmatprep.subr.mxu1 %v3599_v61  ;;  %v3404_v61 = vld [vmem:[#allocation11 + $0x110] sm:$0xff] }
 0x426   : > { %3694 = vmatprep.subr.mxu0 %v3467_v47  ;;  %3764 = vmatpush2.msra.mxu1 %v3598_v27  ;;  %v3429_v47 = vld [vmem:[#allocation11 + $0x1d8] sm:$0xff]  ;;  %v3400_v27 = vld [vmem:[#allocation11 + $0xf0] sm:$0xff] }
 0x427   : > { %3695 = vmatpush2.msra.mxu0 %v3466_v50  ;;  %3765 = vmatprep.subr.mxu1 %v3595_v17  ;;  %v3425_v50 = vld [vmem:[#allocation11 + $0x1b8] sm:$0xff]  ;;  %v3396_v17 = vld [vmem:[#allocation11 + $0xd0] sm:$0xff] }
 0x428   : > { %3696 = vmatprep.subr.mxu0 %v3463_v51  ;;  %3766 = vmatpush2.msra.mxu1 %v3594_v5  ;;  %v3421_v51 = vld [vmem:[#allocation11 + $0x198] sm:$0xff]  ;;  %v3392_v5 = vld [vmem:[#allocation11 + $0xb0] sm:$0xff] }
 0x429   : > { %3697 = vmatpush2.msra.mxu0 %v3462_v54  ;;  %3767 = vmatprep.subr.mxu1 %v3591_v8  ;;  %v3417_v54 = vld [vmem:[#allocation11 + $0x178] sm:$0xff]  ;;  %v3388_v8 = vld [vmem:[#allocation11 + $0x90] sm:$0xff] }
 0x42a   : > { %3698 = vmatprep.subr.mxu0 %v3459_v57  ;;  %3768 = vmatpush2.msra.mxu1 %v3590_v12  ;;  %v3413_v57 = vld [vmem:[#allocation11 + $0x158] sm:$0xff]  ;;  %v3384_v12 = vld [vmem:[#allocation11 + $0x70] sm:$0xff] }
 0x42b   : > { %3699 = vmatpush2.msra.mxu0 %v3458_v44  ;;  %3769 = vmatprep.subr.mxu1 %v3587_v13  ;;  %v3409_v44 = vld [vmem:[#allocation11 + $0x138] sm:$0xff]  ;;  %v3380_v13 = vld [vmem:[#allocation11 + $0x50] sm:$0xff] }
 0x42c   : > { %3700 = vmatprep.subr.mxu0 %v3455_v58  ;;  %3770 = vmatpush2.msra.mxu1 %v3586_v36  ;;  %v3405_v58 = vld [vmem:[#allocation11 + $0x118] sm:$0xff]  ;;  %v3376_v36 = vld [vmem:[#allocation11 + $0x30] sm:$0xff] }
 0x42d   : > { %3701 = vmatpush2.msra.mxu0 %v3454_v49  ;;  %3771 = vmatprep.subr.mxu1 %v3583_v43  ;;  %v3401_v49 = vld [vmem:[#allocation11 + $0xf8] sm:$0xff]  ;;  %v3372_v43 = vld [vmem:[#allocation11 + $0x10] sm:$0xff] }
 0x42e   : > { %3702 = vmatprep.subr.mxu0 %v3451_v0  ;;  %3772 = vmatpush2.msra.mxu1 %v3582_v16  ;;  %v3397_v0 = vld [vmem:[#allocation11 + $0xd8] sm:$0xff]  ;;  %v3496_v16 = vld [vmem:[#allocation11 + $0x3f0] sm:$0xff] }
 0x42f   : > { %3703 = vmatpush2.msra.mxu0 %v3450_v22  ;;  %3773 = vmatprep.subr.mxu1 %v3579_v18  ;;  %v3393_v22 = vld [vmem:[#allocation11 + $0xb8] sm:$0xff]  ;;  %v3492_v18 = vld [vmem:[#allocation11 + $0x3d0] sm:$0xff] }
 0x430   : > { %3704 = vmatprep.subr.mxu0 %v3447_v7  ;;  %3774 = vmatpush2.msra.mxu1 %v3578_v23  ;;  %v3389_v7 = vld [vmem:[#allocation11 + $0x98] sm:$0xff] }
 0x431   : > { %3705 = vmatpush2.msra.mxu0 %v3446_v10  ;;  %3775 = vmatprep.subr.mxu1 %v3575_v24  ;;  %v3385_v10 = vld [vmem:[#allocation11 + $0x78] sm:$0xff]  ;;  %v3484_v24 = vld [vmem:[#allocation11 + $0x390] sm:$0xff] }
 0x432   : > { %3706 = vmatprep.subr.mxu0 %v3443_v33  ;;  %3776 = vmatpush2.msra.mxu1 %v3574_v25  ;;  %v3381_v33 = vld [vmem:[#allocation11 + $0x58] sm:$0xff] }
 0x433   : > { %3707 = vmatpush2.msra.mxu0 %v3442_v14  ;;  %3777 = vmatprep.subr.mxu1 %v3571_v28  ;;  %v3377_v14 = vld [vmem:[#allocation11 + $0x38] sm:$0xff]  ;;  %v3480_v28 = vld [vmem:[#allocation11 + $0x370] sm:$0xff] }
 0x434   : > { %3708 = vmatprep.subr.mxu0 %v3439_v15  ;;  %3778 = vmatpush2.msra.mxu1 %v3570_v29  ;;  %v3373_v15 = vld [vmem:[#allocation11 + $0x18] sm:$0xff] }
 0x435   : > { %3709 = vmatpush2.msra.mxu0 %v3438_v20  ;;  %3779 = vmatprep.subr.mxu1 %v3567_v9  ;;  %v3497_v20 = vld [vmem:[#allocation11 + $0x3f8] sm:$0xff]  ;;  %v3476_v9 = vld [vmem:[#allocation11 + $0x350] sm:$0xff] }
 0x436   : > { %3710 = vmatprep.subr.mxu0 %v3435_v26  ;;  %3780 = vmatpush2.msra.mxu1 %v3566_v31  ;;  %v3493_v26 = vld [vmem:[#allocation11 + $0x3d8] sm:$0xff] }
 0x437   : > { %3711 = vmatpush2.msra.mxu0 %v3434_v19  ;;  %3781 = vmatprep.subr.mxu1 %v3563_v1  ;;  %v3489_v19 = vld [vmem:[#allocation11 + $0x3b8] sm:$0xff]  ;;  %v3472_v1 = vld [vmem:[#allocation11 + $0x330] sm:$0xff] }
 0x438   : > { %3790 = vmatprep.subr.mxu0 %v3433_v21  ;;  %3782 = vmatpush2.msra.mxu1 %v3562_v11  ;;  %v3488_v21 = vld [vmem:[#allocation11 + $0x3b0] sm:$0xff]  ;;  %v3485_v23 = vld [vmem:[#allocation11 + $0x398] sm:$0xff] }
 0x439   : > { %3861 = vmatprep.subr.mxu1 %v3561_v32  ;;  %v3481_v25 = vld [vmem:[#allocation11 + $0x378] sm:$0xff]  ;;  %v3468_v32 = vld [vmem:[#allocation11 + $0x310] sm:$0xff] }
 0x43a   : > { %v3477_v29 = vld [vmem:[#allocation11 + $0x358] sm:$0xff] }
 0x43b   : > { %v3473_v31 = vld [vmem:[#allocation11 + $0x338] sm:$0xff] }
 0x43c   : > { %v3469_v11 = vld [vmem:[#allocation11 + $0x318] sm:$0xff] }
 0x475   : > { %v3148_v63 = vpop.f32.mrf.mxu0 }
 0x476   : > { %v3149_v2 = vadd.f32 %v3148_v63, %v3043_v55  ;;  %v3465_v55 = vld [vmem:[#allocation11 + $0x2f8] sm:$0xff] }
 0x477   : > { %v3219_v34 = vpop.f32.mrf.mxu1  ;;  %v3150_v35 = vpop.f32.mrf.mxu0  ;;  %v3461_v63 = vld [vmem:[#allocation11 + $0x2d8] sm:$0xff] }
 0x478   : > { %v3151_v37 = vadd.f32 %v3150_v35, %v3047_v62  ;;  %v6116_v38 = vadd.f32 %v3219_v34, %v3149_v2  ;;  %v3464_v62 = vld [vmem:[#allocation11 + $0x2f0] sm:$0xff]  ;;  %v3457_v34 = vld [vmem:[#allocation11 + $0x2b8] sm:$0xff] }
 0x479   : > { %v3221_v39 = vpop.f32.mrf.mxu1  ;;  %v3460_v2 = vld [vmem:[#allocation11 + $0x2d0] sm:$0xff] }
 0x47a   : > { %v3222_v40 = vadd.f32 %v3221_v39, %v3151_v37  ;;  %v3366_v42 = vmax.f32 %v6116_v38, 0.0  ;;  %v3456_v35 = vld [vmem:[#allocation11 + $0x2b0] sm:$0xff]  ;;  %v3453_v37 = vld [vmem:[#allocation11 + $0x298] sm:$0xff] }
 0x47b   : > { %v3452_v39 = vld [vmem:[#allocation11 + $0x290] sm:$0xff]  ;;  %v3553_v38 = vld [vmem:[#allocation11 + $0x5b8] sm:$0xff] }
 0x47c   : > { %v3367_v41 = vmax.f32 %v3222_v40, 0.0  ;;  %v3449_v40 = vld [vmem:[#allocation11 + $0x278] sm:$0xff] }
 0x47e   : > { %3712 = vmatprep.mubr.f32.mxu0 %v3367_v41 }
 0x47f   : > { %3713 = vmatmul.mubr.f32.vlgmr.msra.gmra.mxu0 %v3366_v42 }
 0x480   : > { %3791 = vmatpush1.msra.mxu0 %v3432_v46  ;;  %3854 = vmatprep.mubr.f32.mxu0 %v3367_v41  ;;  %v3051_v41 = vrot.slane %v6110_v53, %v6077_v4  ;;  %v3448_v46 = vld [vmem:[#allocation11 + $0x270] sm:$0xff] }
 0x481   : > { %3792 = vmatprep.subr.mxu0 %v3429_v47  ;;  %v3445_v47 = vld [vmem:[#allocation11 + $0x258] sm:$0xff] }
 0x482   : > { %3793 = vmatpush1.msra.mxu0 %v3428_v48  ;;  %v3055_v48 = vrot.slane %v6110_v53, %v6080_v6 }
 0x483   : > { %3794 = vmatprep.subr.mxu0 %v3425_v50  ;;  %v3444_v50 = vld [vmem:[#allocation11 + $0x250] sm:$0xff] }
 0x484   : > { %3795 = vmatpush1.msra.mxu0 %v3424_v45 }
 0x485   : > { %3796 = vmatprep.subr.mxu0 %v3421_v51 }
 0x486   : > { %3797 = vmatpush1.msra.mxu0 %v3420_v52  ;;  %v3441_v52 = vld [vmem:[#allocation11 + $0x238] sm:$0xff] }
 0x487   : > { %3798 = vmatprep.subr.mxu0 %v3417_v54 }
 0x488   : > { %3799 = vmatpush1.msra.mxu0 %v3416_v56  ;;  %v3440_v56 = vld [vmem:[#allocation11 + $0x230] sm:$0xff] }
 0x489   : > { %3800 = vmatprep.subr.mxu0 %v3413_v57 }
 0x48a   : > { %3801 = vmatpush1.msra.mxu0 %v3412_v59  ;;  %v3437_v59 = vld [vmem:[#allocation11 + $0x218] sm:$0xff] }
 0x48b   : > { %3802 = vmatprep.subr.mxu0 %v3409_v44 }
 0x48c   : > { %3803 = vmatpush1.msra.mxu0 %v3408_v60  ;;  %v3436_v60 = vld [vmem:[#allocation11 + $0x210] sm:$0xff] }
 0x48d   : > { %3804 = vmatprep.subr.mxu0 %v3405_v58 }
 0x48e   : > { %3805 = vmatpush1.msra.mxu0 %v3404_v61 }
 0x48f   : > { %3806 = vmatprep.subr.mxu0 %v3401_v49 }
 0x490   : > { %3807 = vmatpush1.msra.mxu0 %v3400_v27 }
 0x491   : > { %3808 = vmatprep.subr.mxu0 %v3397_v0  ;;  %v3560_v0 = vld [vmem:[#allocation11 + $0x5f0] sm:$0xff] }
 0x492   : > { %3809 = vmatpush1.msra.mxu0 %v3396_v17  ;;  %v3557_v17 = vld [vmem:[#allocation11 + $0x5d8] sm:$0xff] }
 0x493   : > { %3810 = vmatprep.subr.mxu0 %v3393_v22  ;;  %v3556_v22 = vld [vmem:[#allocation11 + $0x5d0] sm:$0xff] }
 0x494   : > { %3811 = vmatpush1.msra.mxu0 %v3392_v5  ;;  %v3967_v5 = vld [vmem:[%s6355_s7 + $0xf8] sm:$0xff] }
 0x495   : > { %3812 = vmatprep.subr.mxu0 %v3389_v7  ;;  %v3951_v7 = vld [vmem:[%s6355_s7 + $0x78] sm:$0xff] }
 0x496   : > { %3813 = vmatpush1.msra.mxu0 %v3388_v8  ;;  %v3552_v8 = vld [vmem:[#allocation11 + $0x5b0] sm:$0xff] }
 0x497   : > { %3814 = vmatprep.subr.mxu0 %v3385_v10  ;;  %v3950_v10 = vld [vmem:[%s6355_s7 + $0x70] sm:$0xff] }
 0x498   : > { %3815 = vmatpush1.msra.mxu0 %v3384_v12  ;;  %v3549_v12 = vld [vmem:[#allocation11 + $0x598] sm:$0xff] }
 0x499   : > { %3816 = vmatprep.subr.mxu0 %v3381_v33  ;;  %v3965_v33 = vld [vmem:[%s6355_s7 + $0xe8] sm:$0xff] }
 0x49a   : > { %3817 = vmatpush1.msra.mxu0 %v3380_v13  ;;  %v3548_v13 = vld [vmem:[#allocation11 + $0x590] sm:$0xff] }
 0x49b   : > { %3818 = vmatprep.subr.mxu0 %v3377_v14  ;;  %v3949_v14 = vld [vmem:[%s6355_s7 + $0x68] sm:$0xff] }
 0x49c   : > { %3819 = vmatpush1.msra.mxu0 %v3376_v36  ;;  %v3545_v36 = vld [vmem:[#allocation11 + $0x578] sm:$0xff] }
 0x49d   : > { %3820 = vmatprep.subr.mxu0 %v3373_v15  ;;  %v3964_v15 = vld [vmem:[%s6355_s7 + $0xe0] sm:$0xff] }
 0x49e   : > { %3821 = vmatpush1.msra.mxu0 %v3372_v43  ;;  %v3544_v43 = vld [vmem:[#allocation11 + $0x570] sm:$0xff] }
 0x49f   : > { %3822 = vmatprep.subr.mxu0 %v3497_v20  ;;  %v3948_v20 = vld [vmem:[%s6355_s7 + $0x60] sm:$0xff] }
 0x4a0   : > { %3823 = vmatpush2.msra.mxu0 %v3496_v16  ;;  %v3541_v16 = vld [vmem:[#allocation11 + $0x558] sm:$0xff] }
 0x4a1   : > { %3824 = vmatprep.subr.mxu0 %v3493_v26  ;;  %v3963_v26 = vld [vmem:[%s6355_s7 + $0xd8] sm:$0xff] }
 0x4a2   : > { %3825 = vmatpush2.msra.mxu0 %v3492_v18  ;;  %v3540_v18 = vld [vmem:[#allocation11 + $0x550] sm:$0xff] }
 0x4a3   : > { %3826 = vmatprep.subr.mxu0 %v3489_v19  ;;  %v3947_v19 = vld [vmem:[%s6355_s7 + $0x58] sm:$0xff] }
 0x4a4   : > { %3827 = vmatpush2.msra.mxu0 %v3488_v21  ;;  %v3537_v21 = vld [vmem:[#allocation11 + $0x538] sm:$0xff] }
 0x4a5   : > { %3828 = vmatprep.subr.mxu0 %v3485_v23  ;;  %v3962_v23 = vld [vmem:[%s6355_s7 + $0xd0] sm:$0xff] }
 0x4a6   : > { %3829 = vmatpush2.msra.mxu0 %v3484_v24  ;;  %v3536_v24 = vld [vmem:[#allocation11 + $0x530] sm:$0xff] }
 0x4a7   : > { %3830 = vmatprep.subr.mxu0 %v3481_v25  ;;  %v3946_v25 = vld [vmem:[%s6355_s7 + $0x50] sm:$0xff] }
 0x4a8   : > { %3831 = vmatpush2.msra.mxu0 %v3480_v28  ;;  %v3533_v28 = vld [vmem:[#allocation11 + $0x518] sm:$0xff] }
 0x4a9   : > { %3832 = vmatprep.subr.mxu0 %v3477_v29  ;;  %v3961_v29 = vld [vmem:[%s6355_s7 + $0xc8] sm:$0xff] }
 0x4aa   : > { %3833 = vmatpush2.msra.mxu0 %v3476_v9  ;;  %v3532_v9 = vld [vmem:[#allocation11 + $0x510] sm:$0xff] }
 0x4ab   : > { %3834 = vmatprep.subr.mxu0 %v3473_v31  ;;  %v3945_v31 = vld [vmem:[%s6355_s7 + $0x48] sm:$0xff] }
 0x4ac   : > { %3835 = vmatpush2.msra.mxu0 %v3472_v1  ;;  %v3529_v1 = vld [vmem:[#allocation11 + $0x4f8] sm:$0xff] }
 0x4ad   : > { %3836 = vmatprep.subr.mxu0 %v3469_v11  ;;  %v3960_v11 = vld [vmem:[%s6355_s7 + $0xc0] sm:$0xff] }
 0x4ae   : > { %3837 = vmatpush2.msra.mxu0 %v3468_v32  ;;  %v3528_v32 = vld [vmem:[#allocation11 + $0x4f0] sm:$0xff] }
 0x4af   : > { %3838 = vmatprep.subr.mxu0 %v3465_v55  ;;  %v3944_v55 = vld [vmem:[%s6355_s7 + $0x40] sm:$0xff] }
 0x4b0   : > { %3839 = vmatpush2.msra.mxu0 %v3464_v62  ;;  %v3525_v62 = vld [vmem:[#allocation11 + $0x4d8] sm:$0xff] }
 0x4b1   : > { %3840 = vmatprep.subr.mxu0 %v3461_v63  ;;  %v3959_v63 = vld [vmem:[%s6355_s7 + $0xb8] sm:$0xff] }
 0x4b2   : > { %3841 = vmatpush2.msra.mxu0 %v3460_v2  ;;  %v3524_v2 = vld [vmem:[#allocation11 + $0x4d0] sm:$0xff] }
 0x4b3   : > { %3842 = vmatprep.subr.mxu0 %v3457_v34  ;;  %v3943_v34 = vld [vmem:[%s6355_s7 + $0x38] sm:$0xff] }
 0x4b4   : > { %3843 = vmatpush2.msra.mxu0 %v3456_v35  ;;  %v3521_v35 = vld [vmem:[#allocation11 + $0x4b8] sm:$0xff] }
 0x4b5   : > { %3844 = vmatprep.subr.mxu0 %v3453_v37  ;;  %v3958_v37 = vld [vmem:[%s6355_s7 + $0xb0] sm:$0xff] }
 0x4b6   : > { %3845 = vmatpush2.msra.mxu0 %v3452_v39  ;;  %v3520_v39 = vld [vmem:[#allocation11 + $0x4b0] sm:$0xff] }
 0x4b7   : > { %3846 = vmatprep.subr.mxu0 %v3449_v40  ;;  %v3290_v45 = vpop.f32.mrf.mxu0  ;;  %v3942_v40 = vld [vmem:[%s6355_s7 + $0x30] sm:$0xff] }
 0x4b8   : > { %v3361_v51 = vpop.f32.mrf.mxu1  ;;  %3847 = vmatpush2.msra.mxu0 %v3448_v46  ;;  %v3291_v54 = vadd.f32 %v3290_v45, %v3051_v41  ;;  %v3517_v41 = vld [vmem:[#allocation11 + $0x498] sm:$0xff]  ;;  %v3956_v45 = vld [vmem:[%s6355_s7 + $0xa0] sm:$0xff] }
 0x4b9   : > { %3848 = vmatprep.subr.mxu0 %v3445_v47  ;;  %v3292_v57 = vpop.f32.mrf.mxu0  ;;  %v3957_v46 = vld [vmem:[%s6355_s7 + $0xa8] sm:$0xff] }
 0x4ba   : > { %3849 = vmatpush2.msra.mxu0 %v3444_v50  ;;  %v3293_v44 = vadd.f32 %v3292_v57, %v3055_v48  ;;  %v6125_v58 = vadd.f32 %v3361_v51, %v3291_v54  ;;  %v3363_v61 = vpop.f32.mrf.mxu1  ;;  %v3516_v47 = vld [vmem:[#allocation11 + $0x490] sm:$0xff]  ;;  %v3513_v50 = vld [vmem:[#allocation11 + $0x478] sm:$0xff] }
 0x4bb   : > { %3850 = vmatprep.subr.mxu0 %v3441_v52  ;;  %v3941_v48 = vld [vmem:[%s6355_s7 + $0x28] sm:$0xff] }
 0x4bc   : > { %3851 = vmatpush2.msra.mxu0 %v3440_v56  ;;  %v3364_v49 = vadd.f32 %v3363_v61, %v3293_v44  ;;  %v3368_v27 = vmax.f32 %v6125_v58, 0.0  ;;  %v3512_v51 = vld [vmem:[#allocation11 + $0x470] sm:$0xff]  ;;  %v3509_v52 = vld [vmem:[#allocation11 + $0x458] sm:$0xff] }
 0x4bd   : > { %3852 = vmatprep.subr.mxu0 %v3437_v59  ;;  %v3508_v54 = vld [vmem:[#allocation11 + $0x450] sm:$0xff]  ;;  %v3505_v56 = vld [vmem:[#allocation11 + $0x438] sm:$0xff] }
 0x4be   : > { %3853 = vmatpush2.msra.mxu0 %v3436_v60  ;;  %v3369_v53 = vmax.f32 %v3364_v49, 0.0  ;;  %v3504_v57 = vld [vmem:[#allocation11 + $0x430] sm:$0xff]  ;;  %v3501_v59 = vld [vmem:[#allocation11 + $0x418] sm:$0xff] }
 0x4bf   : > { %3855 = vmatmul.mubr.f32.vlgmr.msra.gmra.mxu0 %v3366_v42  ;;  %v3966_v42 = vld [vmem:[%s6355_s7 + $0xf0] sm:$0xff]  ;;  %4300 = vmatprep.subr.mxu0 %v3967_v5  ;;  %v3500_v44 = vld [vmem:[#allocation11 + $0x410] sm:$0xff] }
 0x4c0   : > { %3783 = vmatprep.mubr.f32.mxu1 %v3369_v53  ;;  %4301 = vmatpush3.msra.mxu0 %v3951_v7  ;;  %v3625_v60 = vld [vmem:[#allocation11 + $0x7f8] sm:$0xff]  ;;  %v3624_v61 = vld [vmem:[#allocation11 + $0x7f0] sm:$0xff] }
 0x4c1   : > { %3784 = vmatmul.mubr.f32.vlgmr.msra.gmra.mxu1 %v3368_v27  ;;  %4302 = vmatprep.subr.mxu0 %v3966_v42  ;;  %v3621_v49 = vld [vmem:[#allocation11 + $0x7d8] sm:$0xff]  ;;  %v3612_v5 = vld [vmem:[#allocation11 + $0x790] sm:$0xff] }
 0x4c2   : > { %3862 = vmatpush1.msra.mxu1 %v3560_v0  ;;  %3925 = vmatprep.mubr.f32.mxu1 %v3369_v53  ;;  %v3620_v53 = vld [vmem:[#allocation11 + $0x7d0] sm:$0xff]  ;;  %v3617_v0 = vld [vmem:[#allocation11 + $0x7b8] sm:$0xff] }
 0x4c3   : > { %3863 = vmatprep.subr.mxu1 %v3557_v17  ;;  %4303 = vmatpush3.msra.mxu0 %v3950_v10  ;;  %v3616_v17 = vld [vmem:[#allocation11 + $0x7b0] sm:$0xff]  ;;  %v3609_v7 = vld [vmem:[#allocation11 + $0x778] sm:$0xff] }
 0x4c4   : > { %3864 = vmatpush1.msra.mxu1 %v3556_v22  ;;  %4304 = vmatprep.subr.mxu0 %v3965_v33  ;;  %v3613_v22 = vld [vmem:[#allocation11 + $0x798] sm:$0xff] }
 0x4c5   : > { %3865 = vmatprep.subr.mxu1 %v3553_v38  ;;  %4305 = vmatpush3.msra.mxu0 %v3949_v14  ;;  %v3608_v38 = vld [vmem:[#allocation11 + $0x770] sm:$0xff]  ;;  %v3605_v42 = vld [vmem:[#allocation11 + $0x758] sm:$0xff] }
 0x4c6   : > { %3866 = vmatpush1.msra.mxu1 %v3552_v8  ;;  %4306 = vmatprep.subr.mxu0 %v3964_v15  ;;  %v3604_v8 = vld [vmem:[#allocation11 + $0x750] sm:$0xff]  ;;  %v3601_v10 = vld [vmem:[#allocation11 + $0x738] sm:$0xff] }
 0x4c7   : > { %3867 = vmatprep.subr.mxu1 %v3549_v12  ;;  %4307 = vmatpush3.msra.mxu0 %v3948_v20  ;;  %v3600_v12 = vld [vmem:[#allocation11 + $0x730] sm:$0xff]  ;;  %v3597_v33 = vld [vmem:[#allocation11 + $0x718] sm:$0xff] }
 0x4c8   : > { %3868 = vmatpush1.msra.mxu1 %v3548_v13  ;;  %4308 = vmatprep.subr.mxu0 %v3963_v26  ;;  %v3596_v13 = vld [vmem:[#allocation11 + $0x710] sm:$0xff]  ;;  %v3593_v14 = vld [vmem:[#allocation11 + $0x6f8] sm:$0xff] }
 0x4c9   : > { %3869 = vmatprep.subr.mxu1 %v3545_v36  ;;  %4309 = vmatpush3.msra.mxu0 %v3947_v19  ;;  %v3592_v36 = vld [vmem:[#allocation11 + $0x6f0] sm:$0xff]  ;;  %v3589_v15 = vld [vmem:[#allocation11 + $0x6d8] sm:$0xff] }
 0x4ca   : > { %3870 = vmatpush1.msra.mxu1 %v3544_v43  ;;  %4310 = vmatprep.subr.mxu0 %v3962_v23  ;;  %v3588_v43 = vld [vmem:[#allocation11 + $0x6d0] sm:$0xff]  ;;  %v3585_v20 = vld [vmem:[#allocation11 + $0x6b8] sm:$0xff] }
 0x4cb   : > { %3871 = vmatprep.subr.mxu1 %v3541_v16  ;;  %4311 = vmatpush3.msra.mxu0 %v3946_v25  ;;  %v3584_v16 = vld [vmem:[#allocation11 + $0x6b0] sm:$0xff]  ;;  %v3581_v26 = vld [vmem:[#allocation11 + $0x698] sm:$0xff] }
 0x4cc   : > { %3872 = vmatpush1.msra.mxu1 %v3540_v18  ;;  %4312 = vmatprep.subr.mxu0 %v3961_v29  ;;  %v3580_v18 = vld [vmem:[#allocation11 + $0x690] sm:$0xff]  ;;  %v3577_v19 = vld [vmem:[#allocation11 + $0x678] sm:$0xff] }
 0x4cd   : > { %3873 = vmatprep.subr.mxu1 %v3537_v21  ;;  %4313 = vmatpush3.msra.mxu0 %v3945_v31  ;;  %v3576_v21 = vld [vmem:[#allocation11 + $0x670] sm:$0xff]  ;;  %v3573_v23 = vld [vmem:[#allocation11 + $0x658] sm:$0xff] }
 0x4ce   : > { %3874 = vmatpush1.msra.mxu1 %v3536_v24  ;;  %4314 = vmatprep.subr.mxu0 %v3960_v11  ;;  %v3572_v24 = vld [vmem:[#allocation11 + $0x650] sm:$0xff]  ;;  %v3569_v25 = vld [vmem:[#allocation11 + $0x638] sm:$0xff]  ;;  %v3939_v11 = vld [vmem:[%s6355_s7 + $0x18] sm:$0xff] }
 0x4cf   : > { %3875 = vmatprep.subr.mxu1 %v3533_v28  ;;  %4315 = vmatpush3.msra.mxu0 %v3944_v55  ;;  %v3568_v28 = vld [vmem:[#allocation11 + $0x630] sm:$0xff]  ;;  %v3565_v29 = vld [vmem:[#allocation11 + $0x618] sm:$0xff] }
 0x4d0   : > { %3876 = vmatpush1.msra.mxu1 %v3532_v9  ;;  %4316 = vmatprep.subr.mxu0 %v3959_v63  ;;  %v3564_v9 = vld [vmem:[#allocation11 + $0x610] sm:$0xff]  ;;  %v3938_v58 = vld [vmem:[%s6355_s7 + $0x10] sm:$0xff] }
 0x4d1   : > { %3877 = vmatprep.subr.mxu1 %v3529_v1  ;;  %4317 = vmatpush3.msra.mxu0 %v3943_v34  ;;  %v3940_v31 = vld [vmem:[%s6355_s7 + $0x20] sm:$0xff]  ;;  %v3955_v1 = vld [vmem:[%s6355_s7 + $0x98] sm:$0xff]  ;;  %v3937_v55 = vld [vmem:[%s6355_s7 + $0x8] sm:$0xff] }
 0x4d2   : > { %3878 = vmatpush1.msra.mxu1 %v3528_v32  ;;  %4318 = vmatprep.subr.mxu0 %v3958_v37  ;;  %v3954_v32 = vld [vmem:[%s6355_s7 + $0x90] sm:$0xff]  ;;  %v3936_v63 = vld [vmem:[%s6355_s7] sm:$0xff]  ;;  %v3983_v34 = vld [vmem:[%s6355_s7 + $0x178] sm:$0xff] }
 0x4d3   : > { %3879 = vmatprep.subr.mxu1 %v3525_v62  ;;  %4319 = vmatpush3.msra.mxu0 %v3942_v40  ;;  %v3952_v62 = vld [vmem:[%s6355_s7 + $0x80] sm:$0xff]  ;;  %v3982_v37 = vld [vmem:[%s6355_s7 + $0x170] sm:$0xff]  ;;  %v3981_v40 = vld [vmem:[%s6355_s7 + $0x168] sm:$0xff] }
 0x4d4   : > { %3880 = vmatpush1.msra.mxu1 %v3524_v2  ;;  %4320 = vmatprep.subr.mxu0 %v3957_v46  ;;  %v3999_v2 = vld [vmem:[%s6355_s7 + $0x1f8] sm:$0xff]  ;;  %v3980_v46 = vld [vmem:[%s6355_s7 + $0x160] sm:$0xff] }
 0x4d5   : > { %3881 = vmatprep.subr.mxu1 %v3521_v35  ;;  %4321 = vmatpush3.msra.mxu0 %v3941_v48  ;;  %v3998_v35 = vld [vmem:[%s6355_s7 + $0x1f0] sm:$0xff]  ;;  %v3979_v48 = vld [vmem:[%s6355_s7 + $0x158] sm:$0xff] }
 0x4d6   : > { %3882 = vmatpush1.msra.mxu1 %v3520_v39  ;;  %4322 = vmatprep.subr.mxu0 %v3956_v45  ;;  %v3997_v39 = vld [vmem:[%s6355_s7 + $0x1e8] sm:$0xff]  ;;  %v3978_v45 = vld [vmem:[%s6355_s7 + $0x150] sm:$0xff] }
 0x4d7   : > { %3883 = vmatprep.subr.mxu1 %v3517_v41  ;;  %4323 = vmatpush3.msra.mxu0 %v3940_v31  ;;  %v3996_v41 = vld [vmem:[%s6355_s7 + $0x1e0] sm:$0xff] }
 0x4d8   : > { %3884 = vmatpush1.msra.mxu1 %v3516_v47  ;;  %4324 = vmatprep.subr.mxu0 %v3955_v1  ;;  %v3995_v47 = vld [vmem:[%s6355_s7 + $0x1d8] sm:$0xff] }
 0x4d9   : > { %3885 = vmatprep.subr.mxu1 %v3513_v50  ;;  %4325 = vmatpush3.msra.mxu0 %v3939_v11  ;;  %v3994_v50 = vld [vmem:[%s6355_s7 + $0x1d0] sm:$0xff] }
 0x4da   : > { %3886 = vmatpush1.msra.mxu1 %v3512_v51  ;;  %4326 = vmatprep.subr.mxu0 %v3954_v32  ;;  %v3993_v51 = vld [vmem:[%s6355_s7 + $0x1c8] sm:$0xff] }
 0x4db   : > { %3887 = vmatprep.subr.mxu1 %v3509_v52  ;;  %4327 = vmatpush3.msra.mxu0 %v3938_v58  ;;  %v3977_v52 = vld [vmem:[%s6355_s7 + $0x148] sm:$0xff] }
 0x4dc   : > { %3888 = vmatpush1.msra.mxu1 %v3508_v54  ;;  %v3992_v54 = vld [vmem:[%s6355_s7 + $0x1c0] sm:$0xff] }
 0x4dd   : > { %3889 = vmatprep.subr.mxu1 %v3505_v56  ;;  %v3976_v56 = vld [vmem:[%s6355_s7 + $0x140] sm:$0xff] }
 0x4de   : > { %3890 = vmatpush1.msra.mxu1 %v3504_v57  ;;  %v3991_v57 = vld [vmem:[%s6355_s7 + $0x1b8] sm:$0xff] }
 0x4df   : > { %3891 = vmatprep.subr.mxu1 %v3501_v59  ;;  %v3975_v59 = vld [vmem:[%s6355_s7 + $0x138] sm:$0xff] }
 0x4e0   : > { %3892 = vmatpush1.msra.mxu1 %v3500_v44  ;;  %v3990_v44 = vld [vmem:[%s6355_s7 + $0x1b0] sm:$0xff] }
 0x4e1   : > { %3893 = vmatprep.subr.mxu1 %v3625_v60  ;;  %v3974_v60 = vld [vmem:[%s6355_s7 + $0x130] sm:$0xff] }
 0x4e2   : > { %3894 = vmatpush2.msra.mxu1 %v3624_v61  ;;  %v3989_v61 = vld [vmem:[%s6355_s7 + $0x1a8] sm:$0xff] }
 0x4e3   : > { %3895 = vmatprep.subr.mxu1 %v3621_v49  ;;  %v3973_v49 = vld [vmem:[%s6355_s7 + $0x128] sm:$0xff] }
 0x4e4   : > { %3896 = vmatpush2.msra.mxu1 %v3620_v53  ;;  %v3988_v53 = vld [vmem:[%s6355_s7 + $0x1a0] sm:$0xff] }
 0x4e5   : > { %3897 = vmatprep.subr.mxu1 %v3617_v0  ;;  %v3972_v0 = vld [vmem:[%s6355_s7 + $0x120] sm:$0xff] }
 0x4e6   : > { %3898 = vmatpush2.msra.mxu1 %v3616_v17  ;;  %v3987_v17 = vld [vmem:[%s6355_s7 + $0x198] sm:$0xff] }
 0x4e7   : > { %3899 = vmatprep.subr.mxu1 %v3613_v22  ;;  %v3971_v22 = vld [vmem:[%s6355_s7 + $0x118] sm:$0xff] }
 0x4e8   : > { %3900 = vmatpush2.msra.mxu1 %v3612_v5  ;;  %v3986_v5 = vld [vmem:[%s6355_s7 + $0x190] sm:$0xff] }
 0x4e9   : > { %3901 = vmatprep.subr.mxu1 %v3609_v7  ;;  %v3970_v7 = vld [vmem:[%s6355_s7 + $0x110] sm:$0xff] }
 0x4ea   : > { %3902 = vmatpush2.msra.mxu1 %v3608_v38  ;;  %v3985_v38 = vld [vmem:[%s6355_s7 + $0x188] sm:$0xff] }
 0x4eb   : > { %3903 = vmatprep.subr.mxu1 %v3605_v42  ;;  %v3969_v42 = vld [vmem:[%s6355_s7 + $0x108] sm:$0xff] }
 0x4ec   : > { %3904 = vmatpush2.msra.mxu1 %v3604_v8  ;;  %v3984_v8 = vld [vmem:[%s6355_s7 + $0x180] sm:$0xff] }
 0x4ed   : > { %3905 = vmatprep.subr.mxu1 %v3601_v10  ;;  %v3968_v10 = vld [vmem:[%s6355_s7 + $0x100] sm:$0xff] }
 0x4ee   : > { %3906 = vmatpush2.msra.mxu1 %v3600_v12  ;;  %v3626_v12 = vld [vmem:[#allocation12] sm:$0xf] }
 0x4ef   : > { %3907 = vmatprep.subr.mxu1 %v3597_v33 }
 0x4f0   : > { %3908 = vmatpush2.msra.mxu1 %v3596_v13  ;;  %v3631_v13 = vrot.slane %v3626_v12, %v6071_v30 }
 0x4f1   : > { %3909 = vmatprep.subr.mxu1 %v3593_v14  ;;  %v3635_v14 = vrot.slane %v3626_v12, %v6074_v3 }
 0x4f2   : > { %3910 = vmatpush2.msra.mxu1 %v3592_v36 }
 0x4f3   : > { %3911 = vmatprep.subr.mxu1 %v3589_v15 }
 0x4f4   : > { %3912 = vmatpush2.msra.mxu1 %v3588_v43 }
 0x4f5   : > { %3913 = vmatprep.subr.mxu1 %v3585_v20 }
 0x4f6   : > { %3914 = vmatpush2.msra.mxu1 %v3584_v16 }
 0x4f7   : > { %3915 = vmatprep.subr.mxu1 %v3581_v26 }
 0x4f8   : > { %3916 = vmatpush2.msra.mxu1 %v3580_v18 }
 0x4f9   : > { %3917 = vmatprep.subr.mxu1 %v3577_v19 }
 0x4fa   : > { %3918 = vmatpush2.msra.mxu1 %v3576_v21 }
 0x4fb   : > { %3919 = vmatprep.subr.mxu1 %v3573_v23 }
 0x4fc   : > { %3920 = vmatpush2.msra.mxu1 %v3572_v24  ;;  %v3639_v24 = vrot.slane %v3626_v12, %v6077_v4 }
 0x4fd   : > { %3921 = vmatprep.subr.mxu1 %v3569_v25  ;;  %v3643_v25 = vrot.slane %v3626_v12, %v6080_v6 }
 0x4fe   : > { %3922 = vmatpush2.msra.mxu1 %v3568_v28 }
 0x4ff   : > { %3923 = vmatprep.subr.mxu1 %v3565_v29 }
 0x500   : > { %3924 = vmatpush2.msra.mxu1 %v3564_v9 }
 0x501   : > { %3926 = vmatmul.mubr.f32.vlgmr.msra.gmra.mxu1 %v3368_v27  ;;  %v3953_v27 = vld [vmem:[%s6355_s7 + $0x88] sm:$0xff]  ;;  %4335 = vmatprep.subr.mxu1 %v3999_v2 }
 0x502   : > { %4328 = vmatprep.subr.mxu0 %v3953_v27  ;;  %4336 = vmatpush3.msra.mxu1 %v3983_v34 }
 0x503   : > { %4329 = vmatpush3.msra.mxu0 %v3937_v55  ;;  %4337 = vmatprep.subr.mxu1 %v3998_v35 }
 0x504   : > { %4330 = vmatprep.subr.mxu0 %v3952_v62  ;;  %4338 = vmatpush3.msra.mxu1 %v3982_v37  ;;  %v4294_v62 = vld [vmem:[#allocation3] ss:$0 sm:$0xff] }
 0x505   : > { %4331 = vmatpush3.msra.mxu0 %v3936_v63  ;;  %4339 = vmatprep.subr.mxu1 %v3997_v39 }
 0x506   : > { %4340 = vmatpush3.msra.mxu1 %v3981_v40 }
 0x507   : > { %4341 = vmatprep.subr.mxu1 %v3996_v41 }
 0x508   : > { %4342 = vmatpush3.msra.mxu1 %v3980_v46 }
 0x509   : > { %4343 = vmatprep.subr.mxu1 %v3995_v47 }
 0x50a   : > { %4344 = vmatpush3.msra.mxu1 %v3979_v48 }
 0x50b   : > { %4345 = vmatprep.subr.mxu1 %v3994_v50 }
 0x50c   : > { %4346 = vmatpush3.msra.mxu1 %v3978_v45 }
 0x50d   : > { %4347 = vmatprep.subr.mxu1 %v3993_v51 }
 0x50e   : > { %4348 = vmatpush3.msra.mxu1 %v3977_v52 }
 0x50f   : > { %4349 = vmatprep.subr.mxu1 %v3992_v54 }
 0x510   : > { %4350 = vmatpush3.msra.mxu1 %v3976_v56 }
 0x511   : > { %4351 = vmatprep.subr.mxu1 %v3991_v57 }
 0x512   : > { %4352 = vmatpush3.msra.mxu1 %v3975_v59 }
 0x513   : > { %4353 = vmatprep.subr.mxu1 %v3990_v44 }
 0x514   : > { %4354 = vmatpush3.msra.mxu1 %v3974_v60 }
 0x515   : > { %4355 = vmatprep.subr.mxu1 %v3989_v61 }
 0x516   : > { %4356 = vmatpush3.msra.mxu1 %v3973_v49 }
 0x517   : > { %4357 = vmatprep.subr.mxu1 %v3988_v53 }
 0x518   : > { %4358 = vmatpush3.msra.mxu1 %v3972_v0 }
 0x519   : > { %4359 = vmatprep.subr.mxu1 %v3987_v17 }
 0x51a   : > { %4360 = vmatpush3.msra.mxu1 %v3971_v22 }
 0x51b   : > { %4361 = vmatprep.subr.mxu1 %v3986_v5 }
 0x51c   : > { %4362 = vmatpush3.msra.mxu1 %v3970_v7 }
 0x51d   : > { %4363 = vmatprep.subr.mxu1 %v3985_v38 }
 0x51e   : > { %4364 = vmatpush3.msra.mxu1 %v3969_v42 }
 0x51f   : > { %4365 = vmatprep.subr.mxu1 %v3984_v8 }
 0x520   : > { %4366 = vmatpush3.msra.mxu1 %v3968_v10 }
 0x53f   : > { %v3714_v33 = vpop.f32.mrf.mxu0 }
 0x540   : > { %v3715_v15 = vadd.f32 %v3714_v33, %v3631_v13 }
 0x541   : > { %v3716_v36 = vpop.f32.mrf.mxu0 }
 0x542   : > { %v3717_v20 = vadd.f32 %v3716_v36, %v3635_v14 }
 0x57f   : > { %v3856_v23 = vpop.f32.mrf.mxu0 }
 0x580   : > { %v3857_v30 = vadd.f32 %v3856_v23, %v3639_v24 }
 0x581   : > { %v3785_v43 = vpop.f32.mrf.mxu1  ;;  %v3858_v28 = vpop.f32.mrf.mxu0 }
 0x582   : > { %v3786_v16 = vadd.f32 %v3785_v43, %v3715_v15  ;;  %v3859_v3 = vadd.f32 %v3858_v28, %v3643_v25 }
 0x583   : > { %v3787_v26 = vpop.f32.mrf.mxu1 }
 0x584   : > { %v3788_v18 = vadd.f32 %v3787_v26, %v3717_v20  ;;  %v3932_v21 = vmax.f32 %v3786_v16, 0.0 }
 0x586   : > { %v3933_v19 = vmax.f32 %v3788_v18, 0.0 }
 0x588   : > { %4071 = vmatprep.mubr.f32.mxu0 %v3933_v19 }
 0x589   : > { %4072 = vmatmul.mubr.f32.vlgmr.msra.gmra.mxu0 %v3932_v21 }
 0x5c1   : > { %v3927_v29 = vpop.f32.mrf.mxu1 }
 0x5c2   : > { %v3928_v9 = vadd.f32 %v3927_v29, %v3857_v30 }
 0x5c3   : > { %v3929_v31 = vpop.f32.mrf.mxu1 }
 0x5c4   : > { %v3930_v1 = vadd.f32 %v3929_v31, %v3859_v3  ;;  %v3934_v32 = vmax.f32 %v3928_v9, 0.0 }
 0x5c6   : > { %v3935_v11 = vmax.f32 %v3930_v1, 0.0 }
 0x5c8   : > { %4141 = vmatprep.mubr.f32.mxu1 %v3935_v11 }
 0x5c9   : > { %4142 = vmatmul.mubr.f32.vlgmr.msra.gmra.mxu1 %v3934_v32 }
 0x649   : > { %v4332_v58 = vpop.f32.mrf.mxu0 }
 0x64b   : > { %v4333_v27 = vpop.f32.mrf.mxu0 }
 0x64c   : > { %v4334_v55 = vadd.f32 %v4333_v27, %v4332_v58 }
 0x64e   : > { %v4074_v4 = vadd.f32 %v4334_v55, %v4294_v62 }
 0x689   : > { %v4367_v63 = vpop.f32.mrf.mxu1 }
 0x68b   : > { %v4368_v2 = vpop.f32.mrf.mxu1 }
 0x68c   : > { %v4369_v34 = vadd.f32 %v4368_v2, %v4367_v63 }
 0x68e   : > { %v4144_v6 = vadd.f32 %v4369_v34, %v4074_v4 }
 0x690   : > { %v4295_v35 = vmul.f32 -1.442695, %v4144_v6 }
 0x692   : > { %4469 = vpow2.f32 %v4295_v35 }
 0x69f   : > { %v4470_v37 = vpop.eup %4469 }
 0x6a0   : > { %v4150_v39 = vadd.f32 1.0, %v4470_v37 }
 0x6a2   : > { %4471 = vrcp.f32 %v4150_v39 }
 0x6af   : > { %v4472_v40 = vpop.eup %4471 }
 0x6b0   : > { %v4154_v41 = vsel %vm4153_vm0, %v4472_v40, 0.0 }
 0x6b1   : > { %4155 = vadd.xlane.f32.xlu0 %v4154_v41 }
 0x73a   : > { %v4156_v46 = vpop.xlane.xlu0 %4155 }
 0x73b   : > { %v4157_v47 = vrot.slane %v4156_v46, 4 }
 0x73d   : > { %v4158_v48 = vadd.f32 %v4157_v47, %v4156_v46 }
 0x73f   : > { %v4159_v50 = vrot.slane %v4158_v48, 2 }
 0x741   : > { %v4160_v45 = vadd.f32 %v4159_v50, %v4158_v48 }
 0x743   : > { %v4161_v51 = vrot.slane %v4160_v45, 1 }
 0x745   : > { %v4162_v52 = vadd.f32 %v4161_v51, %v4160_v45 }
 0x747   : > { %4370 = vpush %v4162_v52 }
 0x778   : > { %s4371_s30 = spop %4370 }
 0x779   : > { %s4166_s26 = smul.f32 0.5, %s4371_s30 }
 0x77b   : > { %v4167_v54 = vstv %s4166_s26 }
 0x77c   : > { %v4168_v56 = vsub.f32 %v4472_v40, %v4167_v54 }
 0x77e   : > { %v4169_v57 = vadd.f32 0.5, %v4168_v56 }
 0x780   : > { %4170 = vst.msk [vmem:[%s6357_s9] sm:$0x3] %vm4153_vm0, %v4169_v57 }
 0x781 PF: > { %p24_p1 = scmp.ge.s32.totalorder %s4835_s23, 10   ;;  %s6378_s11 = smov %s4669_s12 }
 0x782   : > { %s6379_s12 = smov %s4673_s13  ;;  %s6380_s13 = smov %s4846_s18 }
 0x783   : > { %s6381_s14 = smov %s4835_s23  ;;  %26 = sbr.rel (!%p24_p1) target bundleno = 9 (0x9), region = 127 }
 0x788   :  { %4182 = vsyncpa [#allocation5], 1 }
 0x789   :  { %4184 = vsyncpa [#allocation5 + $0x1], 1 }
 0x78a   :  { %4185 = vsyncpa [#allocation7], 1 }
 0x78b   :  { %4186 = vsyncpa [#allocation10], 1 }
 0x78c   :  { %4187 = vsyncpa [#allocation13], 1 }

</bundles_post_ra>
